<compile_context>
chip_gen: v7x
topology: tpu7x:2x2x1
jax: 0.10.0
libtpu: 0.0.40
codegen_flags: <defaults>
</compile_context>

<pallas_src>
import jax
import jax.numpy as jnp
import numpy as np
from jax.experimental import pallas as pl
from jax.experimental.pallas import tpu as pltpu

# ------------------------- model hyper-parameters ---------------------------
INPUT_DIM = 6      # feature_dim of history
HIDDEN_DIM = 32    # hidden_dim (small for the example; PyTorch default is 128)
OUTPUT_DIM = 2     # (x, y)
NUM_LAYERS = 2
OUTPUT_SEQ_LEN = 8

H = HIDDEN_DIM
G = 4 * H          # LSTM gate width -> 128 lanes, exactly one f32 vreg row


# ------------------------------ Pallas kernel -------------------------------
def seq2seq_kernel(hist_ref,                                   # [T_in*Bp, D_in]
                   e0_ih_ref, e0_hh_ref, e0_b_ref,             # encoder layer 0
                   e1_w_ref, e1_b_ref,                         # encoder layer 1 (fused K)
                   d0_ih_ref, d0_b_ref,                        # decoder layer 0 (step 0)
                   d0_fb_w_ref, d0_fb_b_ref,                   # decoder layer 0 (fused K, FC folded)
                   d1_w_ref, d1_b_ref,                         # decoder layer 1 (fused K)
                   fc_w_ref, fc_b_ref,                         # output head
                   out_ref):                                   # [T_out*Bp, D_out]
    f32 = jnp.float32
    t_out = OUTPUT_SEQ_LEN
    bp = out_ref.shape[0] // t_out
    t_in = hist_ref.shape[0] // bp

    def gates_to_hc(gates, c):
        # gate order (i, f, o, g): one contiguous sigmoid + one tanh (EUP)
        sig = jax.nn.sigmoid(gates[:, :3 * H])
        g = jnp.tanh(gates[:, 3 * H:])
        i = sig[:, 0 * H:1 * H]
        f = sig[:, 1 * H:2 * H]
        o = sig[:, 2 * H:3 * H]
        c_new = f * c + i * g
        h_new = o * jnp.tanh(c_new)
        return h_new, c_new

    # ------------------------------ encoder ---------------------------------
    # Off-critical-path: layer-0 input projections for ALL steps in one matmul.
    hist = hist_ref[...]                                        # [T_in*Bp, D_in]
    xproj0 = (jnp.dot(hist, e0_ih_ref[...], preferred_element_type=f32)
              + e0_b_ref[...])                                  # [T_in*Bp, 4H]

    e0_hh = e0_hh_ref[...]                                      # [H, 4H]
    e1_w = e1_w_ref[...]                                        # [2H, 4H] = [ih; hh]
    e1_b = jnp.broadcast_to(e1_b_ref[...], (bp, G))             # hoisted broadcast

    zero = jnp.zeros((bp, H), f32)
    h0, c0, h1, c1 = zero, zero, zero, zero                     # register-resident state
    for t in range(t_in):                                       # static unroll
        # layer 0: x-proj is precomputed -> single on-chain dot
        g0 = xproj0[t * bp:(t + 1) * bp, :] + jnp.dot(
            h0, e0_hh, preferred_element_type=f32)
        h0, c0 = gates_to_hc(g0, c0)
        # layer 1: one fused K=2H matmul instead of two dots + add
        g1 = jnp.dot(jnp.concatenate([h0, h1], axis=1), e1_w,
                     preferred_element_type=f32) + e1_b
        h1, c1 = gates_to_hc(g1, c1)

    # ------------------------------ decoder ---------------------------------
    d0_fb_w = d0_fb_w_ref[...]                                  # [2H, 4H] = [fc@ih; hh]
    d0_hh = d0_fb_w[H:2 * H, :]                                 # hh block, reused for step 0
    d0_fb_b = jnp.broadcast_to(d0_fb_b_ref[...], (bp, G))
    d1_w = d1_w_ref[...]                                        # [2H, 4H] = [ih; hh]
    d1_b = jnp.broadcast_to(d1_b_ref[...], (bp, G))

    # Seed input: last history step (d0_ih is zero-padded to D_in rows at pack
    # time, so no 2-lane slice / K=2 matmul is needed).  Off the chain.
    x_last = hist[(t_in - 1) * bp:t_in * bp, :]                 # [Bp, D_in]
    xproj_first = (jnp.dot(x_last, d0_ih_ref[...], preferred_element_type=f32)
                   + d0_b_ref[...])                             # [Bp, 4H]

    h1_steps = []
    for t in range(t_out):                                      # static unroll
        if t == 0:
            g0 = xproj_first + jnp.dot(h0, d0_hh, preferred_element_type=f32)
        else:
            # FC head folded into rows [0:H] of d0_fb_w: feed h1 directly.
            g0 = jnp.dot(jnp.concatenate([h1, h0], axis=1), d0_fb_w,
                         preferred_element_type=f32) + d0_fb_b
        h0, c0 = gates_to_hc(g0, c0)
        g1 = jnp.dot(jnp.concatenate([h0, h1], axis=1), d1_w,
                     preferred_element_type=f32) + d1_b
        h1, c1 = gates_to_hc(g1, c1)
        h1_steps.append(h1)

    # Output head once, off the recurrent chain; single flat store at the end.
    h1_all = jnp.concatenate(h1_steps, axis=0)                  # [T_out*Bp, H]
    out_ref[...] = (jnp.dot(h1_all, fc_w_ref[...], preferred_element_type=f32)
                    + fc_b_ref[...])                            # [T_out*Bp, D_out]


# --------------------------------- wrapper -----------------------------------
@jax.jit
def seq2seq_forward(history, packed_params):
    """history: [B, num_agents, T_in, INPUT_DIM] -> [B, OUTPUT_SEQ_LEN, OUTPUT_DIM]."""
    ego = history[:, 0, :, :]                       # [B, T_in, D_in]
    b, t_in, d_in = ego.shape
    # Pad batch to a sublane multiple.  For throughput, callers should pack
    # many scenarios per call (Bp toward 128/256) -- per-step latency is nearly
    # independent of M up to the MXU row count.
    bp = ((b + 7) // 8) * 8
    hist_tm = jnp.transpose(ego, (1, 0, 2))         # time-major [T_in, B, D_in]
    hist_tm = jnp.pad(hist_tm, ((0, 0), (0, bp - b), (0, 0)))
    hist_flat = hist_tm.reshape(t_in * bp, d_in)    # flatten folds into input DMA

    vmem = pl.BlockSpec(memory_space=pltpu.MemorySpace.VMEM)
    # Footprint ~100 KiB -> gridless.  (Add a batch grid with
    # dimension_semantics=("parallel",) on v7x once the batch grows.)
    out_flat = pl.pallas_call(
        seq2seq_kernel,
        out_shape=jax.ShapeDtypeStruct((OUTPUT_SEQ_LEN * bp, OUTPUT_DIM),
                                       jnp.float32),
        in_specs=[vmem] * (1 + len(packed_params)),
        out_specs=vmem,
    )(hist_flat, *packed_params)

    out_tm = out_flat.reshape(OUTPUT_SEQ_LEN, bp, OUTPUT_DIM)
    return jnp.transpose(out_tm, (1, 0, 2))[:b]     # [B, T_out, D_out]


# --------------------------- parameter construction ---------------------------
def init_torch_params(key):
    """PyTorch-layout params: LSTM weight_ih [4H,in], weight_hh [4H,H], two
    biases, gate order (i, f, g, o); Linear weight [D_out, H], bias [D_out].
    Uniform(-1/sqrt(H), 1/sqrt(H)) like nn.LSTM / nn.Linear defaults."""
    k = 1.0 / np.sqrt(H)
    keys = iter(jax.random.split(key, 32))

    def u(shape):
        return jax.random.uniform(next(keys), shape, jnp.float32, minval=-k, maxval=k)

    def lstm_layer(in_dim):
        return dict(w_ih=u((G, in_dim)), w_hh=u((G, H)), b_ih=u((G,)), b_hh=u((G,)))

    enc = [lstm_layer(INPUT_DIM), lstm_layer(H)]
    dec = [lstm_layer(OUTPUT_DIM), lstm_layer(H)]
    fc = dict(w=u((OUTPUT_DIM, H)), b=u((OUTPUT_DIM,)))
    return enc, dec, fc


def _reorder_gates(w):
    """Reorder the leading 4H gate axis from (i, f, g, o) to (i, f, o, g)."""
    i, f, g, o = jnp.split(w, 4, axis=0)
    return jnp.concatenate([i, f, o, g], axis=0)


def pack_params(enc, dec, fc):
    """Pack PyTorch-layout params into the kernel layout: pre-transposed
    weights ([in, 4H]), summed biases, (i,f,o,g) gate order, FC head folded
    into decoder layer-0 feedback, and the recurrent [W_ih ; W_hh] pairs
    stacked along K into single [2H, 4H] matrices for fused per-cell dots."""
    def layer(p):
        w_ih = _reorder_gates(p['w_ih']).T                  # [in, 4H]
        w_hh = _reorder_gates(p['w_hh']).T                  # [H, 4H]
        b = _reorder_gates(p['b_ih'] + p['b_hh'])[None, :]  # [1, 4H]
        return w_ih, w_hh, b

    e0_ih, e0_hh, e0_b = layer(enc[0])
    e1_ih, e1_hh, e1_b = layer(enc[1])
    d0_ih, d0_hh, d0_b = layer(dec[0])
    d1_ih, d1_hh, d1_b = layer(dec[1])
    fc_w = fc['w'].T                                        # [H, D_out]
    fc_b = fc['b'][None, :]                                 # [1, D_out]

    # Fold FC head into decoder layer-0 input projection (feedback steps >= 1):
    # y = h1 @ fc_w + fc_b  =>  y @ W_ih = h1 @ (fc_w @ W_ih) + fc_b @ W_ih.
    d0_fbw = fc_w @ d0_ih                                   # [H, 4H]
    d0_fbb = d0_b + fc_b @ d0_ih                            # [1, 4H]

    # Zero-pad decoder layer-0 W_ih to D_in rows so the first decoder step can
    # consume the full last-history row (no lane slice, no K=2 matmul).
    d0_ih_pad = jnp.zeros((INPUT_DIM, G), jnp.float32).at[:OUTPUT_DIM].set(d0_ih)

    # K-concatenated recurrent weights (one MXU pass per cell on the chain):
    e1_w = jnp.concatenate([e1_ih, e1_hh], axis=0)          # inputs [h0, h1]
    d0_fb_w = jnp.concatenate([d0_fbw, d0_hh], axis=0)      # inputs [h1, h0]
    d1_w = jnp.concatenate([d1_ih, d1_hh], axis=0)          # inputs [h0, h1]

    return (e0_ih, e0_hh, e0_b,
            e1_w, e1_b,
            d0_ih_pad, d0_b,
            d0_fb_w, d0_fbb,
            d1_w, d1_b,
            fc_w, fc_b)


# ------------------------------ pure-JAX reference ----------------------------
def _cell_ref(x, h, c, p):
    gates = x @ p['w_ih'].T + h @ p['w_hh'].T + p['b_ih'] + p['b_hh']
    i, f, g, o = jnp.split(gates, 4, axis=-1)
    c_new = jax.nn.sigmoid(f) * c + jax.nn.sigmoid(i) * jnp.tanh(g)
    h_new = jax.nn.sigmoid(o) * jnp.tanh(c_new)
    return h_new, c_new


def seq2seq_ref(history, enc, dec, fc):
    ego = history[:, 0, :, :]
    b, t_in, _ = ego.shape
    z = jnp.zeros((b, H), jnp.float32)
    h0 = c0 = h1 = c1 = z
    for t in range(t_in):
        x = ego[:, t, :]
        h0, c0 = _cell_ref(x, h0, c0, enc[0])
        h1, c1 = _cell_ref(h0, h1, c1, enc[1])
    x = ego[:, -1, :OUTPUT_DIM]
    outs = []
    for _ in range(OUTPUT_SEQ_LEN):
        h0, c0 = _cell_ref(x, h0, c0, dec[0])
        h1, c1 = _cell_ref(h0, h1, c1, dec[1])
        y = h1 @ fc['w'].T + fc['b']
        outs.append(y)
        x = y
    return jnp.stack(outs, axis=1)                  # [B, T_out, D_out]


# ----------------------------------- main -------------------------------------
if __name__ == "__main__":
    key = jax.random.PRNGKey(0)
    k_hist, k_param = jax.random.split(key)

    B, NUM_AGENTS, T_IN = 2, 3, 8
    history = jax.random.normal(k_hist, (B, NUM_AGENTS, T_IN, INPUT_DIM),
                                dtype=jnp.float32)
    enc, dec, fc = init_torch_params(k_param)
    packed = pack_params(enc, dec, fc)

    pred = seq2seq_forward(history, packed)
    pred = jax.block_until_ready(pred)

    ref = seq2seq_ref(history, enc, dec, fc)
    # Tolerance absorbs MXU default-precision passes plus the FC-fold
    # reassociation through the 16-step recurrence.
    np.testing.assert_allclose(np.asarray(pred), np.asarray(ref),
                               rtol=2e-3, atol=2e-4)
    assert pred.shape == (B, OUTPUT_SEQ_LEN, OUTPUT_DIM)
    print("KERNEL_OK")
</pallas_src>

<mosaic_0001>
module attributes {stable_mosaic.version = 11 : i64} {
  func.func @seq2seq_kernel(%arg0: memref<64x6xf32, #tpu.memory_space<vmem>>, %arg1: memref<6x128xf32, #tpu.memory_space<vmem>>, %arg2: memref<32x128xf32, #tpu.memory_space<vmem>>, %arg3: memref<1x128xf32, #tpu.memory_space<vmem>>, %arg4: memref<64x128xf32, #tpu.memory_space<vmem>>, %arg5: memref<1x128xf32, #tpu.memory_space<vmem>>, %arg6: memref<6x128xf32, #tpu.memory_space<vmem>>, %arg7: memref<1x128xf32, #tpu.memory_space<vmem>>, %arg8: memref<64x128xf32, #tpu.memory_space<vmem>>, %arg9: memref<1x128xf32, #tpu.memory_space<vmem>>, %arg10: memref<64x128xf32, #tpu.memory_space<vmem>>, %arg11: memref<1x128xf32, #tpu.memory_space<vmem>>, %arg12: memref<32x2xf32, #tpu.memory_space<vmem>>, %arg13: memref<1x2xf32, #tpu.memory_space<vmem>>, %arg14: memref<64x2xf32, #tpu.memory_space<vmem>>) attributes {dimension_semantics = [], scalar_prefetch = 0 : i64, scratch_operands = 0 : i64, tpu.core_type = #tpu.core_type<tc>} {
    %c0 = arith.constant 0 : index
    %c0_0 = arith.constant 0 : index
    %0 = vector.load %arg0[%c0, %c0_0] : memref<64x6xf32, #tpu.memory_space<vmem>>, vector<64x6xf32>
    %c0_1 = arith.constant 0 : index
    %c0_2 = arith.constant 0 : index
    %1 = vector.load %arg1[%c0_1, %c0_2] : memref<6x128xf32, #tpu.memory_space<vmem>>, vector<6x128xf32>
    %cst = arith.constant dense<0.000000e+00> : vector<64x128xf32>
    %2 = tpu.matmul %0, %1, %cst {dimension_numbers = #tpu.dot_dimension_numbers<[1], [0], [0], [1], [0, 0, 1, 1], [], []>} : vector<64x6xf32>, vector<6x128xf32>, vector<64x128xf32> -> vector<64x128xf32>
    %c0_3 = arith.constant 0 : index
    %c0_4 = arith.constant 0 : index
    %3 = vector.load %arg3[%c0_3, %c0_4] : memref<1x128xf32, #tpu.memory_space<vmem>>, vector<1x128xf32>
    %4 = vector.broadcast %3 : vector<1x128xf32> to vector<64x128xf32>
    %5 = arith.addf %2, %4 : vector<64x128xf32>
    %c0_5 = arith.constant 0 : index
    %c0_6 = arith.constant 0 : index
    %6 = vector.load %arg2[%c0_5, %c0_6] : memref<32x128xf32, #tpu.memory_space<vmem>>, vector<32x128xf32>
    %c0_7 = arith.constant 0 : index
    %c0_8 = arith.constant 0 : index
    %7 = vector.load %arg4[%c0_7, %c0_8] : memref<64x128xf32, #tpu.memory_space<vmem>>, vector<64x128xf32>
    %c0_9 = arith.constant 0 : index
    %c0_10 = arith.constant 0 : index
    %8 = vector.load %arg5[%c0_9, %c0_10] : memref<1x128xf32, #tpu.memory_space<vmem>>, vector<1x128xf32>
    %9 = vector.shape_cast %8 : vector<1x128xf32> to vector<1x128xf32>
    %10 = vector.broadcast %9 : vector<1x128xf32> to vector<8x128xf32>
    %cst_11 = arith.constant 0.000000e+00 : f32
    %11 = vector.broadcast %cst_11 : f32 to vector<8x32xf32>
    %12 = vector.extract_strided_slice %5 {offsets = [0, 0], sizes = [8, 128], strides = [1, 1]} : vector<64x128xf32> to vector<8x128xf32>
    %cst_12 = arith.constant dense<0.000000e+00> : vector<8x128xf32>
    %13 = tpu.matmul %11, %6, %cst_12 {dimension_numbers = #tpu.dot_dimension_numbers<[1], [0], [0], [1], [0, 0, 1, 1], [], []>} : vector<8x32xf32>, vector<32x128xf32>, vector<8x128xf32> -> vector<8x128xf32>
    %14 = arith.addf %12, %13 : vector<8x128xf32>
    %15 = vector.extract_strided_slice %14 {offsets = [0, 0], sizes = [8, 96], strides = [1, 1]} : vector<8x128xf32> to vector<8x96xf32>
    %16 = arith.negf %15 : vector<8x96xf32>
    %17 = math.exp %16 : vector<8x96xf32>
    %cst_13 = arith.constant 1.000000e+00 : f32
    %18 = vector.broadcast %cst_13 : f32 to vector<8x96xf32>
    %19 = arith.addf %18, %17 : vector<8x96xf32>
    %20 = arith.divf %18, %19 : vector<8x96xf32>
    %21 = vector.extract_strided_slice %14 {offsets = [0, 96], sizes = [8, 32], strides = [1, 1]} : vector<8x128xf32> to vector<8x32xf32>
    %22 = math.tanh %21 : vector<8x32xf32>
    %23 = vector.extract_strided_slice %20 {offsets = [0, 0], sizes = [8, 32], strides = [1, 1]} : vector<8x96xf32> to vector<8x32xf32>
    %24 = vector.extract_strided_slice %20 {offsets = [0, 32], sizes = [8, 32], strides = [1, 1]} : vector<8x96xf32> to vector<8x32xf32>
    %25 = vector.extract_strided_slice %20 {offsets = [0, 64], sizes = [8, 32], strides = [1, 1]} : vector<8x96xf32> to vector<8x32xf32>
    %26 = arith.mulf %24, %11 : vector<8x32xf32>
    %27 = arith.mulf %23, %22 : vector<8x32xf32>
    %28 = arith.addf %26, %27 : vector<8x32xf32>
    %29 = math.tanh %28 : vector<8x32xf32>
    %30 = arith.mulf %25, %29 : vector<8x32xf32>
    %31 = tpu.concatenate %30, %11 in 1 : vector<8x32xf32>, vector<8x32xf32> -> vector<8x64xf32>
    %cst_14 = arith.constant dense<0.000000e+00> : vector<8x128xf32>
    %32 = tpu.matmul %31, %7, %cst_14 {dimension_numbers = #tpu.dot_dimension_numbers<[1], [0], [0], [1], [0, 0, 1, 1], [], []>} : vector<8x64xf32>, vector<64x128xf32>, vector<8x128xf32> -> vector<8x128xf32>
    %33 = arith.addf %32, %10 : vector<8x128xf32>
    %34 = vector.extract_strided_slice %33 {offsets = [0, 0], sizes = [8, 96], strides = [1, 1]} : vector<8x128xf32> to vector<8x96xf32>
    %35 = arith.negf %34 : vector<8x96xf32>
    %36 = math.exp %35 : vector<8x96xf32>
    %cst_15 = arith.constant 1.000000e+00 : f32
    %37 = vector.broadcast %cst_15 : f32 to vector<8x96xf32>
    %38 = arith.addf %37, %36 : vector<8x96xf32>
    %39 = arith.divf %37, %38 : vector<8x96xf32>
    %40 = vector.extract_strided_slice %33 {offsets = [0, 96], sizes = [8, 32], strides = [1, 1]} : vector<8x128xf32> to vector<8x32xf32>
    %41 = math.tanh %40 : vector<8x32xf32>
    %42 = vector.extract_strided_slice %39 {offsets = [0, 0], sizes = [8, 32], strides = [1, 1]} : vector<8x96xf32> to vector<8x32xf32>
    %43 = vector.extract_strided_slice %39 {offsets = [0, 32], sizes = [8, 32], strides = [1, 1]} : vector<8x96xf32> to vector<8x32xf32>
    %44 = vector.extract_strided_slice %39 {offsets = [0, 64], sizes = [8, 32], strides = [1, 1]} : vector<8x96xf32> to vector<8x32xf32>
    %45 = arith.mulf %43, %11 : vector<8x32xf32>
    %46 = arith.mulf %42, %41 : vector<8x32xf32>
    %47 = arith.addf %45, %46 : vector<8x32xf32>
    %48 = math.tanh %47 : vector<8x32xf32>
    %49 = arith.mulf %44, %48 : vector<8x32xf32>
    %50 = vector.extract_strided_slice %5 {offsets = [8, 0], sizes = [8, 128], strides = [1, 1]} : vector<64x128xf32> to vector<8x128xf32>
    %cst_16 = arith.constant dense<0.000000e+00> : vector<8x128xf32>
    %51 = tpu.matmul %30, %6, %cst_16 {dimension_numbers = #tpu.dot_dimension_numbers<[1], [0], [0], [1], [0, 0, 1, 1], [], []>} : vector<8x32xf32>, vector<32x128xf32>, vector<8x128xf32> -> vector<8x128xf32>
    %52 = arith.addf %50, %51 : vector<8x128xf32>
    %53 = vector.extract_strided_slice %52 {offsets = [0, 0], sizes = [8, 96], strides = [1, 1]} : vector<8x128xf32> to vector<8x96xf32>
    %54 = arith.negf %53 : vector<8x96xf32>
    %55 = math.exp %54 : vector<8x96xf32>
    %cst_17 = arith.constant 1.000000e+00 : f32
    %56 = vector.broadcast %cst_17 : f32 to vector<8x96xf32>
    %57 = arith.addf %56, %55 : vector<8x96xf32>
    %58 = arith.divf %56, %57 : vector<8x96xf32>
    %59 = vector.extract_strided_slice %52 {offsets = [0, 96], sizes = [8, 32], strides = [1, 1]} : vector<8x128xf32> to vector<8x32xf32>
    %60 = math.tanh %59 : vector<8x32xf32>
    %61 = vector.extract_strided_slice %58 {offsets = [0, 0], sizes = [8, 32], strides = [1, 1]} : vector<8x96xf32> to vector<8x32xf32>
    %62 = vector.extract_strided_slice %58 {offsets = [0, 32], sizes = [8, 32], strides = [1, 1]} : vector<8x96xf32> to vector<8x32xf32>
    %63 = vector.extract_strided_slice %58 {offsets = [0, 64], sizes = [8, 32], strides = [1, 1]} : vector<8x96xf32> to vector<8x32xf32>
    %64 = arith.mulf %62, %28 : vector<8x32xf32>
    %65 = arith.mulf %61, %60 : vector<8x32xf32>
    %66 = arith.addf %64, %65 : vector<8x32xf32>
    %67 = math.tanh %66 : vector<8x32xf32>
    %68 = arith.mulf %63, %67 : vector<8x32xf32>
    %69 = tpu.concatenate %68, %49 in 1 : vector<8x32xf32>, vector<8x32xf32> -> vector<8x64xf32>
    %cst_18 = arith.constant dense<0.000000e+00> : vector<8x128xf32>
    %70 = tpu.matmul %69, %7, %cst_18 {dimension_numbers = #tpu.dot_dimension_numbers<[1], [0], [0], [1], [0, 0, 1, 1], [], []>} : vector<8x64xf32>, vector<64x128xf32>, vector<8x128xf32> -> vector<8x128xf32>
    %71 = arith.addf %70, %10 : vector<8x128xf32>
    %72 = vector.extract_strided_slice %71 {offsets = [0, 0], sizes = [8, 96], strides = [1, 1]} : vector<8x128xf32> to vector<8x96xf32>
    %73 = arith.negf %72 : vector<8x96xf32>
    %74 = math.exp %73 : vector<8x96xf32>
    %cst_19 = arith.constant 1.000000e+00 : f32
    %75 = vector.broadcast %cst_19 : f32 to vector<8x96xf32>
    %76 = arith.addf %75, %74 : vector<8x96xf32>
    %77 = arith.divf %75, %76 : vector<8x96xf32>
    %78 = vector.extract_strided_slice %71 {offsets = [0, 96], sizes = [8, 32], strides = [1, 1]} : vector<8x128xf32> to vector<8x32xf32>
    %79 = math.tanh %78 : vector<8x32xf32>
    %80 = vector.extract_strided_slice %77 {offsets = [0, 0], sizes = [8, 32], strides = [1, 1]} : vector<8x96xf32> to vector<8x32xf32>
    %81 = vector.extract_strided_slice %77 {offsets = [0, 32], sizes = [8, 32], strides = [1, 1]} : vector<8x96xf32> to vector<8x32xf32>
    %82 = vector.extract_strided_slice %77 {offsets = [0, 64], sizes = [8, 32], strides = [1, 1]} : vector<8x96xf32> to vector<8x32xf32>
    %83 = arith.mulf %81, %47 : vector<8x32xf32>
    %84 = arith.mulf %80, %79 : vector<8x32xf32>
    %85 = arith.addf %83, %84 : vector<8x32xf32>
    %86 = math.tanh %85 : vector<8x32xf32>
    %87 = arith.mulf %82, %86 : vector<8x32xf32>
    %88 = vector.extract_strided_slice %5 {offsets = [16, 0], sizes = [8, 128], strides = [1, 1]} : vector<64x128xf32> to vector<8x128xf32>
    %cst_20 = arith.constant dense<0.000000e+00> : vector<8x128xf32>
    %89 = tpu.matmul %68, %6, %cst_20 {dimension_numbers = #tpu.dot_dimension_numbers<[1], [0], [0], [1], [0, 0, 1, 1], [], []>} : vector<8x32xf32>, vector<32x128xf32>, vector<8x128xf32> -> vector<8x128xf32>
    %90 = arith.addf %88, %89 : vector<8x128xf32>
    %91 = vector.extract_strided_slice %90 {offsets = [0, 0], sizes = [8, 96], strides = [1, 1]} : vector<8x128xf32> to vector<8x96xf32>
    %92 = arith.negf %91 : vector<8x96xf32>
    %93 = math.exp %92 : vector<8x96xf32>
    %cst_21 = arith.constant 1.000000e+00 : f32
    %94 = vector.broadcast %cst_21 : f32 to vector<8x96xf32>
    %95 = arith.addf %94, %93 : vector<8x96xf32>
    %96 = arith.divf %94, %95 : vector<8x96xf32>
    %97 = vector.extract_strided_slice %90 {offsets = [0, 96], sizes = [8, 32], strides = [1, 1]} : vector<8x128xf32> to vector<8x32xf32>
    %98 = math.tanh %97 : vector<8x32xf32>
    %99 = vector.extract_strided_slice %96 {offsets = [0, 0], sizes = [8, 32], strides = [1, 1]} : vector<8x96xf32> to vector<8x32xf32>
    %100 = vector.extract_strided_slice %96 {offsets = [0, 32], sizes = [8, 32], strides = [1, 1]} : vector<8x96xf32> to vector<8x32xf32>
    %101 = vector.extract_strided_slice %96 {offsets = [0, 64], sizes = [8, 32], strides = [1, 1]} : vector<8x96xf32> to vector<8x32xf32>
    %102 = arith.mulf %100, %66 : vector<8x32xf32>
    %103 = arith.mulf %99, %98 : vector<8x32xf32>
    %104 = arith.addf %102, %103 : vector<8x32xf32>
    %105 = math.tanh %104 : vector<8x32xf32>
    %106 = arith.mulf %101, %105 : vector<8x32xf32>
    %107 = tpu.concatenate %106, %87 in 1 : vector<8x32xf32>, vector<8x32xf32> -> vector<8x64xf32>
    %cst_22 = arith.constant dense<0.000000e+00> : vector<8x128xf32>
    %108 = tpu.matmul %107, %7, %cst_22 {dimension_numbers = #tpu.dot_dimension_numbers<[1], [0], [0], [1], [0, 0, 1, 1], [], []>} : vector<8x64xf32>, vector<64x128xf32>, vector<8x128xf32> -> vector<8x128xf32>
    %109 = arith.addf %108, %10 : vector<8x128xf32>
    %110 = vector.extract_strided_slice %109 {offsets = [0, 0], sizes = [8, 96], strides = [1, 1]} : vector<8x128xf32> to vector<8x96xf32>
    %111 = arith.negf %110 : vector<8x96xf32>
    %112 = math.exp %111 : vector<8x96xf32>
    %cst_23 = arith.constant 1.000000e+00 : f32
    %113 = vector.broadcast %cst_23 : f32 to vector<8x96xf32>
    %114 = arith.addf %113, %112 : vector<8x96xf32>
    %115 = arith.divf %113, %114 : vector<8x96xf32>
    %116 = vector.extract_strided_slice %109 {offsets = [0, 96], sizes = [8, 32], strides = [1, 1]} : vector<8x128xf32> to vector<8x32xf32>
    %117 = math.tanh %116 : vector<8x32xf32>
    %118 = vector.extract_strided_slice %115 {offsets = [0, 0], sizes = [8, 32], strides = [1, 1]} : vector<8x96xf32> to vector<8x32xf32>
    %119 = vector.extract_strided_slice %115 {offsets = [0, 32], sizes = [8, 32], strides = [1, 1]} : vector<8x96xf32> to vector<8x32xf32>
    %120 = vector.extract_strided_slice %115 {offsets = [0, 64], sizes = [8, 32], strides = [1, 1]} : vector<8x96xf32> to vector<8x32xf32>
    %121 = arith.mulf %119, %85 : vector<8x32xf32>
    %122 = arith.mulf %118, %117 : vector<8x32xf32>
    %123 = arith.addf %121, %122 : vector<8x32xf32>
    %124 = math.tanh %123 : vector<8x32xf32>
    %125 = arith.mulf %120, %124 : vector<8x32xf32>
    %126 = vector.extract_strided_slice %5 {offsets = [24, 0], sizes = [8, 128], strides = [1, 1]} : vector<64x128xf32> to vector<8x128xf32>
    %cst_24 = arith.constant dense<0.000000e+00> : vector<8x128xf32>
    %127 = tpu.matmul %106, %6, %cst_24 {dimension_numbers = #tpu.dot_dimension_numbers<[1], [0], [0], [1], [0, 0, 1, 1], [], []>} : vector<8x32xf32>, vector<32x128xf32>, vector<8x128xf32> -> vector<8x128xf32>
    %128 = arith.addf %126, %127 : vector<8x128xf32>
    %129 = vector.extract_strided_slice %128 {offsets = [0, 0], sizes = [8, 96], strides = [1, 1]} : vector<8x128xf32> to vector<8x96xf32>
    %130 = arith.negf %129 : vector<8x96xf32>
    %131 = math.exp %130 : vector<8x96xf32>
    %cst_25 = arith.constant 1.000000e+00 : f32
    %132 = vector.broadcast %cst_25 : f32 to vector<8x96xf32>
    %133 = arith.addf %132, %131 : vector<8x96xf32>
    %134 = arith.divf %132, %133 : vector<8x96xf32>
    %135 = vector.extract_strided_slice %128 {offsets = [0, 96], sizes = [8, 32], strides = [1, 1]} : vector<8x128xf32> to vector<8x32xf32>
    %136 = math.tanh %135 : vector<8x32xf32>
    %137 = vector.extract_strided_slice %134 {offsets = [0, 0], sizes = [8, 32], strides = [1, 1]} : vector<8x96xf32> to vector<8x32xf32>
    %138 = vector.extract_strided_slice %134 {offsets = [0, 32], sizes = [8, 32], strides = [1, 1]} : vector<8x96xf32> to vector<8x32xf32>
    %139 = vector.extract_strided_slice %134 {offsets = [0, 64], sizes = [8, 32], strides = [1, 1]} : vector<8x96xf32> to vector<8x32xf32>
    %140 = arith.mulf %138, %104 : vector<8x32xf32>
    %141 = arith.mulf %137, %136 : vector<8x32xf32>
    %142 = arith.addf %140, %141 : vector<8x32xf32>
    %143 = math.tanh %142 : vector<8x32xf32>
    %144 = arith.mulf %139, %143 : vector<8x32xf32>
    %145 = tpu.concatenate %144, %125 in 1 : vector<8x32xf32>, vector<8x32xf32> -> vector<8x64xf32>
    %cst_26 = arith.constant dense<0.000000e+00> : vector<8x128xf32>
    %146 = tpu.matmul %145, %7, %cst_26 {dimension_numbers = #tpu.dot_dimension_numbers<[1], [0], [0], [1], [0, 0, 1, 1], [], []>} : vector<8x64xf32>, vector<64x128xf32>, vector<8x128xf32> -> vector<8x128xf32>
    %147 = arith.addf %146, %10 : vector<8x128xf32>
    %148 = vector.extract_strided_slice %147 {offsets = [0, 0], sizes = [8, 96], strides = [1, 1]} : vector<8x128xf32> to vector<8x96xf32>
    %149 = arith.negf %148 : vector<8x96xf32>
    %150 = math.exp %149 : vector<8x96xf32>
    %cst_27 = arith.constant 1.000000e+00 : f32
    %151 = vector.broadcast %cst_27 : f32 to vector<8x96xf32>
    %152 = arith.addf %151, %150 : vector<8x96xf32>
    %153 = arith.divf %151, %152 : vector<8x96xf32>
    %154 = vector.extract_strided_slice %147 {offsets = [0, 96], sizes = [8, 32], strides = [1, 1]} : vector<8x128xf32> to vector<8x32xf32>
    %155 = math.tanh %154 : vector<8x32xf32>
    %156 = vector.extract_strided_slice %153 {offsets = [0, 0], sizes = [8, 32], strides = [1, 1]} : vector<8x96xf32> to vector<8x32xf32>
    %157 = vector.extract_strided_slice %153 {offsets = [0, 32], sizes = [8, 32], strides = [1, 1]} : vector<8x96xf32> to vector<8x32xf32>
    %158 = vector.extract_strided_slice %153 {offsets = [0, 64], sizes = [8, 32], strides = [1, 1]} : vector<8x96xf32> to vector<8x32xf32>
    %159 = arith.mulf %157, %123 : vector<8x32xf32>
    %160 = arith.mulf %156, %155 : vector<8x32xf32>
    %161 = arith.addf %159, %160 : vector<8x32xf32>
    %162 = math.tanh %161 : vector<8x32xf32>
    %163 = arith.mulf %158, %162 : vector<8x32xf32>
    %164 = vector.extract_strided_slice %5 {offsets = [32, 0], sizes = [8, 128], strides = [1, 1]} : vector<64x128xf32> to vector<8x128xf32>
    %cst_28 = arith.constant dense<0.000000e+00> : vector<8x128xf32>
    %165 = tpu.matmul %144, %6, %cst_28 {dimension_numbers = #tpu.dot_dimension_numbers<[1], [0], [0], [1], [0, 0, 1, 1], [], []>} : vector<8x32xf32>, vector<32x128xf32>, vector<8x128xf32> -> vector<8x128xf32>
    %166 = arith.addf %164, %165 : vector<8x128xf32>
    %167 = vector.extract_strided_slice %166 {offsets = [0, 0], sizes = [8, 96], strides = [1, 1]} : vector<8x128xf32> to vector<8x96xf32>
    %168 = arith.negf %167 : vector<8x96xf32>
    %169 = math.exp %168 : vector<8x96xf32>
    %cst_29 = arith.constant 1.000000e+00 : f32
    %170 = vector.broadcast %cst_29 : f32 to vector<8x96xf32>
    %171 = arith.addf %170, %169 : vector<8x96xf32>
    %172 = arith.divf %170, %171 : vector<8x96xf32>
    %173 = vector.extract_strided_slice %166 {offsets = [0, 96], sizes = [8, 32], strides = [1, 1]} : vector<8x128xf32> to vector<8x32xf32>
    %174 = math.tanh %173 : vector<8x32xf32>
    %175 = vector.extract_strided_slice %172 {offsets = [0, 0], sizes = [8, 32], strides = [1, 1]} : vector<8x96xf32> to vector<8x32xf32>
    %176 = vector.extract_strided_slice %172 {offsets = [0, 32], sizes = [8, 32], strides = [1, 1]} : vector<8x96xf32> to vector<8x32xf32>
    %177 = vector.extract_strided_slice %172 {offsets = [0, 64], sizes = [8, 32], strides = [1, 1]} : vector<8x96xf32> to vector<8x32xf32>
    %178 = arith.mulf %176, %142 : vector<8x32xf32>
    %179 = arith.mulf %175, %174 : vector<8x32xf32>
    %180 = arith.addf %178, %179 : vector<8x32xf32>
    %181 = math.tanh %180 : vector<8x32xf32>
    %182 = arith.mulf %177, %181 : vector<8x32xf32>
    %183 = tpu.concatenate %182, %163 in 1 : vector<8x32xf32>, vector<8x32xf32> -> vector<8x64xf32>
    %cst_30 = arith.constant dense<0.000000e+00> : vector<8x128xf32>
    %184 = tpu.matmul %183, %7, %cst_30 {dimension_numbers = #tpu.dot_dimension_numbers<[1], [0], [0], [1], [0, 0, 1, 1], [], []>} : vector<8x64xf32>, vector<64x128xf32>, vector<8x128xf32> -> vector<8x128xf32>
    %185 = arith.addf %184, %10 : vector<8x128xf32>
    %186 = vector.extract_strided_slice %185 {offsets = [0, 0], sizes = [8, 96], strides = [1, 1]} : vector<8x128xf32> to vector<8x96xf32>
    %187 = arith.negf %186 : vector<8x96xf32>
    %188 = math.exp %187 : vector<8x96xf32>
    %cst_31 = arith.constant 1.000000e+00 : f32
    %189 = vector.broadcast %cst_31 : f32 to vector<8x96xf32>
    %190 = arith.addf %189, %188 : vector<8x96xf32>
    %191 = arith.divf %189, %190 : vector<8x96xf32>
    %192 = vector.extract_strided_slice %185 {offsets = [0, 96], sizes = [8, 32], strides = [1, 1]} : vector<8x128xf32> to vector<8x32xf32>
    %193 = math.tanh %192 : vector<8x32xf32>
    %194 = vector.extract_strided_slice %191 {offsets = [0, 0], sizes = [8, 32], strides = [1, 1]} : vector<8x96xf32> to vector<8x32xf32>
    %195 = vector.extract_strided_slice %191 {offsets = [0, 32], sizes = [8, 32], strides = [1, 1]} : vector<8x96xf32> to vector<8x32xf32>
    %196 = vector.extract_strided_slice %191 {offsets = [0, 64], sizes = [8, 32], strides = [1, 1]} : vector<8x96xf32> to vector<8x32xf32>
    %197 = arith.mulf %195, %161 : vector<8x32xf32>
    %198 = arith.mulf %194, %193 : vector<8x32xf32>
    %199 = arith.addf %197, %198 : vector<8x32xf32>
    %200 = math.tanh %199 : vector<8x32xf32>
    %201 = arith.mulf %196, %200 : vector<8x32xf32>
    %202 = vector.extract_strided_slice %5 {offsets = [40, 0], sizes = [8, 128], strides = [1, 1]} : vector<64x128xf32> to vector<8x128xf32>
    %cst_32 = arith.constant dense<0.000000e+00> : vector<8x128xf32>
    %203 = tpu.matmul %182, %6, %cst_32 {dimension_numbers = #tpu.dot_dimension_numbers<[1], [0], [0], [1], [0, 0, 1, 1], [], []>} : vector<8x32xf32>, vector<32x128xf32>, vector<8x128xf32> -> vector<8x128xf32>
    %204 = arith.addf %202, %203 : vector<8x128xf32>
    %205 = vector.extract_strided_slice %204 {offsets = [0, 0], sizes = [8, 96], strides = [1, 1]} : vector<8x128xf32> to vector<8x96xf32>
    %206 = arith.negf %205 : vector<8x96xf32>
    %207 = math.exp %206 : vector<8x96xf32>
    %cst_33 = arith.constant 1.000000e+00 : f32
    %208 = vector.broadcast %cst_33 : f32 to vector<8x96xf32>
    %209 = arith.addf %208, %207 : vector<8x96xf32>
    %210 = arith.divf %208, %209 : vector<8x96xf32>
    %211 = vector.extract_strided_slice %204 {offsets = [0, 96], sizes = [8, 32], strides = [1, 1]} : vector<8x128xf32> to vector<8x32xf32>
    %212 = math.tanh %211 : vector<8x32xf32>
    %213 = vector.extract_strided_slice %210 {offsets = [0, 0], sizes = [8, 32], strides = [1, 1]} : vector<8x96xf32> to vector<8x32xf32>
    %214 = vector.extract_strided_slice %210 {offsets = [0, 32], sizes = [8, 32], strides = [1, 1]} : vector<8x96xf32> to vector<8x32xf32>
    %215 = vector.extract_strided_slice %210 {offsets = [0, 64], sizes = [8, 32], strides = [1, 1]} : vector<8x96xf32> to vector<8x32xf32>
    %216 = arith.mulf %214, %180 : vector<8x32xf32>
    %217 = arith.mulf %213, %212 : vector<8x32xf32>
    %218 = arith.addf %216, %217 : vector<8x32xf32>
    %219 = math.tanh %218 : vector<8x32xf32>
    %220 = arith.mulf %215, %219 : vector<8x32xf32>
    %221 = tpu.concatenate %220, %201 in 1 : vector<8x32xf32>, vector<8x32xf32> -> vector<8x64xf32>
    %cst_34 = arith.constant dense<0.000000e+00> : vector<8x128xf32>
    %222 = tpu.matmul %221, %7, %cst_34 {dimension_numbers = #tpu.dot_dimension_numbers<[1], [0], [0], [1], [0, 0, 1, 1], [], []>} : vector<8x64xf32>, vector<64x128xf32>, vector<8x128xf32> -> vector<8x128xf32>
    %223 = arith.addf %222, %10 : vector<8x128xf32>
    %224 = vector.extract_strided_slice %223 {offsets = [0, 0], sizes = [8, 96], strides = [1, 1]} : vector<8x128xf32> to vector<8x96xf32>
    %225 = arith.negf %224 : vector<8x96xf32>
    %226 = math.exp %225 : vector<8x96xf32>
    %cst_35 = arith.constant 1.000000e+00 : f32
    %227 = vector.broadcast %cst_35 : f32 to vector<8x96xf32>
    %228 = arith.addf %227, %226 : vector<8x96xf32>
    %229 = arith.divf %227, %228 : vector<8x96xf32>
    %230 = vector.extract_strided_slice %223 {offsets = [0, 96], sizes = [8, 32], strides = [1, 1]} : vector<8x128xf32> to vector<8x32xf32>
    %231 = math.tanh %230 : vector<8x32xf32>
    %232 = vector.extract_strided_slice %229 {offsets = [0, 0], sizes = [8, 32], strides = [1, 1]} : vector<8x96xf32> to vector<8x32xf32>
    %233 = vector.extract_strided_slice %229 {offsets = [0, 32], sizes = [8, 32], strides = [1, 1]} : vector<8x96xf32> to vector<8x32xf32>
    %234 = vector.extract_strided_slice %229 {offsets = [0, 64], sizes = [8, 32], strides = [1, 1]} : vector<8x96xf32> to vector<8x32xf32>
    %235 = arith.mulf %233, %199 : vector<8x32xf32>
    %236 = arith.mulf %232, %231 : vector<8x32xf32>
    %237 = arith.addf %235, %236 : vector<8x32xf32>
    %238 = math.tanh %237 : vector<8x32xf32>
    %239 = arith.mulf %234, %238 : vector<8x32xf32>
    %240 = vector.extract_strided_slice %5 {offsets = [48, 0], sizes = [8, 128], strides = [1, 1]} : vector<64x128xf32> to vector<8x128xf32>
    %cst_36 = arith.constant dense<0.000000e+00> : vector<8x128xf32>
    %241 = tpu.matmul %220, %6, %cst_36 {dimension_numbers = #tpu.dot_dimension_numbers<[1], [0], [0], [1], [0, 0, 1, 1], [], []>} : vector<8x32xf32>, vector<32x128xf32>, vector<8x128xf32> -> vector<8x128xf32>
    %242 = arith.addf %240, %241 : vector<8x128xf32>
    %243 = vector.extract_strided_slice %242 {offsets = [0, 0], sizes = [8, 96], strides = [1, 1]} : vector<8x128xf32> to vector<8x96xf32>
    %244 = arith.negf %243 : vector<8x96xf32>
    %245 = math.exp %244 : vector<8x96xf32>
    %cst_37 = arith.constant 1.000000e+00 : f32
    %246 = vector.broadcast %cst_37 : f32 to vector<8x96xf32>
    %247 = arith.addf %246, %245 : vector<8x96xf32>
    %248 = arith.divf %246, %247 : vector<8x96xf32>
    %249 = vector.extract_strided_slice %242 {offsets = [0, 96], sizes = [8, 32], strides = [1, 1]} : vector<8x128xf32> to vector<8x32xf32>
    %250 = math.tanh %249 : vector<8x32xf32>
    %251 = vector.extract_strided_slice %248 {offsets = [0, 0], sizes = [8, 32], strides = [1, 1]} : vector<8x96xf32> to vector<8x32xf32>
    %252 = vector.extract_strided_slice %248 {offsets = [0, 32], sizes = [8, 32], strides = [1, 1]} : vector<8x96xf32> to vector<8x32xf32>
    %253 = vector.extract_strided_slice %248 {offsets = [0, 64], sizes = [8, 32], strides = [1, 1]} : vector<8x96xf32> to vector<8x32xf32>
    %254 = arith.mulf %252, %218 : vector<8x32xf32>
    %255 = arith.mulf %251, %250 : vector<8x32xf32>
    %256 = arith.addf %254, %255 : vector<8x32xf32>
    %257 = math.tanh %256 : vector<8x32xf32>
    %258 = arith.mulf %253, %257 : vector<8x32xf32>
    %259 = tpu.concatenate %258, %239 in 1 : vector<8x32xf32>, vector<8x32xf32> -> vector<8x64xf32>
    %cst_38 = arith.constant dense<0.000000e+00> : vector<8x128xf32>
    %260 = tpu.matmul %259, %7, %cst_38 {dimension_numbers = #tpu.dot_dimension_numbers<[1], [0], [0], [1], [0, 0, 1, 1], [], []>} : vector<8x64xf32>, vector<64x128xf32>, vector<8x128xf32> -> vector<8x128xf32>
    %261 = arith.addf %260, %10 : vector<8x128xf32>
    %262 = vector.extract_strided_slice %261 {offsets = [0, 0], sizes = [8, 96], strides = [1, 1]} : vector<8x128xf32> to vector<8x96xf32>
    %263 = arith.negf %262 : vector<8x96xf32>
    %264 = math.exp %263 : vector<8x96xf32>
    %cst_39 = arith.constant 1.000000e+00 : f32
    %265 = vector.broadcast %cst_39 : f32 to vector<8x96xf32>
    %266 = arith.addf %265, %264 : vector<8x96xf32>
    %267 = arith.divf %265, %266 : vector<8x96xf32>
    %268 = vector.extract_strided_slice %261 {offsets = [0, 96], sizes = [8, 32], strides = [1, 1]} : vector<8x128xf32> to vector<8x32xf32>
    %269 = math.tanh %268 : vector<8x32xf32>
    %270 = vector.extract_strided_slice %267 {offsets = [0, 0], sizes = [8, 32], strides = [1, 1]} : vector<8x96xf32> to vector<8x32xf32>
    %271 = vector.extract_strided_slice %267 {offsets = [0, 32], sizes = [8, 32], strides = [1, 1]} : vector<8x96xf32> to vector<8x32xf32>
    %272 = vector.extract_strided_slice %267 {offsets = [0, 64], sizes = [8, 32], strides = [1, 1]} : vector<8x96xf32> to vector<8x32xf32>
    %273 = arith.mulf %271, %237 : vector<8x32xf32>
    %274 = arith.mulf %270, %269 : vector<8x32xf32>
    %275 = arith.addf %273, %274 : vector<8x32xf32>
    %276 = math.tanh %275 : vector<8x32xf32>
    %277 = arith.mulf %272, %276 : vector<8x32xf32>
    %278 = vector.extract_strided_slice %5 {offsets = [56, 0], sizes = [8, 128], strides = [1, 1]} : vector<64x128xf32> to vector<8x128xf32>
    %cst_40 = arith.constant dense<0.000000e+00> : vector<8x128xf32>
    %279 = tpu.matmul %258, %6, %cst_40 {dimension_numbers = #tpu.dot_dimension_numbers<[1], [0], [0], [1], [0, 0, 1, 1], [], []>} : vector<8x32xf32>, vector<32x128xf32>, vector<8x128xf32> -> vector<8x128xf32>
    %280 = arith.addf %278, %279 : vector<8x128xf32>
    %281 = vector.extract_strided_slice %280 {offsets = [0, 0], sizes = [8, 96], strides = [1, 1]} : vector<8x128xf32> to vector<8x96xf32>
    %282 = arith.negf %281 : vector<8x96xf32>
    %283 = math.exp %282 : vector<8x96xf32>
    %cst_41 = arith.constant 1.000000e+00 : f32
    %284 = vector.broadcast %cst_41 : f32 to vector<8x96xf32>
    %285 = arith.addf %284, %283 : vector<8x96xf32>
    %286 = arith.divf %284, %285 : vector<8x96xf32>
    %287 = vector.extract_strided_slice %280 {offsets = [0, 96], sizes = [8, 32], strides = [1, 1]} : vector<8x128xf32> to vector<8x32xf32>
    %288 = math.tanh %287 : vector<8x32xf32>
    %289 = vector.extract_strided_slice %286 {offsets = [0, 0], sizes = [8, 32], strides = [1, 1]} : vector<8x96xf32> to vector<8x32xf32>
    %290 = vector.extract_strided_slice %286 {offsets = [0, 32], sizes = [8, 32], strides = [1, 1]} : vector<8x96xf32> to vector<8x32xf32>
    %291 = vector.extract_strided_slice %286 {offsets = [0, 64], sizes = [8, 32], strides = [1, 1]} : vector<8x96xf32> to vector<8x32xf32>
    %292 = arith.mulf %290, %256 : vector<8x32xf32>
    %293 = arith.mulf %289, %288 : vector<8x32xf32>
    %294 = arith.addf %292, %293 : vector<8x32xf32>
    %295 = math.tanh %294 : vector<8x32xf32>
    %296 = arith.mulf %291, %295 : vector<8x32xf32>
    %297 = tpu.concatenate %296, %277 in 1 : vector<8x32xf32>, vector<8x32xf32> -> vector<8x64xf32>
    %cst_42 = arith.constant dense<0.000000e+00> : vector<8x128xf32>
    %298 = tpu.matmul %297, %7, %cst_42 {dimension_numbers = #tpu.dot_dimension_numbers<[1], [0], [0], [1], [0, 0, 1, 1], [], []>} : vector<8x64xf32>, vector<64x128xf32>, vector<8x128xf32> -> vector<8x128xf32>
    %299 = arith.addf %298, %10 : vector<8x128xf32>
    %300 = vector.extract_strided_slice %299 {offsets = [0, 0], sizes = [8, 96], strides = [1, 1]} : vector<8x128xf32> to vector<8x96xf32>
    %301 = arith.negf %300 : vector<8x96xf32>
    %302 = math.exp %301 : vector<8x96xf32>
    %cst_43 = arith.constant 1.000000e+00 : f32
    %303 = vector.broadcast %cst_43 : f32 to vector<8x96xf32>
    %304 = arith.addf %303, %302 : vector<8x96xf32>
    %305 = arith.divf %303, %304 : vector<8x96xf32>
    %306 = vector.extract_strided_slice %299 {offsets = [0, 96], sizes = [8, 32], strides = [1, 1]} : vector<8x128xf32> to vector<8x32xf32>
    %307 = math.tanh %306 : vector<8x32xf32>
    %308 = vector.extract_strided_slice %305 {offsets = [0, 0], sizes = [8, 32], strides = [1, 1]} : vector<8x96xf32> to vector<8x32xf32>
    %309 = vector.extract_strided_slice %305 {offsets = [0, 32], sizes = [8, 32], strides = [1, 1]} : vector<8x96xf32> to vector<8x32xf32>
    %310 = vector.extract_strided_slice %305 {offsets = [0, 64], sizes = [8, 32], strides = [1, 1]} : vector<8x96xf32> to vector<8x32xf32>
    %311 = arith.mulf %309, %275 : vector<8x32xf32>
    %312 = arith.mulf %308, %307 : vector<8x32xf32>
    %313 = arith.addf %311, %312 : vector<8x32xf32>
    %314 = math.tanh %313 : vector<8x32xf32>
    %315 = arith.mulf %310, %314 : vector<8x32xf32>
    %c0_44 = arith.constant 0 : index
    %c0_45 = arith.constant 0 : index
    %316 = vector.load %arg8[%c0_44, %c0_45] : memref<64x128xf32, #tpu.memory_space<vmem>>, vector<64x128xf32>
    %317 = vector.extract_strided_slice %316 {offsets = [32, 0], sizes = [32, 128], strides = [1, 1]} : vector<64x128xf32> to vector<32x128xf32>
    %c0_46 = arith.constant 0 : index
    %c0_47 = arith.constant 0 : index
    %318 = vector.load %arg9[%c0_46, %c0_47] : memref<1x128xf32, #tpu.memory_space<vmem>>, vector<1x128xf32>
    %319 = vector.shape_cast %318 : vector<1x128xf32> to vector<1x128xf32>
    %320 = vector.broadcast %319 : vector<1x128xf32> to vector<8x128xf32>
    %c0_48 = arith.constant 0 : index
    %c0_49 = arith.constant 0 : index
    %321 = vector.load %arg10[%c0_48, %c0_49] : memref<64x128xf32, #tpu.memory_space<vmem>>, vector<64x128xf32>
    %c0_50 = arith.constant 0 : index
    %c0_51 = arith.constant 0 : index
    %322 = vector.load %arg11[%c0_50, %c0_51] : memref<1x128xf32, #tpu.memory_space<vmem>>, vector<1x128xf32>
    %323 = vector.shape_cast %322 : vector<1x128xf32> to vector<1x128xf32>
    %324 = vector.broadcast %323 : vector<1x128xf32> to vector<8x128xf32>
    %325 = vector.extract_strided_slice %0 {offsets = [56, 0], sizes = [8, 6], strides = [1, 1]} : vector<64x6xf32> to vector<8x6xf32>
    %c0_52 = arith.constant 0 : index
    %c0_53 = arith.constant 0 : index
    %326 = vector.load %arg6[%c0_52, %c0_53] : memref<6x128xf32, #tpu.memory_space<vmem>>, vector<6x128xf32>
    %cst_54 = arith.constant dense<0.000000e+00> : vector<8x128xf32>
    %327 = tpu.matmul %325, %326, %cst_54 {dimension_numbers = #tpu.dot_dimension_numbers<[1], [0], [0], [1], [0, 0, 1, 1], [], []>} : vector<8x6xf32>, vector<6x128xf32>, vector<8x128xf32> -> vector<8x128xf32>
    %c0_55 = arith.constant 0 : index
    %c0_56 = arith.constant 0 : index
    %328 = vector.load %arg7[%c0_55, %c0_56] : memref<1x128xf32, #tpu.memory_space<vmem>>, vector<1x128xf32>
    %329 = vector.broadcast %328 : vector<1x128xf32> to vector<8x128xf32>
    %330 = arith.addf %327, %329 : vector<8x128xf32>
    %cst_57 = arith.constant dense<0.000000e+00> : vector<8x128xf32>
    %331 = tpu.matmul %296, %317, %cst_57 {dimension_numbers = #tpu.dot_dimension_numbers<[1], [0], [0], [1], [0, 0, 1, 1], [], []>} : vector<8x32xf32>, vector<32x128xf32>, vector<8x128xf32> -> vector<8x128xf32>
    %332 = arith.addf %330, %331 : vector<8x128xf32>
    %333 = vector.extract_strided_slice %332 {offsets = [0, 0], sizes = [8, 96], strides = [1, 1]} : vector<8x128xf32> to vector<8x96xf32>
    %334 = arith.negf %333 : vector<8x96xf32>
    %335 = math.exp %334 : vector<8x96xf32>
    %cst_58 = arith.constant 1.000000e+00 : f32
    %336 = vector.broadcast %cst_58 : f32 to vector<8x96xf32>
    %337 = arith.addf %336, %335 : vector<8x96xf32>
    %338 = arith.divf %336, %337 : vector<8x96xf32>
    %339 = vector.extract_strided_slice %332 {offsets = [0, 96], sizes = [8, 32], strides = [1, 1]} : vector<8x128xf32> to vector<8x32xf32>
    %340 = math.tanh %339 : vector<8x32xf32>
    %341 = vector.extract_strided_slice %338 {offsets = [0, 0], sizes = [8, 32], strides = [1, 1]} : vector<8x96xf32> to vector<8x32xf32>
    %342 = vector.extract_strided_slice %338 {offsets = [0, 32], sizes = [8, 32], strides = [1, 1]} : vector<8x96xf32> to vector<8x32xf32>
    %343 = vector.extract_strided_slice %338 {offsets = [0, 64], sizes = [8, 32], strides = [1, 1]} : vector<8x96xf32> to vector<8x32xf32>
    %344 = arith.mulf %342, %294 : vector<8x32xf32>
    %345 = arith.mulf %341, %340 : vector<8x32xf32>
    %346 = arith.addf %344, %345 : vector<8x32xf32>
    %347 = math.tanh %346 : vector<8x32xf32>
    %348 = arith.mulf %343, %347 : vector<8x32xf32>
    %349 = tpu.concatenate %348, %315 in 1 : vector<8x32xf32>, vector<8x32xf32> -> vector<8x64xf32>
    %cst_59 = arith.constant dense<0.000000e+00> : vector<8x128xf32>
    %350 = tpu.matmul %349, %321, %cst_59 {dimension_numbers = #tpu.dot_dimension_numbers<[1], [0], [0], [1], [0, 0, 1, 1], [], []>} : vector<8x64xf32>, vector<64x128xf32>, vector<8x128xf32> -> vector<8x128xf32>
    %351 = arith.addf %350, %324 : vector<8x128xf32>
    %352 = vector.extract_strided_slice %351 {offsets = [0, 0], sizes = [8, 96], strides = [1, 1]} : vector<8x128xf32> to vector<8x96xf32>
    %353 = arith.negf %352 : vector<8x96xf32>
    %354 = math.exp %353 : vector<8x96xf32>
    %cst_60 = arith.constant 1.000000e+00 : f32
    %355 = vector.broadcast %cst_60 : f32 to vector<8x96xf32>
    %356 = arith.addf %355, %354 : vector<8x96xf32>
    %357 = arith.divf %355, %356 : vector<8x96xf32>
    %358 = vector.extract_strided_slice %351 {offsets = [0, 96], sizes = [8, 32], strides = [1, 1]} : vector<8x128xf32> to vector<8x32xf32>
    %359 = math.tanh %358 : vector<8x32xf32>
    %360 = vector.extract_strided_slice %357 {offsets = [0, 0], sizes = [8, 32], strides = [1, 1]} : vector<8x96xf32> to vector<8x32xf32>
    %361 = vector.extract_strided_slice %357 {offsets = [0, 32], sizes = [8, 32], strides = [1, 1]} : vector<8x96xf32> to vector<8x32xf32>
    %362 = vector.extract_strided_slice %357 {offsets = [0, 64], sizes = [8, 32], strides = [1, 1]} : vector<8x96xf32> to vector<8x32xf32>
    %363 = arith.mulf %361, %313 : vector<8x32xf32>
    %364 = arith.mulf %360, %359 : vector<8x32xf32>
    %365 = arith.addf %363, %364 : vector<8x32xf32>
    %366 = math.tanh %365 : vector<8x32xf32>
    %367 = arith.mulf %362, %366 : vector<8x32xf32>
    %368 = tpu.concatenate %367, %348 in 1 : vector<8x32xf32>, vector<8x32xf32> -> vector<8x64xf32>
    %cst_61 = arith.constant dense<0.000000e+00> : vector<8x128xf32>
    %369 = tpu.matmul %368, %316, %cst_61 {dimension_numbers = #tpu.dot_dimension_numbers<[1], [0], [0], [1], [0, 0, 1, 1], [], []>} : vector<8x64xf32>, vector<64x128xf32>, vector<8x128xf32> -> vector<8x128xf32>
    %370 = arith.addf %369, %320 : vector<8x128xf32>
    %371 = vector.extract_strided_slice %370 {offsets = [0, 0], sizes = [8, 96], strides = [1, 1]} : vector<8x128xf32> to vector<8x96xf32>
    %372 = arith.negf %371 : vector<8x96xf32>
    %373 = math.exp %372 : vector<8x96xf32>
    %cst_62 = arith.constant 1.000000e+00 : f32
    %374 = vector.broadcast %cst_62 : f32 to vector<8x96xf32>
    %375 = arith.addf %374, %373 : vector<8x96xf32>
    %376 = arith.divf %374, %375 : vector<8x96xf32>
    %377 = vector.extract_strided_slice %370 {offsets = [0, 96], sizes = [8, 32], strides = [1, 1]} : vector<8x128xf32> to vector<8x32xf32>
    %378 = math.tanh %377 : vector<8x32xf32>
    %379 = vector.extract_strided_slice %376 {offsets = [0, 0], sizes = [8, 32], strides = [1, 1]} : vector<8x96xf32> to vector<8x32xf32>
    %380 = vector.extract_strided_slice %376 {offsets = [0, 32], sizes = [8, 32], strides = [1, 1]} : vector<8x96xf32> to vector<8x32xf32>
    %381 = vector.extract_strided_slice %376 {offsets = [0, 64], sizes = [8, 32], strides = [1, 1]} : vector<8x96xf32> to vector<8x32xf32>
    %382 = arith.mulf %380, %346 : vector<8x32xf32>
    %383 = arith.mulf %379, %378 : vector<8x32xf32>
    %384 = arith.addf %382, %383 : vector<8x32xf32>
    %385 = math.tanh %384 : vector<8x32xf32>
    %386 = arith.mulf %381, %385 : vector<8x32xf32>
    %387 = tpu.concatenate %386, %367 in 1 : vector<8x32xf32>, vector<8x32xf32> -> vector<8x64xf32>
    %cst_63 = arith.constant dense<0.000000e+00> : vector<8x128xf32>
    %388 = tpu.matmul %387, %321, %cst_63 {dimension_numbers = #tpu.dot_dimension_numbers<[1], [0], [0], [1], [0, 0, 1, 1], [], []>} : vector<8x64xf32>, vector<64x128xf32>, vector<8x128xf32> -> vector<8x128xf32>
    %389 = arith.addf %388, %324 : vector<8x128xf32>
    %390 = vector.extract_strided_slice %389 {offsets = [0, 0], sizes = [8, 96], strides = [1, 1]} : vector<8x128xf32> to vector<8x96xf32>
    %391 = arith.negf %390 : vector<8x96xf32>
    %392 = math.exp %391 : vector<8x96xf32>
    %cst_64 = arith.constant 1.000000e+00 : f32
    %393 = vector.broadcast %cst_64 : f32 to vector<8x96xf32>
    %394 = arith.addf %393, %392 : vector<8x96xf32>
    %395 = arith.divf %393, %394 : vector<8x96xf32>
    %396 = vector.extract_strided_slice %389 {offsets = [0, 96], sizes = [8, 32], strides = [1, 1]} : vector<8x128xf32> to vector<8x32xf32>
    %397 = math.tanh %396 : vector<8x32xf32>
    %398 = vector.extract_strided_slice %395 {offsets = [0, 0], sizes = [8, 32], strides = [1, 1]} : vector<8x96xf32> to vector<8x32xf32>
    %399 = vector.extract_strided_slice %395 {offsets = [0, 32], sizes = [8, 32], strides = [1, 1]} : vector<8x96xf32> to vector<8x32xf32>
    %400 = vector.extract_strided_slice %395 {offsets = [0, 64], sizes = [8, 32], strides = [1, 1]} : vector<8x96xf32> to vector<8x32xf32>
    %401 = arith.mulf %399, %365 : vector<8x32xf32>
    %402 = arith.mulf %398, %397 : vector<8x32xf32>
    %403 = arith.addf %401, %402 : vector<8x32xf32>
    %404 = math.tanh %403 : vector<8x32xf32>
    %405 = arith.mulf %400, %404 : vector<8x32xf32>
    %406 = tpu.concatenate %405, %386 in 1 : vector<8x32xf32>, vector<8x32xf32> -> vector<8x64xf32>
    %cst_65 = arith.constant dense<0.000000e+00> : vector<8x128xf32>
    %407 = tpu.matmul %406, %316, %cst_65 {dimension_numbers = #tpu.dot_dimension_numbers<[1], [0], [0], [1], [0, 0, 1, 1], [], []>} : vector<8x64xf32>, vector<64x128xf32>, vector<8x128xf32> -> vector<8x128xf32>
    %408 = arith.addf %407, %320 : vector<8x128xf32>
    %409 = vector.extract_strided_slice %408 {offsets = [0, 0], sizes = [8, 96], strides = [1, 1]} : vector<8x128xf32> to vector<8x96xf32>
    %410 = arith.negf %409 : vector<8x96xf32>
    %411 = math.exp %410 : vector<8x96xf32>
    %cst_66 = arith.constant 1.000000e+00 : f32
    %412 = vector.broadcast %cst_66 : f32 to vector<8x96xf32>
    %413 = arith.addf %412, %411 : vector<8x96xf32>
    %414 = arith.divf %412, %413 : vector<8x96xf32>
    %415 = vector.extract_strided_slice %408 {offsets = [0, 96], sizes = [8, 32], strides = [1, 1]} : vector<8x128xf32> to vector<8x32xf32>
    %416 = math.tanh %415 : vector<8x32xf32>
    %417 = vector.extract_strided_slice %414 {offsets = [0, 0], sizes = [8, 32], strides = [1, 1]} : vector<8x96xf32> to vector<8x32xf32>
    %418 = vector.extract_strided_slice %414 {offsets = [0, 32], sizes = [8, 32], strides = [1, 1]} : vector<8x96xf32> to vector<8x32xf32>
    %419 = vector.extract_strided_slice %414 {offsets = [0, 64], sizes = [8, 32], strides = [1, 1]} : vector<8x96xf32> to vector<8x32xf32>
    %420 = arith.mulf %418, %384 : vector<8x32xf32>
    %421 = arith.mulf %417, %416 : vector<8x32xf32>
    %422 = arith.addf %420, %421 : vector<8x32xf32>
    %423 = math.tanh %422 : vector<8x32xf32>
    %424 = arith.mulf %419, %423 : vector<8x32xf32>
    %425 = tpu.concatenate %424, %405 in 1 : vector<8x32xf32>, vector<8x32xf32> -> vector<8x64xf32>
    %cst_67 = arith.constant dense<0.000000e+00> : vector<8x128xf32>
    %426 = tpu.matmul %425, %321, %cst_67 {dimension_numbers = #tpu.dot_dimension_numbers<[1], [0], [0], [1], [0, 0, 1, 1], [], []>} : vector<8x64xf32>, vector<64x128xf32>, vector<8x128xf32> -> vector<8x128xf32>
    %427 = arith.addf %426, %324 : vector<8x128xf32>
    %428 = vector.extract_strided_slice %427 {offsets = [0, 0], sizes = [8, 96], strides = [1, 1]} : vector<8x128xf32> to vector<8x96xf32>
    %429 = arith.negf %428 : vector<8x96xf32>
    %430 = math.exp %429 : vector<8x96xf32>
    %cst_68 = arith.constant 1.000000e+00 : f32
    %431 = vector.broadcast %cst_68 : f32 to vector<8x96xf32>
    %432 = arith.addf %431, %430 : vector<8x96xf32>
    %433 = arith.divf %431, %432 : vector<8x96xf32>
    %434 = vector.extract_strided_slice %427 {offsets = [0, 96], sizes = [8, 32], strides = [1, 1]} : vector<8x128xf32> to vector<8x32xf32>
    %435 = math.tanh %434 : vector<8x32xf32>
    %436 = vector.extract_strided_slice %433 {offsets = [0, 0], sizes = [8, 32], strides = [1, 1]} : vector<8x96xf32> to vector<8x32xf32>
    %437 = vector.extract_strided_slice %433 {offsets = [0, 32], sizes = [8, 32], strides = [1, 1]} : vector<8x96xf32> to vector<8x32xf32>
    %438 = vector.extract_strided_slice %433 {offsets = [0, 64], sizes = [8, 32], strides = [1, 1]} : vector<8x96xf32> to vector<8x32xf32>
    %439 = arith.mulf %437, %403 : vector<8x32xf32>
    %440 = arith.mulf %436, %435 : vector<8x32xf32>
    %441 = arith.addf %439, %440 : vector<8x32xf32>
    %442 = math.tanh %441 : vector<8x32xf32>
    %443 = arith.mulf %438, %442 : vector<8x32xf32>
    %444 = tpu.concatenate %443, %424 in 1 : vector<8x32xf32>, vector<8x32xf32> -> vector<8x64xf32>
    %cst_69 = arith.constant dense<0.000000e+00> : vector<8x128xf32>
    %445 = tpu.matmul %444, %316, %cst_69 {dimension_numbers = #tpu.dot_dimension_numbers<[1], [0], [0], [1], [0, 0, 1, 1], [], []>} : vector<8x64xf32>, vector<64x128xf32>, vector<8x128xf32> -> vector<8x128xf32>
    %446 = arith.addf %445, %320 : vector<8x128xf32>
    %447 = vector.extract_strided_slice %446 {offsets = [0, 0], sizes = [8, 96], strides = [1, 1]} : vector<8x128xf32> to vector<8x96xf32>
    %448 = arith.negf %447 : vector<8x96xf32>
    %449 = math.exp %448 : vector<8x96xf32>
    %cst_70 = arith.constant 1.000000e+00 : f32
    %450 = vector.broadcast %cst_70 : f32 to vector<8x96xf32>
    %451 = arith.addf %450, %449 : vector<8x96xf32>
    %452 = arith.divf %450, %451 : vector<8x96xf32>
    %453 = vector.extract_strided_slice %446 {offsets = [0, 96], sizes = [8, 32], strides = [1, 1]} : vector<8x128xf32> to vector<8x32xf32>
    %454 = math.tanh %453 : vector<8x32xf32>
    %455 = vector.extract_strided_slice %452 {offsets = [0, 0], sizes = [8, 32], strides = [1, 1]} : vector<8x96xf32> to vector<8x32xf32>
    %456 = vector.extract_strided_slice %452 {offsets = [0, 32], sizes = [8, 32], strides = [1, 1]} : vector<8x96xf32> to vector<8x32xf32>
    %457 = vector.extract_strided_slice %452 {offsets = [0, 64], sizes = [8, 32], strides = [1, 1]} : vector<8x96xf32> to vector<8x32xf32>
    %458 = arith.mulf %456, %422 : vector<8x32xf32>
    %459 = arith.mulf %455, %454 : vector<8x32xf32>
    %460 = arith.addf %458, %459 : vector<8x32xf32>
    %461 = math.tanh %460 : vector<8x32xf32>
    %462 = arith.mulf %457, %461 : vector<8x32xf32>
    %463 = tpu.concatenate %462, %443 in 1 : vector<8x32xf32>, vector<8x32xf32> -> vector<8x64xf32>
    %cst_71 = arith.constant dense<0.000000e+00> : vector<8x128xf32>
    %464 = tpu.matmul %463, %321, %cst_71 {dimension_numbers = #tpu.dot_dimension_numbers<[1], [0], [0], [1], [0, 0, 1, 1], [], []>} : vector<8x64xf32>, vector<64x128xf32>, vector<8x128xf32> -> vector<8x128xf32>
    %465 = arith.addf %464, %324 : vector<8x128xf32>
    %466 = vector.extract_strided_slice %465 {offsets = [0, 0], sizes = [8, 96], strides = [1, 1]} : vector<8x128xf32> to vector<8x96xf32>
    %467 = arith.negf %466 : vector<8x96xf32>
    %468 = math.exp %467 : vector<8x96xf32>
    %cst_72 = arith.constant 1.000000e+00 : f32
    %469 = vector.broadcast %cst_72 : f32 to vector<8x96xf32>
    %470 = arith.addf %469, %468 : vector<8x96xf32>
    %471 = arith.divf %469, %470 : vector<8x96xf32>
    %472 = vector.extract_strided_slice %465 {offsets = [0, 96], sizes = [8, 32], strides = [1, 1]} : vector<8x128xf32> to vector<8x32xf32>
    %473 = math.tanh %472 : vector<8x32xf32>
    %474 = vector.extract_strided_slice %471 {offsets = [0, 0], sizes = [8, 32], strides = [1, 1]} : vector<8x96xf32> to vector<8x32xf32>
    %475 = vector.extract_strided_slice %471 {offsets = [0, 32], sizes = [8, 32], strides = [1, 1]} : vector<8x96xf32> to vector<8x32xf32>
    %476 = vector.extract_strided_slice %471 {offsets = [0, 64], sizes = [8, 32], strides = [1, 1]} : vector<8x96xf32> to vector<8x32xf32>
    %477 = arith.mulf %475, %441 : vector<8x32xf32>
    %478 = arith.mulf %474, %473 : vector<8x32xf32>
    %479 = arith.addf %477, %478 : vector<8x32xf32>
    %480 = math.tanh %479 : vector<8x32xf32>
    %481 = arith.mulf %476, %480 : vector<8x32xf32>
    %482 = tpu.concatenate %481, %462 in 1 : vector<8x32xf32>, vector<8x32xf32> -> vector<8x64xf32>
    %cst_73 = arith.constant dense<0.000000e+00> : vector<8x128xf32>
    %483 = tpu.matmul %482, %316, %cst_73 {dimension_numbers = #tpu.dot_dimension_numbers<[1], [0], [0], [1], [0, 0, 1, 1], [], []>} : vector<8x64xf32>, vector<64x128xf32>, vector<8x128xf32> -> vector<8x128xf32>
    %484 = arith.addf %483, %320 : vector<8x128xf32>
    %485 = vector.extract_strided_slice %484 {offsets = [0, 0], sizes = [8, 96], strides = [1, 1]} : vector<8x128xf32> to vector<8x96xf32>
    %486 = arith.negf %485 : vector<8x96xf32>
    %487 = math.exp %486 : vector<8x96xf32>
    %cst_74 = arith.constant 1.000000e+00 : f32
    %488 = vector.broadcast %cst_74 : f32 to vector<8x96xf32>
    %489 = arith.addf %488, %487 : vector<8x96xf32>
    %490 = arith.divf %488, %489 : vector<8x96xf32>
    %491 = vector.extract_strided_slice %484 {offsets = [0, 96], sizes = [8, 32], strides = [1, 1]} : vector<8x128xf32> to vector<8x32xf32>
    %492 = math.tanh %491 : vector<8x32xf32>
    %493 = vector.extract_strided_slice %490 {offsets = [0, 0], sizes = [8, 32], strides = [1, 1]} : vector<8x96xf32> to vector<8x32xf32>
    %494 = vector.extract_strided_slice %490 {offsets = [0, 32], sizes = [8, 32], strides = [1, 1]} : vector<8x96xf32> to vector<8x32xf32>
    %495 = vector.extract_strided_slice %490 {offsets = [0, 64], sizes = [8, 32], strides = [1, 1]} : vector<8x96xf32> to vector<8x32xf32>
    %496 = arith.mulf %494, %460 : vector<8x32xf32>
    %497 = arith.mulf %493, %492 : vector<8x32xf32>
    %498 = arith.addf %496, %497 : vector<8x32xf32>
    %499 = math.tanh %498 : vector<8x32xf32>
    %500 = arith.mulf %495, %499 : vector<8x32xf32>
    %501 = tpu.concatenate %500, %481 in 1 : vector<8x32xf32>, vector<8x32xf32> -> vector<8x64xf32>
    %cst_75 = arith.constant dense<0.000000e+00> : vector<8x128xf32>
    %502 = tpu.matmul %501, %321, %cst_75 {dimension_numbers = #tpu.dot_dimension_numbers<[1], [0], [0], [1], [0, 0, 1, 1], [], []>} : vector<8x64xf32>, vector<64x128xf32>, vector<8x128xf32> -> vector<8x128xf32>
    %503 = arith.addf %502, %324 : vector<8x128xf32>
    %504 = vector.extract_strided_slice %503 {offsets = [0, 0], sizes = [8, 96], strides = [1, 1]} : vector<8x128xf32> to vector<8x96xf32>
    %505 = arith.negf %504 : vector<8x96xf32>
    %506 = math.exp %505 : vector<8x96xf32>
    %cst_76 = arith.constant 1.000000e+00 : f32
    %507 = vector.broadcast %cst_76 : f32 to vector<8x96xf32>
    %508 = arith.addf %507, %506 : vector<8x96xf32>
    %509 = arith.divf %507, %508 : vector<8x96xf32>
    %510 = vector.extract_strided_slice %503 {offsets = [0, 96], sizes = [8, 32], strides = [1, 1]} : vector<8x128xf32> to vector<8x32xf32>
    %511 = math.tanh %510 : vector<8x32xf32>
    %512 = vector.extract_strided_slice %509 {offsets = [0, 0], sizes = [8, 32], strides = [1, 1]} : vector<8x96xf32> to vector<8x32xf32>
    %513 = vector.extract_strided_slice %509 {offsets = [0, 32], sizes = [8, 32], strides = [1, 1]} : vector<8x96xf32> to vector<8x32xf32>
    %514 = vector.extract_strided_slice %509 {offsets = [0, 64], sizes = [8, 32], strides = [1, 1]} : vector<8x96xf32> to vector<8x32xf32>
    %515 = arith.mulf %513, %479 : vector<8x32xf32>
    %516 = arith.mulf %512, %511 : vector<8x32xf32>
    %517 = arith.addf %515, %516 : vector<8x32xf32>
    %518 = math.tanh %517 : vector<8x32xf32>
    %519 = arith.mulf %514, %518 : vector<8x32xf32>
    %520 = tpu.concatenate %519, %500 in 1 : vector<8x32xf32>, vector<8x32xf32> -> vector<8x64xf32>
    %cst_77 = arith.constant dense<0.000000e+00> : vector<8x128xf32>
    %521 = tpu.matmul %520, %316, %cst_77 {dimension_numbers = #tpu.dot_dimension_numbers<[1], [0], [0], [1], [0, 0, 1, 1], [], []>} : vector<8x64xf32>, vector<64x128xf32>, vector<8x128xf32> -> vector<8x128xf32>
    %522 = arith.addf %521, %320 : vector<8x128xf32>
    %523 = vector.extract_strided_slice %522 {offsets = [0, 0], sizes = [8, 96], strides = [1, 1]} : vector<8x128xf32> to vector<8x96xf32>
    %524 = arith.negf %523 : vector<8x96xf32>
    %525 = math.exp %524 : vector<8x96xf32>
    %cst_78 = arith.constant 1.000000e+00 : f32
    %526 = vector.broadcast %cst_78 : f32 to vector<8x96xf32>
    %527 = arith.addf %526, %525 : vector<8x96xf32>
    %528 = arith.divf %526, %527 : vector<8x96xf32>
    %529 = vector.extract_strided_slice %522 {offsets = [0, 96], sizes = [8, 32], strides = [1, 1]} : vector<8x128xf32> to vector<8x32xf32>
    %530 = math.tanh %529 : vector<8x32xf32>
    %531 = vector.extract_strided_slice %528 {offsets = [0, 0], sizes = [8, 32], strides = [1, 1]} : vector<8x96xf32> to vector<8x32xf32>
    %532 = vector.extract_strided_slice %528 {offsets = [0, 32], sizes = [8, 32], strides = [1, 1]} : vector<8x96xf32> to vector<8x32xf32>
    %533 = vector.extract_strided_slice %528 {offsets = [0, 64], sizes = [8, 32], strides = [1, 1]} : vector<8x96xf32> to vector<8x32xf32>
    %534 = arith.mulf %532, %498 : vector<8x32xf32>
    %535 = arith.mulf %531, %530 : vector<8x32xf32>
    %536 = arith.addf %534, %535 : vector<8x32xf32>
    %537 = math.tanh %536 : vector<8x32xf32>
    %538 = arith.mulf %533, %537 : vector<8x32xf32>
    %539 = tpu.concatenate %538, %519 in 1 : vector<8x32xf32>, vector<8x32xf32> -> vector<8x64xf32>
    %cst_79 = arith.constant dense<0.000000e+00> : vector<8x128xf32>
    %540 = tpu.matmul %539, %321, %cst_79 {dimension_numbers = #tpu.dot_dimension_numbers<[1], [0], [0], [1], [0, 0, 1, 1], [], []>} : vector<8x64xf32>, vector<64x128xf32>, vector<8x128xf32> -> vector<8x128xf32>
    %541 = arith.addf %540, %324 : vector<8x128xf32>
    %542 = vector.extract_strided_slice %541 {offsets = [0, 0], sizes = [8, 96], strides = [1, 1]} : vector<8x128xf32> to vector<8x96xf32>
    %543 = arith.negf %542 : vector<8x96xf32>
    %544 = math.exp %543 : vector<8x96xf32>
    %cst_80 = arith.constant 1.000000e+00 : f32
    %545 = vector.broadcast %cst_80 : f32 to vector<8x96xf32>
    %546 = arith.addf %545, %544 : vector<8x96xf32>
    %547 = arith.divf %545, %546 : vector<8x96xf32>
    %548 = vector.extract_strided_slice %541 {offsets = [0, 96], sizes = [8, 32], strides = [1, 1]} : vector<8x128xf32> to vector<8x32xf32>
    %549 = math.tanh %548 : vector<8x32xf32>
    %550 = vector.extract_strided_slice %547 {offsets = [0, 0], sizes = [8, 32], strides = [1, 1]} : vector<8x96xf32> to vector<8x32xf32>
    %551 = vector.extract_strided_slice %547 {offsets = [0, 32], sizes = [8, 32], strides = [1, 1]} : vector<8x96xf32> to vector<8x32xf32>
    %552 = vector.extract_strided_slice %547 {offsets = [0, 64], sizes = [8, 32], strides = [1, 1]} : vector<8x96xf32> to vector<8x32xf32>
    %553 = arith.mulf %551, %517 : vector<8x32xf32>
    %554 = arith.mulf %550, %549 : vector<8x32xf32>
    %555 = arith.addf %553, %554 : vector<8x32xf32>
    %556 = math.tanh %555 : vector<8x32xf32>
    %557 = arith.mulf %552, %556 : vector<8x32xf32>
    %558 = tpu.concatenate %557, %538 in 1 : vector<8x32xf32>, vector<8x32xf32> -> vector<8x64xf32>
    %cst_81 = arith.constant dense<0.000000e+00> : vector<8x128xf32>
    %559 = tpu.matmul %558, %316, %cst_81 {dimension_numbers = #tpu.dot_dimension_numbers<[1], [0], [0], [1], [0, 0, 1, 1], [], []>} : vector<8x64xf32>, vector<64x128xf32>, vector<8x128xf32> -> vector<8x128xf32>
    %560 = arith.addf %559, %320 : vector<8x128xf32>
    %561 = vector.extract_strided_slice %560 {offsets = [0, 0], sizes = [8, 96], strides = [1, 1]} : vector<8x128xf32> to vector<8x96xf32>
    %562 = arith.negf %561 : vector<8x96xf32>
    %563 = math.exp %562 : vector<8x96xf32>
    %cst_82 = arith.constant 1.000000e+00 : f32
    %564 = vector.broadcast %cst_82 : f32 to vector<8x96xf32>
    %565 = arith.addf %564, %563 : vector<8x96xf32>
    %566 = arith.divf %564, %565 : vector<8x96xf32>
    %567 = vector.extract_strided_slice %560 {offsets = [0, 96], sizes = [8, 32], strides = [1, 1]} : vector<8x128xf32> to vector<8x32xf32>
    %568 = math.tanh %567 : vector<8x32xf32>
    %569 = vector.extract_strided_slice %566 {offsets = [0, 0], sizes = [8, 32], strides = [1, 1]} : vector<8x96xf32> to vector<8x32xf32>
    %570 = vector.extract_strided_slice %566 {offsets = [0, 32], sizes = [8, 32], strides = [1, 1]} : vector<8x96xf32> to vector<8x32xf32>
    %571 = vector.extract_strided_slice %566 {offsets = [0, 64], sizes = [8, 32], strides = [1, 1]} : vector<8x96xf32> to vector<8x32xf32>
    %572 = arith.mulf %570, %536 : vector<8x32xf32>
    %573 = arith.mulf %569, %568 : vector<8x32xf32>
    %574 = arith.addf %572, %573 : vector<8x32xf32>
    %575 = math.tanh %574 : vector<8x32xf32>
    %576 = arith.mulf %571, %575 : vector<8x32xf32>
    %577 = tpu.concatenate %576, %557 in 1 : vector<8x32xf32>, vector<8x32xf32> -> vector<8x64xf32>
    %cst_83 = arith.constant dense<0.000000e+00> : vector<8x128xf32>
    %578 = tpu.matmul %577, %321, %cst_83 {dimension_numbers = #tpu.dot_dimension_numbers<[1], [0], [0], [1], [0, 0, 1, 1], [], []>} : vector<8x64xf32>, vector<64x128xf32>, vector<8x128xf32> -> vector<8x128xf32>
    %579 = arith.addf %578, %324 : vector<8x128xf32>
    %580 = vector.extract_strided_slice %579 {offsets = [0, 0], sizes = [8, 96], strides = [1, 1]} : vector<8x128xf32> to vector<8x96xf32>
    %581 = arith.negf %580 : vector<8x96xf32>
    %582 = math.exp %581 : vector<8x96xf32>
    %cst_84 = arith.constant 1.000000e+00 : f32
    %583 = vector.broadcast %cst_84 : f32 to vector<8x96xf32>
    %584 = arith.addf %583, %582 : vector<8x96xf32>
    %585 = arith.divf %583, %584 : vector<8x96xf32>
    %586 = vector.extract_strided_slice %579 {offsets = [0, 96], sizes = [8, 32], strides = [1, 1]} : vector<8x128xf32> to vector<8x32xf32>
    %587 = math.tanh %586 : vector<8x32xf32>
    %588 = vector.extract_strided_slice %585 {offsets = [0, 0], sizes = [8, 32], strides = [1, 1]} : vector<8x96xf32> to vector<8x32xf32>
    %589 = vector.extract_strided_slice %585 {offsets = [0, 32], sizes = [8, 32], strides = [1, 1]} : vector<8x96xf32> to vector<8x32xf32>
    %590 = vector.extract_strided_slice %585 {offsets = [0, 64], sizes = [8, 32], strides = [1, 1]} : vector<8x96xf32> to vector<8x32xf32>
    %591 = arith.mulf %589, %555 : vector<8x32xf32>
    %592 = arith.mulf %588, %587 : vector<8x32xf32>
    %593 = arith.addf %591, %592 : vector<8x32xf32>
    %594 = math.tanh %593 : vector<8x32xf32>
    %595 = arith.mulf %590, %594 : vector<8x32xf32>
    %596 = tpu.concatenate %595, %576 in 1 : vector<8x32xf32>, vector<8x32xf32> -> vector<8x64xf32>
    %cst_85 = arith.constant dense<0.000000e+00> : vector<8x128xf32>
    %597 = tpu.matmul %596, %316, %cst_85 {dimension_numbers = #tpu.dot_dimension_numbers<[1], [0], [0], [1], [0, 0, 1, 1], [], []>} : vector<8x64xf32>, vector<64x128xf32>, vector<8x128xf32> -> vector<8x128xf32>
    %598 = arith.addf %597, %320 : vector<8x128xf32>
    %599 = vector.extract_strided_slice %598 {offsets = [0, 0], sizes = [8, 96], strides = [1, 1]} : vector<8x128xf32> to vector<8x96xf32>
    %600 = arith.negf %599 : vector<8x96xf32>
    %601 = math.exp %600 : vector<8x96xf32>
    %cst_86 = arith.constant 1.000000e+00 : f32
    %602 = vector.broadcast %cst_86 : f32 to vector<8x96xf32>
    %603 = arith.addf %602, %601 : vector<8x96xf32>
    %604 = arith.divf %602, %603 : vector<8x96xf32>
    %605 = vector.extract_strided_slice %598 {offsets = [0, 96], sizes = [8, 32], strides = [1, 1]} : vector<8x128xf32> to vector<8x32xf32>
    %606 = math.tanh %605 : vector<8x32xf32>
    %607 = vector.extract_strided_slice %604 {offsets = [0, 0], sizes = [8, 32], strides = [1, 1]} : vector<8x96xf32> to vector<8x32xf32>
    %608 = vector.extract_strided_slice %604 {offsets = [0, 32], sizes = [8, 32], strides = [1, 1]} : vector<8x96xf32> to vector<8x32xf32>
    %609 = vector.extract_strided_slice %604 {offsets = [0, 64], sizes = [8, 32], strides = [1, 1]} : vector<8x96xf32> to vector<8x32xf32>
    %610 = arith.mulf %608, %574 : vector<8x32xf32>
    %611 = arith.mulf %607, %606 : vector<8x32xf32>
    %612 = arith.addf %610, %611 : vector<8x32xf32>
    %613 = math.tanh %612 : vector<8x32xf32>
    %614 = arith.mulf %609, %613 : vector<8x32xf32>
    %615 = tpu.concatenate %614, %595 in 1 : vector<8x32xf32>, vector<8x32xf32> -> vector<8x64xf32>
    %cst_87 = arith.constant dense<0.000000e+00> : vector<8x128xf32>
    %616 = tpu.matmul %615, %321, %cst_87 {dimension_numbers = #tpu.dot_dimension_numbers<[1], [0], [0], [1], [0, 0, 1, 1], [], []>} : vector<8x64xf32>, vector<64x128xf32>, vector<8x128xf32> -> vector<8x128xf32>
    %617 = arith.addf %616, %324 : vector<8x128xf32>
    %618 = vector.extract_strided_slice %617 {offsets = [0, 0], sizes = [8, 96], strides = [1, 1]} : vector<8x128xf32> to vector<8x96xf32>
    %619 = arith.negf %618 : vector<8x96xf32>
    %620 = math.exp %619 : vector<8x96xf32>
    %cst_88 = arith.constant 1.000000e+00 : f32
    %621 = vector.broadcast %cst_88 : f32 to vector<8x96xf32>
    %622 = arith.addf %621, %620 : vector<8x96xf32>
    %623 = arith.divf %621, %622 : vector<8x96xf32>
    %624 = vector.extract_strided_slice %617 {offsets = [0, 96], sizes = [8, 32], strides = [1, 1]} : vector<8x128xf32> to vector<8x32xf32>
    %625 = math.tanh %624 : vector<8x32xf32>
    %626 = vector.extract_strided_slice %623 {offsets = [0, 0], sizes = [8, 32], strides = [1, 1]} : vector<8x96xf32> to vector<8x32xf32>
    %627 = vector.extract_strided_slice %623 {offsets = [0, 32], sizes = [8, 32], strides = [1, 1]} : vector<8x96xf32> to vector<8x32xf32>
    %628 = vector.extract_strided_slice %623 {offsets = [0, 64], sizes = [8, 32], strides = [1, 1]} : vector<8x96xf32> to vector<8x32xf32>
    %629 = arith.mulf %627, %593 : vector<8x32xf32>
    %630 = arith.mulf %626, %625 : vector<8x32xf32>
    %631 = arith.addf %629, %630 : vector<8x32xf32>
    %632 = math.tanh %631 : vector<8x32xf32>
    %633 = arith.mulf %628, %632 : vector<8x32xf32>
    %634 = tpu.concatenate %367, %405, %443, %481, %519, %557, %595, %633 in 0 : vector<8x32xf32>, vector<8x32xf32>, vector<8x32xf32>, vector<8x32xf32>, vector<8x32xf32>, vector<8x32xf32>, vector<8x32xf32>, vector<8x32xf32> -> vector<64x32xf32>
    %c0_89 = arith.constant 0 : index
    %c0_90 = arith.constant 0 : index
    %635 = vector.load %arg12[%c0_89, %c0_90] : memref<32x2xf32, #tpu.memory_space<vmem>>, vector<32x2xf32>
    %cst_91 = arith.constant dense<0.000000e+00> : vector<64x2xf32>
    %636 = tpu.matmul %634, %635, %cst_91 {dimension_numbers = #tpu.dot_dimension_numbers<[1], [0], [0], [1], [0, 0, 1, 1], [], []>} : vector<64x32xf32>, vector<32x2xf32>, vector<64x2xf32> -> vector<64x2xf32>
    %c0_92 = arith.constant 0 : index
    %c0_93 = arith.constant 0 : index
    %637 = vector.load %arg13[%c0_92, %c0_93] : memref<1x2xf32, #tpu.memory_space<vmem>>, vector<1x2xf32>
    %638 = vector.broadcast %637 : vector<1x2xf32> to vector<64x2xf32>
    %639 = arith.addf %636, %638 : vector<64x2xf32>
    %c0_94 = arith.constant 0 : index
    %c0_95 = arith.constant 0 : index
    %640 = vector.load %arg14[%c0_94, %c0_95] : memref<64x2xf32, #tpu.memory_space<vmem>>, vector<64x2xf32>
    tpu.vector_store %arg14[%c0_94, %c0_95], %639 {strides = array<i32>} : memref<64x2xf32, #tpu.memory_space<vmem>>, vector<64x2xf32>,
    return
  }
}

</mosaic_0001>

<bundles_post_ra>
// kernel: seq2seq_forward.1
= control target key start
LH: loop header
LB: loop body
LE: loop exit
PB: predicated region body
PF: predicated region fallthrough
CT: control target
= control target key end

     0   :  { %19 = vsyncpa [#allocation3], 0  ;;  %s6587_s0 = inlined_call_operand.vmem [shape: f32[64,6], index: 0, kind: input, shape index: {}]   ;;  %s6588_s1 = inlined_call_operand.hbm [shape: f32[6,128], index: 1, kind: input, shape index: {}]   ;;  %s6589_s2 = inlined_call_operand.hbm [shape: f32[32,128], index: 2, kind: input, shape index: {}]   ;;  %s6590_s3 = inlined_call_operand.hbm [shape: f32[1,128], index: 3, kind: input, shape index: {}]   ;;  %s6591_s4 = inlined_call_operand.vmem [shape: f32[64,128], index: 4, kind: input, shape index: {}]   ;;  %s6592_s5 = inlined_call_operand.hbm [shape: f32[1,128], index: 5, kind: input, shape index: {}]   ;;  %s6593_s6 = inlined_call_operand.hbm [shape: f32[6,128], index: 6, kind: input, shape index: {}]   ;;  %s6594_s7 = inlined_call_operand.hbm [shape: f32[1,128], index: 7, kind: input, shape index: {}]   ;;  %s6595_s8 = inlined_call_operand.vmem [shape: f32[64,128], index: 8, kind: input, shape index: {}]   ;;  %s6596_s9 = inlined_call_operand.vmem [shape: f32[1,128], index: 9, kind: input, shape index: {}]   ;;  %s6597_s10 = inlined_call_operand.vmem [shape: f32[64,128], index: 10, kind: input, shape index: {}]   ;;  %s6598_s11 = inlined_call_operand.vmem [shape: f32[1,128], index: 11, kind: input, shape index: {}]   ;;  %s6599_s12 = inlined_call_operand.vmem [shape: f32[32,2], index: 12, kind: input, shape index: {}]   ;;  %s6600_s13 = inlined_call_operand.vmem [shape: f32[1,2], index: 13, kind: input, shape index: {}]   ;;  %s6601_s14 = inlined_call_operand.vmem [shape: f32[64,2], index: 14, kind: output, shape index: {}]  }
   0x1   :  { %20 = vsyncpa [#allocation5], 0 }
   0x2   :  { %21 = vsyncpa [#allocation8], 0 }
   0x3   :  { %22 = vsyncpa [#allocation11], 0  ;;  %s5537_s29 = smov [#allocation4]   ;;  %s5397_s17 = scalar_lea.hbm %s6589_s2, 512 }
   0x4   :  { %s40_s30 = sshll.u32 %s5537_s29, 4  ;;  %p5398_p0 = scmp.ne.s32.totalorder %s6589_s2, %s5397_s17  ;;  %s41_s30 = int_to_ptr.vmem [resolvable:$true] %s40_s30 }
   0x5   :  { %p5401_p1 = scmp.lt.u32.totalorder %s5397_s17, %s6589_s2 }
   0x7   :  { %p5403_p2 = pnand %p5401_p1, %p5398_p0 }
   0x9   :  { %5406 = shalt.err (!%p5403_p2)
}
   0xa   :  { %s5407_s22 = scalar_lea.vmem %s41_s30, 512  ;;  %p5412_p4 = scmp.lt.s32.totalorder %s41_s30, %s41_s30 }
   0xb   :  { %p5408_p3 = scmp.ne.s32.totalorder %s41_s30, %s5407_s22  ;;  %p5413_p5 = scmp.lt.s32.totalorder %s5407_s22, %s5407_s22 }
   0xd   :  { %p5414_p6 = por %p5413_p5, %p5412_p4 }
   0xf   :  { %p5415_p7 = pnand %p5414_p6, %p5408_p3 }
  0x11   :  { %5418 = shalt.err (!%p5415_p7)
}
  0x12   :  { %s5538_s23 = smov 128   ;;  %s5539_s24 = smov 8  }
  0x13   :  { %46 = dma.hbm_to_vmem [thread:$0]  %s6589_s2, 512, %s41_s30, [#allocation5], %s5538_s23, %s5538_s23, %s5539_s24  }
  0x14   :  { %s5540_s27 = smov [#allocation7]   ;;  %s5541_s29 = smov [#allocation2]  }
  0x15   :  { %s65_s28 = sshll.u32 %s5540_s27, 4  ;;  %s31_s15 = sshll.u32 %s5541_s29, 4  ;;  %s66_s28 = int_to_ptr.vmem [resolvable:$true] %s65_s28  ;;  %s32_s15 = int_to_ptr.vmem [resolvable:$true] %s31_s15 }
  0x16   :  { %s5419_s18 = scalar_lea.hbm %s6592_s5, 16 }
  0x17   :  { %p5420_p8 = scmp.ne.s32.totalorder %s6592_s5, %s5419_s18  ;;  %p5423_p9 = scmp.lt.u32.totalorder %s5419_s18, %s6592_s5 }
  0x19   :  { %p5425_p10 = pnand %p5423_p9, %p5420_p8 }
  0x1b   :  { %5428 = shalt.err (!%p5425_p10)
}
  0x1c   :  { %s5429_s2 = scalar_lea.vmem %s66_s28, 16  ;;  %s5433_s30 = scalar_lea.vmem %s66_s28, 32 }
  0x1d   :  { %p5430_p11 = scmp.ne.s32.totalorder %s66_s28, %s5429_s2  ;;  %p5434_p12 = scmp.lt.s32.totalorder %s66_s28, %s66_s28 }
  0x1e   :  { %p5435_p13 = scmp.lt.s32.totalorder %s5433_s30, %s5429_s2 }
  0x20   :  { %p5436_p0 = por %p5435_p13, %p5434_p12 }
  0x22   :  { %p5437_p1 = pnand %p5436_p0, %p5430_p11 }
  0x24   :  { %5440 = shalt.err (!%p5437_p1)
}
  0x25   :  { %68 = dma.hbm_to_vmem [thread:$0]  %s6592_s5, 16, %s66_s28, [#allocation8]  }
  0x26   :  { %s5441_s27 = scalar_lea.hbm %s6588_s1, 128 }
  0x27   :  { %p5442_p2 = scmp.ne.s32.totalorder %s6588_s1, %s5441_s27  ;;  %p5445_p3 = scmp.lt.u32.totalorder %s5441_s27, %s6588_s1 }
  0x29   :  { %p5447_p4 = pnand %p5445_p3, %p5442_p2 }
  0x2b   :  { %5450 = shalt.err (!%p5447_p4)
}
  0x2c   :  { %s5451_s19 = scalar_lea.vmem %s32_s15, 128  ;;  %p5456_p6 = scmp.lt.s32.totalorder %s32_s15, %s32_s15 }
  0x2d   :  { %p5452_p5 = scmp.ne.s32.totalorder %s32_s15, %s5451_s19  ;;  %p5457_p7 = scmp.lt.s32.totalorder %s5451_s19, %s5451_s19 }
  0x2f   :  { %p5458_p8 = por %p5457_p7, %p5456_p6 }
  0x31   :  { %p5459_p9 = pnand %p5458_p8, %p5452_p5 }
  0x33   :  { %5462 = shalt.err (!%p5459_p9)
}
  0x34   :  { %34 = dma.hbm_to_vmem [thread:$0]  %s6588_s1, 128, %s32_s15, [#allocation3]  }
  0x35   :  { %s5542_s20 = smov [#allocation6]   ;;  %s5543_s22 = smov [#allocation9]  }
  0x36   :  { %s53_s21 = sshll.u32 %s5542_s20, 4  ;;  %s75_s2 = sshll.u32 %s5543_s22, 4  ;;  %s54_s21 = int_to_ptr.vmem [resolvable:$true] %s53_s21  ;;  %s76_s2 = int_to_ptr.vmem [resolvable:$true] %s75_s2 }
  0x37   :  { %s5463_s24 = scalar_lea.hbm %s6590_s3, 16 }
  0x38   :  { %p5464_p10 = scmp.ne.s32.totalorder %s6590_s3, %s5463_s24  ;;  %p5467_p11 = scmp.lt.u32.totalorder %s5463_s24, %s6590_s3 }
  0x3a   :  { %p5469_p12 = pnand %p5467_p11, %p5464_p10 }
  0x3c   :  { %5472 = shalt.err (!%p5469_p12)
}
  0x3d   :  { %s5473_s1 = scalar_lea.vmem %s54_s21, 16  ;;  %s5477_s15 = scalar_lea.vmem %s54_s21, 32 }
  0x3e   :  { %p5474_p13 = scmp.ne.s32.totalorder %s54_s21, %s5473_s1  ;;  %p5478_p0 = scmp.lt.s32.totalorder %s54_s21, %s54_s21 }
  0x3f   :  { %p5479_p1 = scmp.lt.s32.totalorder %s5477_s15, %s5473_s1 }
  0x41   :  { %p5480_p2 = por %p5479_p1, %p5478_p0 }
  0x43   :  { %p5481_p3 = pnand %p5480_p2, %p5474_p13 }
  0x45   :  { %5484 = shalt.err (!%p5481_p3)
}
  0x46   :  { %56 = dma.hbm_to_vmem [thread:$0]  %s6590_s3, 16, %s54_s21, [#allocation5]  }
  0x47   :  { %s5485_s5 = scalar_lea.hbm %s6593_s6, 128 }
  0x48   :  { %p5486_p4 = scmp.ne.s32.totalorder %s6593_s6, %s5485_s5  ;;  %p5489_p5 = scmp.lt.u32.totalorder %s5485_s5, %s6593_s6 }
  0x4a   :  { %p5491_p6 = pnand %p5489_p5, %p5486_p4 }
  0x4c   :  { %5494 = shalt.err (!%p5491_p6)
}
  0x4d   :  { %s5495_s23 = scalar_lea.vmem %s76_s2, 128  ;;  %p5500_p8 = scmp.lt.s32.totalorder %s76_s2, %s76_s2 }
  0x4e   :  { %p5496_p7 = scmp.ne.s32.totalorder %s76_s2, %s5495_s23  ;;  %p5501_p9 = scmp.lt.s32.totalorder %s5495_s23, %s5495_s23 }
  0x50   :  { %p5502_p10 = por %p5501_p9, %p5500_p8 }
  0x52   :  { %p5503_p11 = pnand %p5502_p10, %p5496_p7 }
  0x54   :  { %5506 = shalt.err (!%p5503_p11)
}
  0x55   :  { %78 = dma.hbm_to_vmem [thread:$0]  %s6593_s6, 128, %s76_s2, [#allocation8]  }
  0x56   :  { %s5544_s24 = smov [#allocation10]   ;;  %s5507_s29 = scalar_lea.hbm %s6594_s7, 16 }
  0x57   :  { %s85_s25 = sshll.u32 %s5544_s24, 4  ;;  %p5508_p12 = scmp.ne.s32.totalorder %s6594_s7, %s5507_s29  ;;  %s86_s25 = int_to_ptr.vmem [resolvable:$true] %s85_s25 }
  0x58   :  { %p5511_p13 = scmp.lt.u32.totalorder %s5507_s29, %s6594_s7 }
  0x5a   :  { %p5513_p0 = pnand %p5511_p13, %p5508_p12 }
  0x5c   :  { %5516 = shalt.err (!%p5513_p0)
}
  0x5d   :  { %s5517_s18 = scalar_lea.vmem %s86_s25, 16  ;;  %s5521_s6 = scalar_lea.vmem %s86_s25, 32 }
  0x5e   :  { %p5518_p1 = scmp.ne.s32.totalorder %s86_s25, %s5517_s18  ;;  %p5522_p2 = scmp.lt.s32.totalorder %s86_s25, %s86_s25 }
  0x5f   :  { %p5523_p3 = scmp.lt.s32.totalorder %s5521_s6, %s5517_s18 }
  0x61   :  { %p5524_p4 = por %p5523_p3, %p5522_p2 }
  0x63   :  { %p5525_p5 = pnand %p5524_p4, %p5518_p1 }
  0x65   :  { %5528 = shalt.err (!%p5525_p5)
}
  0x66   :  { %88 = dma.hbm_to_vmem [thread:$0]  %s6594_s7, 16, %s86_s25, [#allocation11]  }
  0x67   :  { %5529 = dma.done.wait [#allocation3], 128  }
  0x68   :  { %5530 = vsyncadd [#allocation3], 4294967168 }
  0x69   :  { %5531 = dma.done.wait [#allocation5], 528  }
  0x6a   :  { %5532 = vsyncadd [#allocation5], 4294966768 }
  0x6b   :  { %5533 = dma.done.wait [#allocation8], 144  }
  0x6c   :  { %5534 = vsyncadd [#allocation8], 4294967152 }
  0x6d   :  { %5535 = dma.done.wait [#allocation11], 16  }
  0x6e   :  { %5536 = vsyncadd [#allocation11], 4294967280  ;;  %v5545_v0 = vmov 0.0|0.0   ;;  %vm5546_vm0 = vmmov 0   ;;  %v5547_v1 = vmov 0.0   ;;  %vm160_vm1 = vcmask 1045504  }
  0x6f   :  { %4785 = vmatprep.subr.bf16.mxu1 %v5545_v0  ;;  %4232 = vmatprep.mubr.msk.f32.mxu1 %vm5546_vm0, %v5547_v1  ;;  %vm135_vm2 = vcmask 48128   ;;  %v269_v2 = vld [vmem:[#allocation4] sm:$0xff]  ;;  %v270_v3 = vld [vmem:[#allocation4 + $0x8] sm:$0xff]  ;;  %v127_v4 = vld [vmem:[#allocation2] sm:$0x3f]  ;;  %s5548_s22 = smov 32  }
  0x70   :  { %v5701_v5 = vpack.c.bf16 %v270_v3, %v269_v2  ;;  %4210 = vmatprep.subr.msk.mxu0 %vm160_vm1, %v127_v4  ;;  %v119_v6 = vld [vmem:[%s6587_s0] sm:$0xff]  ;;  %v120_v7 = vld [vmem:[%s6587_s0 + $0x8] sm:$0xff]  ;;  %v271_v8 = vld [vmem:[#allocation4 + $0x10] sm:$0xff]  ;;  %vm288_vm3 = vcmask 261120   ;;  %vm392_vm4 = vcmask 523264   ;;  %vm3830_vm5 = vcmask 15360  }
  0x71   :  { %4211 = vmatpush3.msk.msra.mxu0 %vm160_vm1, %v127_v4  ;;  %4212 = vmatprep.mubr.msk.f32.mxu0 %vm135_vm2, %v119_v6  ;;  %v272_v9 = vld [vmem:[#allocation4 + $0x18] sm:$0xff]  ;;  %v5729_v12 = vld [vmem:[#allocation6] ss:$0 sm:$0xff]  ;;  %v121_v30 = vld [vmem:[%s6587_s0 + $0x10] sm:$0xff] }
  0x72   :  { %4787 = vmatpush3.bf16.msra.mxu1 %v5701_v5  ;;  %4213 = vmatmul.mubr.msk.f32.vlgmr.msra.gmra.mrb[0].mxu0 %vm135_vm2, %v120_v7  ;;  %v5714_v10 = vpack.c.bf16 %v272_v9, %v271_v8  ;;  %v273_v28 = vld [vmem:[%s6591_s4] sm:$0xff]  ;;  %v274_v29 = vld [vmem:[%s6591_s4 + $0x8] sm:$0xff]  ;;  %v122_v32 = vld [vmem:[%s6587_s0 + $0x18] sm:$0xff] }
  0x73   :  { %4788 = vmatprep.subr.bf16.mxu1 %v5545_v0  ;;  %4791 = vmatprep.subr.bf16.mxu0 %v5545_v0  ;;  %v5746_v31 = vpack.c.bf16 %v274_v29, %v273_v28  ;;  %v275_v33 = vld [vmem:[%s6591_s4 + $0x10] sm:$0xff]  ;;  %v276_v34 = vld [vmem:[%s6591_s4 + $0x18] sm:$0xff]  ;;  %v123_v35 = vld [vmem:[%s6587_s0 + $0x20] sm:$0xff] }
  0x74   :  { %4215 = vmatprep.mubr.msk.f32.mxu0 %vm135_vm2, %v121_v30  ;;  %v5763_v36 = vpack.c.bf16 %v276_v34, %v275_v33  ;;  %v124_v37 = vld [vmem:[%s6587_s0 + $0x28] sm:$0xff]  ;;  %v277_v38 = vld [vmem:[%s6591_s4 + $0x20] sm:$0xff]  ;;  %v125_v40 = vld [vmem:[%s6587_s0 + $0x30] sm:$0xff] }
  0x75   :  { %4793 = vmatpush3.bf16.msra.mxu0 %v5746_v31  ;;  %v278_v39 = vld [vmem:[%s6591_s4 + $0x28] sm:$0xff]  ;;  %v5787_v42 = vld [vmem:[%s6587_s0 + $0x38] sm:$0xff]  ;;  %v279_v43 = vld [vmem:[%s6591_s4 + $0x30] sm:$0xff]  ;;  %s5549_s0 = smov 64  }
  0x76   :  { %4790 = vmatpush3.bf16.msra.mxu1 %v5714_v10  ;;  %4216 = vmatmul.mubr.msk.f32.gmra.mrb[2].mxu0 %vm135_vm2, %v122_v32  ;;  %v5781_v41 = vpack.c.bf16 %v278_v39, %v277_v38  ;;  %v280_v44 = vld [vmem:[%s6591_s4 + $0x38] sm:$0xff]  ;;  %v5841_v58 = vld [vmem:[#allocation7] ss:$0 sm:$0xff]  ;;  %s5550_s4 = smov 96  }
  0x77   :  { %4803 = vmatprep.subr.bf16.mxu1 %v5545_v0  ;;  %4218 = vmatprep.mubr.msk.f32.mxu0 %vm135_vm2, %v123_v35  ;;  %v5800_v46 = vpack.c.bf16 %v280_v44, %v279_v43 }
  0x78   :  { %4794 = vmatprep.subr.bf16.mxu0 %v5545_v0 }
  0x79   :  { %4233 = vmatmul.mubr.f32.vlgmr.msra.gmra.mrb[0].mxu1 %v5547_v1  ;;  %4796 = vmatpush3.bf16.msra.mxu0 %v5763_v36 }
  0x7a   :  { %4805 = vmatpush3.bf16.msra.mxu1 %v5701_v5  ;;  %4262 = vmatprep.mubr.msk.f32.mxu1 %vm5546_vm0, %v5547_v1 }
  0x7b   :  { %4806 = vmatprep.subr.bf16.mxu1 %v5545_v0  ;;  %4219 = vmatmul.mubr.msk.f32.gmra.mrb[4].mxu0 %vm135_vm2, %v124_v37 }
  0x7c   :  { %4221 = vmatprep.mubr.msk.f32.mxu0 %vm135_vm2, %v125_v40  ;;  %4797 = vmatprep.subr.bf16.mxu0 %v5545_v0 }
  0x7d   :  { %4799 = vmatpush3.bf16.msra.mxu0 %v5781_v41 }
  0x7e   :  { %4808 = vmatpush3.bf16.msra.mxu1 %v5714_v10  ;;  %4800 = vmatprep.subr.bf16.mxu0 %v5545_v0 }
  0x7f   :  { %4809 = vmatprep.subr.bf16.mxu1 %v5545_v0  ;;  %4222 = vmatmul.mubr.msk.f32.gmra.mrb[6].mxu0 %vm135_vm2, %v5787_v42 }
  0x80   :  { %4251 = vmatprep.mubr.msk.f32.mxu0 %vm5546_vm0, %v5547_v1 }
  0x81   :  { %4802 = vmatpush3.bf16.msra.mxu0 %v5800_v46 }
  0x82   :  { %4821 = vmatprep.subr.bf16.mxu0 %v5545_v0 }
 0x145   :  { %v5727_v11 = vpop.f32.mrb[0].mxu0 }
 0x146   :  { %v230_v13 = vpop.f32.mrb[1].mxu0  ;;  %v236_v57 = vadd.f32 %v5727_v11, %v5729_v12 }
 0x147   :  { %v231_v14 = vadd.f32 %v5729_v12, %v230_v13 }
 0x149   :  { %v5808_v49 = vpop.f32.mrb[2].mxu0 }
 0x14a   :  { %v5810_v50 = vpop.f32.mrb[3].mxu0 }
 0x14b   :  { %v241_v37 = vadd.f32 %v5729_v12, %v5810_v50 }
 0x14c   :  { %v358_v15 = vpop.f32.mrb[0].mxu1 }
 0x14d   :  { %v362_v16 = vadd.f32 %v358_v15, %v231_v14  ;;  %v4234_v17 = vpop.f32.mrb[1].mxu1 }
 0x14e   :  { %v5812_v51 = vpop.f32.mrb[4].mxu0 }
 0x14f   :  { %5140 = vtanh.f32 %v362_v16  ;;  %v3858_v19 = vmul.f32 -1.442695, %v362_v16  ;;  %v5814_v52 = vpop.f32.mrb[5].mxu0 }
 0x151   :  { %5142 = vpow2.f32 %v3858_v19 }
 0x152   :  { %v5816_v53 = vpop.f32.mrb[6].mxu0 }
 0x153   :  { %v5818_v54 = vpop.f32.mrb[7].mxu0 }
 0x159   :  { %v5141_v18 = vpop.eup %5140 }
 0x15a   :  { %372 = vrot.lane.b32.xlu0 %v5141_v18, %s5548_s22 }
 0x15b   :  { %v5143_v20 = vpop.eup %5142 }
 0x15c   :  { %v366_v21 = vadd.f32 1.0, %v5143_v20 }
 0x15e   :  { %5144 = vrcp.f32 %v366_v21 }
 0x168   :  { %v5145_v22 = vpop.eup %5144 }
 0x169   :  { %v370_v25 = vmul.f32 0.0, %v5145_v22 }
 0x1cc   :  { %v373_v23 = vpop.permute.xlu0 %372 }
 0x1cd   :  { %v375_v24 = vmul.f32 %v5145_v22, %v373_v23 }
 0x1cf   :  { %377 = vrot.lane.b32.xlu0 %v375_v24, %s5548_s22 }
 0x241   :  { %v378_v26 = vpop.permute.xlu0 %377 }
 0x242   :  { %v5734_v27 = vadd.f32 %v378_v26, %v370_v25 }
 0x244   :  { %5146 = vtanh.f32 %v5734_v27 }
 0x24e   :  { %v5147_v45 = vpop.eup %5146 }
 0x24f   :  { %383 = vrot.lane.b32.xlu1 %v5147_v45, %s5548_s22 }
 0x2c1   :  { %v384_v47 = vpop.permute.xlu1 %383 }
 0x2c2   :  { %v386_v48 = vmul.f32 %v5145_v22, %v384_v47 }
 0x2c4   :  { %388 = vrot.lane.b32.xlu1 %v386_v48, %s5549_s0 }
 0x336   :  { %v389_v55 = vpop.permute.xlu1 %388 }
 0x337   :  { %v391_v56 = vsel %vm288_vm3, %v389_v55, 0.0  ;;  %4263 = vmatmul.mubr.msk.f32.vlgmr.msra.gmra.mrb[2].mxu1 %vm288_vm3, %v389_v55 }
 0x338   :  { %4252 = vmatmul.mubr.msk.f32.vlgmr.msra.gmra.mrb[8].mxu0 %vm392_vm4, %v391_v56  ;;  %4811 = vmatpush3.bf16.msra.mxu1 %v5746_v31 }
 0x339   :  { %4812 = vmatprep.subr.bf16.mxu1 %v5545_v0  ;;  %4823 = vmatpush3.bf16.msra.mxu0 %v5701_v5 }
 0x33a   :  { %4824 = vmatprep.subr.bf16.mxu0 %v5545_v0  ;;  %4292 = vmatprep.mubr.msk.f32.mxu0 %vm5546_vm0, %v5547_v1 }
 0x33b   :  { %4281 = vmatprep.mubr.msk.f32.mxu1 %vm5546_vm0, %v5547_v1 }
 0x33c   :  { %4814 = vmatpush3.bf16.msra.mxu1 %v5763_v36 }
 0x33d   :  { %4815 = vmatprep.subr.bf16.mxu1 %v5545_v0  ;;  %4826 = vmatpush3.bf16.msra.mxu0 %v5714_v10 }
 0x33e   :  { %4827 = vmatprep.subr.bf16.mxu0 %v5545_v0 }
 0x340   :  { %4817 = vmatpush3.bf16.msra.mxu1 %v5781_v41 }
 0x341   :  { %4818 = vmatprep.subr.bf16.mxu1 %v5545_v0 }
 0x344   :  { %4820 = vmatpush3.bf16.msra.mxu1 %v5800_v46 }
 0x345   :  { %4839 = vmatprep.subr.bf16.mxu1 %v5545_v0 }
 0x40a   :  { %v558_v59 = vpop.f32.mrb[2].mxu1 }
 0x40b   :  { %v562_v60 = vadd.f32 %v558_v59, %v236_v57  ;;  %v462_v61 = vpop.f32.mrb[8].mxu0  ;;  %v4264_v62 = vpop.f32.mrb[3].mxu1 }
 0x40c   :  { %v463_v63 = vadd.f32 %v5841_v58, %v462_v61  ;;  %v4253_v2 = vpop.f32.mrb[9].mxu0 }
 0x40d   :  { %5148 = vtanh.f32 %v562_v60  ;;  %v3862_v6 = vmul.f32 -1.442695, %v562_v60 }
 0x40e   :  { %5150 = vtanh.f32 %v463_v63  ;;  %v3860_v7 = vmul.f32 -1.442695, %v463_v63 }
 0x40f   :  { %5152 = vpow2.f32 %v3862_v6 }
 0x410   :  { %5154 = vpow2.f32 %v3860_v7 }
 0x417   :  { %v5149_v3 = vpop.eup %5148 }
 0x418   :  { %v5151_v4 = vpop.eup %5150  ;;  %572 = vrot.lane.b32.xlu1 %v5149_v3, %s5548_s22 }
 0x419   :  { %475 = vrot.lane.b32.xlu0 %v5151_v4, %s5548_s22  ;;  %v5153_v8 = vpop.eup %5152 }
 0x41a   :  { %v5155_v9 = vpop.eup %5154  ;;  %v566_v11 = vadd.f32 1.0, %v5153_v8 }
 0x41b   :  { %v469_v13 = vadd.f32 1.0, %v5155_v9 }
 0x41c   :  { %5156 = vrcp.f32 %v566_v11 }
 0x41d   :  { %5158 = vrcp.f32 %v469_v13 }
 0x426   :  { %v5157_v14 = vpop.eup %5156 }
 0x427   :  { %v5159_v16 = vpop.eup %5158  ;;  %v570_v20 = vmul.f32 %v5157_v14, %v5734_v27 }
 0x428   :  { %v473_v22 = vmul.f32 0.0, %v5159_v16 }
 0x48a   :  { %v573_v15 = vpop.permute.xlu1 %572 }
 0x48b   :  { %v575_v17 = vmul.f32 %v5157_v14, %v573_v15  ;;  %v476_v18 = vpop.permute.xlu0 %475 }
 0x48c   :  { %v478_v19 = vmul.f32 %v5159_v16, %v476_v18 }
 0x48d   :  { %577 = vrot.lane.b32.xlu1 %v575_v17, %s5548_s22 }
 0x48e   :  { %480 = vrot.lane.b32.xlu0 %v478_v19, %s5548_s22 }
 0x4ff   :  { %v578_v21 = vpop.permute.xlu1 %577 }
 0x500   :  { %v5849_v23 = vadd.f32 %v578_v21, %v570_v20  ;;  %v481_v24 = vpop.permute.xlu0 %480 }
 0x501   :  { %v5851_v25 = vadd.f32 %v481_v24, %v473_v22 }
 0x502   :  { %5160 = vtanh.f32 %v5849_v23 }
 0x503   :  { %5162 = vtanh.f32 %v5851_v25 }
 0x50c   :  { %v5161_v26 = vpop.eup %5160 }
 0x50d   :  { %v5163_v28 = vpop.eup %5162  ;;  %583 = vrot.lane.b32.xlu1 %v5161_v26, %s5548_s22 }
 0x50e   :  { %486 = vrot.lane.b32.xlu0 %v5163_v28, %s5548_s22 }
 0x57f   :  { %v584_v29 = vpop.permute.xlu1 %583 }
 0x580   :  { %v586_v30 = vmul.f32 %v5157_v14, %v584_v29  ;;  %v487_v27 = vpop.permute.xlu0 %486 }
 0x581   :  { %v489_v32 = vmul.f32 %v5159_v16, %v487_v27 }
 0x582   :  { %588 = vrot.lane.b32.xlu0 %v586_v30, %s5549_s0 }
 0x583   :  { %592 = vrot.lane.b32.xlu1 %v489_v32, %s5550_s4 }
 0x5f4   :  { %v589_v33 = vpop.permute.xlu0 %588 }
 0x5f5   :  { %v593_v34 = vpop.permute.xlu1 %592  ;;  %4293 = vmatmul.mubr.msk.f32.vlgmr.msra.gmra.mrb[10].mxu0 %vm288_vm3, %v589_v33 }
 0x5f6   :  { %v595_v35 = vsel %vm288_vm3, %v589_v33, %v593_v34  ;;  %4829 = vmatpush3.bf16.msra.mxu0 %v5746_v31  ;;  %4311 = vmatprep.mubr.msk.f32.mxu0 %vm5546_vm0, %v5547_v1 }
 0x5f7   :  { %4282 = vmatmul.mubr.msk.f32.vlgmr.msra.gmra.mrb[4].mxu1 %vm392_vm4, %v595_v35  ;;  %4830 = vmatprep.subr.bf16.mxu0 %v5545_v0 }
 0x5f8   :  { %4841 = vmatpush3.bf16.msra.mxu1 %v5701_v5  ;;  %4322 = vmatprep.mubr.msk.f32.mxu1 %vm5546_vm0, %v5547_v1 }
 0x5f9   :  { %4842 = vmatprep.subr.bf16.mxu1 %v5545_v0 }
 0x5fa   :  { %4832 = vmatpush3.bf16.msra.mxu0 %v5763_v36 }
 0x5fb   :  { %4833 = vmatprep.subr.bf16.mxu0 %v5545_v0 }
 0x5fc   :  { %4844 = vmatpush3.bf16.msra.mxu1 %v5714_v10 }
 0x5fd   :  { %4845 = vmatprep.subr.bf16.mxu1 %v5545_v0 }
 0x5fe   :  { %4835 = vmatpush3.bf16.msra.mxu0 %v5781_v41 }
 0x5ff   :  { %4836 = vmatprep.subr.bf16.mxu0 %v5545_v0 }
 0x602   :  { %4838 = vmatpush3.bf16.msra.mxu0 %v5800_v46 }
 0x603   :  { %4857 = vmatprep.subr.bf16.mxu0 %v5545_v0 }
 0x6c8   :  { %v761_v38 = vpop.f32.mrb[10].mxu0 }
 0x6c9   :  { %v765_v39 = vadd.f32 %v761_v38, %v241_v37  ;;  %v4294_v40 = vpop.f32.mrb[11].mxu0 }
 0x6ca   :  { %v665_v43 = vpop.f32.mrb[4].mxu1 }
 0x6cb   :  { %5164 = vtanh.f32 %v765_v39  ;;  %v666_v44 = vadd.f32 %v5841_v58, %v665_v43  ;;  %v4283_v45 = vpop.f32.mrb[5].mxu1  ;;  %v3866_v55 = vmul.f32 -1.442695, %v765_v39 }
 0x6cd   :  { %5166 = vtanh.f32 %v666_v44  ;;  %v3864_v56 = vmul.f32 -1.442695, %v666_v44 }
 0x6ce   :  { %5168 = vpow2.f32 %v3866_v55 }
 0x6cf   :  { %5170 = vpow2.f32 %v3864_v56 }
 0x6d5   :  { %v5165_v47 = vpop.eup %5164 }
 0x6d6   :  { %775 = vrot.lane.b32.xlu1 %v5165_v47, %s5548_s22 }
 0x6d7   :  { %v5167_v48 = vpop.eup %5166 }
 0x6d8   :  { %678 = vrot.lane.b32.xlu0 %v5167_v48, %s5548_s22  ;;  %v5169_v50 = vpop.eup %5168 }
 0x6d9   :  { %v5171_v57 = vpop.eup %5170  ;;  %v769_v59 = vadd.f32 1.0, %v5169_v50 }
 0x6da   :  { %v672_v60 = vadd.f32 1.0, %v5171_v57 }
 0x6db   :  { %5172 = vrcp.f32 %v769_v59 }
 0x6dc   :  { %5174 = vrcp.f32 %v672_v60 }
 0x6e5   :  { %v5173_v61 = vpop.eup %5172 }
 0x6e6   :  { %v5175_v2 = vpop.eup %5174  ;;  %v773_v6 = vmul.f32 %v5173_v61, %v5849_v23  ;;  %v246_v23 = vadd.f32 %v5808_v49, %v5729_v12 }
 0x6e7   :  { %v676_v9 = vmul.f32 %v5175_v2, %v5851_v25 }
 0x748   :  { %v776_v62 = vpop.permute.xlu1 %775 }
 0x749   :  { %v778_v63 = vmul.f32 %v5173_v61, %v776_v62 }
 0x74a   :  { %v679_v3 = vpop.permute.xlu0 %678 }
 0x74b   :  { %780 = vrot.lane.b32.xlu1 %v778_v63, %s5548_s22  ;;  %v681_v4 = vmul.f32 %v5175_v2, %v679_v3 }
 0x74d   :  { %683 = vrot.lane.b32.xlu0 %v681_v4, %s5548_s22 }
 0x7bd   :  { %v781_v7 = vpop.permute.xlu1 %780 }
 0x7be   :  { %v5886_v8 = vadd.f32 %v781_v7, %v773_v6 }
 0x7bf   :  { %v684_v11 = vpop.permute.xlu0 %683 }
 0x7c0   :  { %5176 = vtanh.f32 %v5886_v8  ;;  %v5890_v13 = vadd.f32 %v684_v11, %v676_v9 }
 0x7c2   :  { %5178 = vtanh.f32 %v5890_v13 }
 0x7ca   :  { %v5177_v14 = vpop.eup %5176 }
 0x7cb   :  { %786 = vrot.lane.b32.xlu1 %v5177_v14, %s5548_s22 }
 0x7cc   :  { %v5179_v15 = vpop.eup %5178 }
 0x7cd   :  { %689 = vrot.lane.b32.xlu0 %v5179_v15, %s5548_s22 }
 0x83d   :  { %v787_v16 = vpop.permute.xlu1 %786 }
 0x83e   :  { %v789_v17 = vmul.f32 %v5173_v61, %v787_v16 }
 0x83f   :  { %v690_v18 = vpop.permute.xlu0 %689 }
 0x840   :  { %791 = vrot.lane.b32.xlu0 %v789_v17, %s5549_s0  ;;  %v692_v19 = vmul.f32 %v5175_v2, %v690_v18 }
 0x842   :  { %795 = vrot.lane.b32.xlu1 %v692_v19, %s5550_s4 }
 0x8b2   :  { %v792_v20 = vpop.permute.xlu0 %791 }
 0x8b3   :  { %4323 = vmatmul.mubr.msk.f32.vlgmr.msra.gmra.mrb[6].mxu1 %vm288_vm3, %v792_v20 }
 0x8b4   :  { %4847 = vmatpush3.bf16.msra.mxu1 %v5746_v31  ;;  %4341 = vmatprep.mubr.msk.f32.mxu1 %vm5546_vm0, %v5547_v1  ;;  %v796_v21 = vpop.permute.xlu1 %795 }
 0x8b5   :  { %4848 = vmatprep.subr.bf16.mxu1 %v5545_v0  ;;  %v798_v22 = vsel %vm288_vm3, %v792_v20, %v796_v21 }
 0x8b6   :  { %4312 = vmatmul.mubr.msk.f32.vlgmr.msra.gmra.mrb[12].mxu0 %vm392_vm4, %v798_v22 }
 0x8b7   :  { %4859 = vmatpush3.bf16.msra.mxu0 %v5701_v5  ;;  %4352 = vmatprep.mubr.msk.f32.mxu0 %vm5546_vm0, %v5547_v1 }
 0x8b8   :  { %4850 = vmatpush3.bf16.msra.mxu1 %v5763_v36  ;;  %4860 = vmatprep.subr.bf16.mxu0 %v5545_v0 }
 0x8b9   :  { %4851 = vmatprep.subr.bf16.mxu1 %v5545_v0 }
 0x8bb   :  { %4862 = vmatpush3.bf16.msra.mxu0 %v5714_v10 }
 0x8bc   :  { %4853 = vmatpush3.bf16.msra.mxu1 %v5781_v41  ;;  %4863 = vmatprep.subr.bf16.mxu0 %v5545_v0 }
 0x8bd   :  { %4854 = vmatprep.subr.bf16.mxu1 %v5545_v0 }
 0x8c0   :  { %4856 = vmatpush3.bf16.msra.mxu1 %v5800_v46 }
 0x8c1   :  { %4875 = vmatprep.subr.bf16.mxu1 %v5545_v0 }
 0x986   :  { %v964_v24 = vpop.f32.mrb[6].mxu1 }
 0x987   :  { %v968_v25 = vadd.f32 %v964_v24, %v246_v23  ;;  %v4324_v26 = vpop.f32.mrb[7].mxu1 }
 0x989   :  { %5180 = vtanh.f32 %v968_v25  ;;  %v868_v28 = vpop.f32.mrb[12].mxu0  ;;  %v3870_v33 = vmul.f32 -1.442695, %v968_v25 }
 0x98a   :  { %v869_v29 = vadd.f32 %v5841_v58, %v868_v28  ;;  %v4313_v30 = vpop.f32.mrb[13].mxu0 }
 0x98c   :  { %5182 = vtanh.f32 %v869_v29  ;;  %v3868_v34 = vmul.f32 -1.442695, %v869_v29 }
 0x98d   :  { %5184 = vpow2.f32 %v3870_v33 }
 0x98e   :  { %5186 = vpow2.f32 %v3868_v34 }
 0x993   :  { %v5181_v27 = vpop.eup %5180 }
 0x994   :  { %978 = vrot.lane.b32.xlu1 %v5181_v27, %s5548_s22 }
 0x996   :  { %v5183_v32 = vpop.eup %5182 }
 0x997   :  { %881 = vrot.lane.b32.xlu0 %v5183_v32, %s5548_s22  ;;  %v5185_v49 = vpop.eup %5184 }
 0x998   :  { %v972_v35 = vadd.f32 1.0, %v5185_v49  ;;  %v5187_v37 = vpop.eup %5186 }
 0x999   :  { %v875_v38 = vadd.f32 1.0, %v5187_v37 }
 0x99a   :  { %5188 = vrcp.f32 %v972_v35 }
 0x99b   :  { %5190 = vrcp.f32 %v875_v38 }
 0x9a4   :  { %v5189_v39 = vpop.eup %5188 }
 0x9a5   :  { %v5191_v44 = vpop.eup %5190  ;;  %v976_v48 = vmul.f32 %v5189_v39, %v5886_v8  ;;  %v251_v8 = vadd.f32 %v5729_v12, %v5814_v52 }
 0x9a6   :  { %v879_v50 = vmul.f32 %v5191_v44, %v5890_v13 }
 0xa06   :  { %v979_v40 = vpop.permute.xlu1 %978 }
 0xa07   :  { %v981_v43 = vmul.f32 %v5189_v39, %v979_v40 }
 0xa09   :  { %983 = vrot.lane.b32.xlu1 %v981_v43, %s5548_s22  ;;  %v882_v45 = vpop.permute.xlu0 %881 }
 0xa0a   :  { %v884_v47 = vmul.f32 %v5191_v44, %v882_v45 }
 0xa0c   :  { %886 = vrot.lane.b32.xlu0 %v884_v47, %s5548_s22 }
 0xa7b   :  { %v984_v55 = vpop.permute.xlu1 %983 }
 0xa7c   :  { %v5924_v56 = vadd.f32 %v984_v55, %v976_v48  ;;  %v256_v55 = vadd.f32 %v5812_v51, %v5729_v12 }
 0xa7e   :  { %5192 = vtanh.f32 %v5924_v56  ;;  %v887_v57 = vpop.permute.xlu0 %886 }
 0xa7f   :  { %v5928_v59 = vadd.f32 %v887_v57, %v879_v50 }
 0xa81   :  { %5194 = vtanh.f32 %v5928_v59 }
 0xa88   :  { %v5193_v60 = vpop.eup %5192 }
 0xa89   :  { %989 = vrot.lane.b32.xlu1 %v5193_v60, %s5548_s22 }
 0xa8b   :  { %v5195_v61 = vpop.eup %5194 }
 0xa8c   :  { %892 = vrot.lane.b32.xlu0 %v5195_v61, %s5548_s22 }
 0xafb   :  { %v990_v62 = vpop.permute.xlu1 %989 }
 0xafc   :  { %v992_v63 = vmul.f32 %v5189_v39, %v990_v62 }
 0xafe   :  { %994 = vrot.lane.b32.xlu0 %v992_v63, %s5549_s0  ;;  %v893_v2 = vpop.permute.xlu0 %892 }
 0xaff   :  { %v895_v3 = vmul.f32 %v5191_v44, %v893_v2 }
 0xb01   :  { %998 = vrot.lane.b32.xlu1 %v895_v3, %s5550_s4 }
 0xb70   :  { %v995_v4 = vpop.permute.xlu0 %994 }
 0xb71   :  { %4353 = vmatmul.mubr.msk.f32.vlgmr.msra.gmra.mrb[14].mxu0 %vm288_vm3, %v995_v4 }
 0xb72   :  { %4865 = vmatpush3.bf16.msra.mxu0 %v5746_v31  ;;  %4371 = vmatprep.mubr.msk.f32.mxu0 %vm5546_vm0, %v5547_v1 }
 0xb73   :  { %4866 = vmatprep.subr.bf16.mxu0 %v5545_v0  ;;  %v999_v6 = vpop.permute.xlu1 %998 }
 0xb74   :  { %v1001_v7 = vsel %vm288_vm3, %v995_v4, %v999_v6 }
 0xb75   :  { %4342 = vmatmul.mubr.msk.f32.vlgmr.msra.gmra.mrb[8].mxu1 %vm392_vm4, %v1001_v7 }
 0xb76   :  { %4868 = vmatpush3.bf16.msra.mxu0 %v5763_v36  ;;  %4877 = vmatpush3.bf16.msra.mxu1 %v5701_v5 }
 0xb77   :  { %4869 = vmatprep.subr.bf16.mxu0 %v5545_v0  ;;  %4878 = vmatprep.subr.bf16.mxu1 %v5545_v0 }
 0xb78   :  { %4382 = vmatprep.mubr.msk.f32.mxu1 %vm5546_vm0, %v5547_v1 }
 0xb7a   :  { %4871 = vmatpush3.bf16.msra.mxu0 %v5781_v41  ;;  %4880 = vmatpush3.bf16.msra.mxu1 %v5714_v10 }
 0xb7b   :  { %4872 = vmatprep.subr.bf16.mxu0 %v5545_v0  ;;  %4881 = vmatprep.subr.bf16.mxu1 %v5545_v0 }
 0xb7e   :  { %4874 = vmatpush3.bf16.msra.mxu0 %v5800_v46 }
 0xb7f   :  { %4893 = vmatprep.subr.bf16.mxu0 %v5545_v0 }
 0xc44   :  { %v1167_v9 = vpop.f32.mrb[14].mxu0 }
 0xc45   :  { %v1171_v11 = vadd.f32 %v1167_v9, %v251_v8  ;;  %v4354_v13 = vpop.f32.mrb[15].mxu0 }
 0xc47   :  { %5196 = vtanh.f32 %v1171_v11  ;;  %v3874_v19 = vmul.f32 -1.442695, %v1171_v11 }
 0xc48   :  { %v1071_v14 = vpop.f32.mrb[8].mxu1 }
 0xc49   :  { %v1072_v15 = vadd.f32 %v5841_v58, %v1071_v14  ;;  %v4343_v16 = vpop.f32.mrb[9].mxu1 }
 0xc4b   :  { %5198 = vtanh.f32 %v1072_v15  ;;  %v3872_v20 = vmul.f32 -1.442695, %v1072_v15 }
 0xc4c   :  { %5200 = vpow2.f32 %v3874_v19 }
 0xc4d   :  { %5202 = vpow2.f32 %v3872_v20 }
 0xc51   :  { %v5197_v17 = vpop.eup %5196 }
 0xc52   :  { %1181 = vrot.lane.b32.xlu1 %v5197_v17, %s5548_s22 }
 0xc55   :  { %v5199_v18 = vpop.eup %5198 }
 0xc56   :  { %1084 = vrot.lane.b32.xlu0 %v5199_v18, %s5548_s22  ;;  %v5201_v52 = vpop.eup %5200 }
 0xc57   :  { %v1175_v21 = vadd.f32 1.0, %v5201_v52  ;;  %v5203_v22 = vpop.eup %5202 }
 0xc58   :  { %v1078_v23 = vadd.f32 1.0, %v5203_v22 }
 0xc59   :  { %5204 = vrcp.f32 %v1175_v21 }
 0xc5a   :  { %5206 = vrcp.f32 %v1078_v23 }
 0xc63   :  { %v5205_v24 = vpop.eup %5204 }
 0xc64   :  { %v5207_v28 = vpop.eup %5206  ;;  %v1179_v27 = vmul.f32 %v5205_v24, %v5924_v56 }
 0xc65   :  { %v1082_v34 = vmul.f32 %v5207_v28, %v5928_v59 }
 0xcc4   :  { %v1182_v25 = vpop.permute.xlu1 %1181 }
 0xcc5   :  { %v1184_v26 = vmul.f32 %v5205_v24, %v1182_v25 }
 0xcc7   :  { %1186 = vrot.lane.b32.xlu1 %v1184_v26, %s5548_s22 }
 0xcc8   :  { %v1085_v29 = vpop.permute.xlu0 %1084 }
 0xcc9   :  { %v1087_v30 = vmul.f32 %v5207_v28, %v1085_v29 }
 0xccb   :  { %1089 = vrot.lane.b32.xlu0 %v1087_v30, %s5548_s22 }
 0xd39   :  { %v1187_v32 = vpop.permute.xlu1 %1186 }
 0xd3a   :  { %v5962_v33 = vadd.f32 %v1187_v32, %v1179_v27 }
 0xd3c   :  { %5208 = vtanh.f32 %v5962_v33 }
 0xd3d   :  { %v1090_v49 = vpop.permute.xlu0 %1089 }
 0xd3e   :  { %v5966_v35 = vadd.f32 %v1090_v49, %v1082_v34 }
 0xd40   :  { %5210 = vtanh.f32 %v5966_v35 }
 0xd46   :  { %v5209_v37 = vpop.eup %5208 }
 0xd47   :  { %1192 = vrot.lane.b32.xlu1 %v5209_v37, %s5548_s22 }
 0xd4a   :  { %v5211_v38 = vpop.eup %5210 }
 0xd4b   :  { %1095 = vrot.lane.b32.xlu0 %v5211_v38, %s5548_s22 }
 0xdb9   :  { %v1193_v39 = vpop.permute.xlu1 %1192 }
 0xdba   :  { %v1195_v40 = vmul.f32 %v5205_v24, %v1193_v39 }
 0xdbc   :  { %1197 = vrot.lane.b32.xlu0 %v1195_v40, %s5549_s0 }
 0xdbd   :  { %v1096_v43 = vpop.permute.xlu0 %1095 }
 0xdbe   :  { %v1098_v44 = vmul.f32 %v5207_v28, %v1096_v43 }
 0xdc0   :  { %1201 = vrot.lane.b32.xlu1 %v1098_v44, %s5550_s4 }
 0xe2e   :  { %v1198_v45 = vpop.permute.xlu0 %1197 }
 0xe2f   :  { %4383 = vmatmul.mubr.msk.f32.vlgmr.msra.gmra.mrb[10].mxu1 %vm288_vm3, %v1198_v45 }
 0xe30   :  { %4883 = vmatpush3.bf16.msra.mxu1 %v5746_v31  ;;  %4401 = vmatprep.mubr.msk.f32.mxu1 %vm5546_vm0, %v5547_v1 }
 0xe31   :  { %4884 = vmatprep.subr.bf16.mxu1 %v5545_v0 }
 0xe32   :  { %v1202_v47 = vpop.permute.xlu1 %1201 }
 0xe33   :  { %v1204_v48 = vsel %vm288_vm3, %v1198_v45, %v1202_v47 }
 0xe34   :  { %4886 = vmatpush3.bf16.msra.mxu1 %v5763_v36  ;;  %4372 = vmatmul.mubr.msk.f32.vlgmr.msra.gmra.mrb[16].mxu0 %vm392_vm4, %v1204_v48 }
 0xe35   :  { %4887 = vmatprep.subr.bf16.mxu1 %v5545_v0  ;;  %4895 = vmatpush3.bf16.msra.mxu0 %v5701_v5 }
 0xe36   :  { %4412 = vmatprep.mubr.msk.f32.mxu0 %vm5546_vm0, %v5547_v1  ;;  %4896 = vmatprep.subr.bf16.mxu0 %v5545_v0 }
 0xe38   :  { %4889 = vmatpush3.bf16.msra.mxu1 %v5781_v41 }
 0xe39   :  { %4890 = vmatprep.subr.bf16.mxu1 %v5545_v0  ;;  %4898 = vmatpush3.bf16.msra.mxu0 %v5714_v10 }
 0xe3a   :  { %4899 = vmatprep.subr.bf16.mxu0 %v5545_v0 }
 0xe3c   :  { %4892 = vmatpush3.bf16.msra.mxu1 %v5800_v46 }
 0xe3d   :  { %4911 = vmatprep.subr.bf16.mxu1 %v5545_v0 }
 0xf02   :  { %v1370_v56 = vpop.f32.mrb[10].mxu1 }
 0xf03   :  { %v1374_v50 = vadd.f32 %v1370_v56, %v256_v55  ;;  %v4384_v57 = vpop.f32.mrb[11].mxu1 }
 0xf05   :  { %5212 = vtanh.f32 %v1374_v50  ;;  %v3878_v2 = vmul.f32 -1.442695, %v1374_v50 }
 0xf07   :  { %v1274_v59 = vpop.f32.mrb[16].mxu0 }
 0xf08   :  { %v1275_v60 = vadd.f32 %v5841_v58, %v1274_v59  ;;  %v4373_v61 = vpop.f32.mrb[17].mxu0 }
 0xf0a   :  { %5214 = vtanh.f32 %v1275_v60  ;;  %v3876_v3 = vmul.f32 -1.442695, %v1275_v60 }
 0xf0b   :  { %5216 = vpow2.f32 %v3878_v2 }
 0xf0c   :  { %5218 = vpow2.f32 %v3876_v3 }
 0xf0f   :  { %v5213_v62 = vpop.eup %5212 }
 0xf10   :  { %1384 = vrot.lane.b32.xlu1 %v5213_v62, %s5548_s22 }
 0xf14   :  { %v5215_v63 = vpop.eup %5214 }
 0xf15   :  { %1287 = vrot.lane.b32.xlu0 %v5215_v63, %s5548_s22  ;;  %v5217_v51 = vpop.eup %5216 }
 0xf16   :  { %v1378_v4 = vadd.f32 1.0, %v5217_v51  ;;  %v5219_v6 = vpop.eup %5218 }
 0xf17   :  { %v1281_v7 = vadd.f32 1.0, %v5219_v6 }
 0xf18   :  { %5220 = vrcp.f32 %v1378_v4 }
 0xf19   :  { %5222 = vrcp.f32 %v1281_v7 }
 0xf22   :  { %v5221_v8 = vpop.eup %5220 }
 0xf23   :  { %v5223_v13 = vpop.eup %5222  ;;  %v1382_v16 = vmul.f32 %v5221_v8, %v5962_v33 }
 0xf24   :  { %v1285_v19 = vmul.f32 %v5223_v13, %v5966_v35 }
 0xf82   :  { %v1385_v9 = vpop.permute.xlu1 %1384 }
 0xf83   :  { %v1387_v11 = vmul.f32 %v5221_v8, %v1385_v9 }
 0xf85   :  { %1389 = vrot.lane.b32.xlu1 %v1387_v11, %s5548_s22 }
 0xf87   :  { %v1288_v14 = vpop.permute.xlu0 %1287 }
 0xf88   :  { %v1290_v15 = vmul.f32 %v5223_v13, %v1288_v14 }
 0xf8a   :  { %1292 = vrot.lane.b32.xlu0 %v1290_v15, %s5548_s22 }
 0xff7   :  { %v1390_v17 = vpop.permute.xlu1 %1389 }
 0xff8   :  { %v6000_v18 = vadd.f32 %v1390_v17, %v1382_v16 }
 0xffa   :  { %5224 = vtanh.f32 %v6000_v18 }
 0xffc   :  { %v1293_v20 = vpop.permute.xlu0 %1292 }
 0xffd   :  { %v6004_v52 = vadd.f32 %v1293_v20, %v1285_v19 }
 0xfff   :  { %5226 = vtanh.f32 %v6004_v52 }
0x1004   :  { %v5225_v21 = vpop.eup %5224 }
0x1005   :  { %1395 = vrot.lane.b32.xlu1 %v5225_v21, %s5548_s22 }
0x1009   :  { %v5227_v22 = vpop.eup %5226 }
0x100a   :  { %1298 = vrot.lane.b32.xlu0 %v5227_v22, %s5548_s22 }
0x1077   :  { %v1396_v23 = vpop.permute.xlu1 %1395 }
0x1078   :  { %v1398_v24 = vmul.f32 %v5221_v8, %v1396_v23 }
0x107a   :  { %1400 = vrot.lane.b32.xlu0 %v1398_v24, %s5549_s0 }
0x107c   :  { %v1299_v25 = vpop.permute.xlu0 %1298 }
0x107d   :  { %v1301_v26 = vmul.f32 %v5223_v13, %v1299_v25 }
0x107f   :  { %1404 = vrot.lane.b32.xlu1 %v1301_v26, %s5550_s4 }
0x10ec   :  { %v1401_v28 = vpop.permute.xlu0 %1400 }
0x10ed   :  { %4413 = vmatmul.mubr.msk.f32.vlgmr.msra.gmra.mrb[18].mxu0 %vm288_vm3, %v1401_v28 }
0x10ee   :  { %4901 = vmatpush3.bf16.msra.mxu0 %v5746_v31  ;;  %4431 = vmatprep.mubr.msk.f32.mxu0 %vm5546_vm0, %v5547_v1 }
0x10ef   :  { %4902 = vmatprep.subr.bf16.mxu0 %v5545_v0 }
0x10f1   :  { %v1405_v29 = vpop.permute.xlu1 %1404 }
0x10f2   :  { %4904 = vmatpush3.bf16.msra.mxu0 %v5763_v36  ;;  %v1407_v30 = vsel %vm288_vm3, %v1401_v28, %v1405_v29 }
0x10f3   :  { %4905 = vmatprep.subr.bf16.mxu0 %v5545_v0  ;;  %4402 = vmatmul.mubr.msk.f32.vlgmr.msra.gmra.mrb[12].mxu1 %vm392_vm4, %v1407_v30 }
0x10f4   :  { %4913 = vmatpush3.bf16.msra.mxu1 %v5701_v5  ;;  %4442 = vmatprep.mubr.msk.f32.mxu1 %vm5546_vm0, %v5547_v1  ;;  %v261_v5 = vadd.f32 %v5729_v12, %v5818_v54 }
0x10f5   :  { %4914 = vmatprep.subr.bf16.mxu1 %v5545_v0 }
0x10f6   :  { %4907 = vmatpush3.bf16.msra.mxu0 %v5781_v41 }
0x10f7   :  { %4908 = vmatprep.subr.bf16.mxu0 %v5545_v0 }
0x10f8   :  { %4916 = vmatpush3.bf16.msra.mxu1 %v5714_v10 }
0x10f9   :  { %4917 = vmatprep.subr.bf16.mxu1 %v5545_v0 }
0x10fa   :  { %4910 = vmatpush3.bf16.msra.mxu0 %v5800_v46 }
0x10fb   :  { %4464 = vmatprep.subr.mxu0 %v5547_v1 }
0x11c0   :  { %v1573_v27 = vpop.f32.mrb[18].mxu0 }
0x11c1   :  { %v1577_v32 = vadd.f32 %v1573_v27, %v261_v5  ;;  %v4414_v33 = vpop.f32.mrb[19].mxu0 }
0x11c2   :  { %v1941_v33 = vld [vmem:[#allocation9] sm:$0x3f] }
0x11c3   :  { %5228 = vtanh.f32 %v1577_v32  ;;  %v3882_v38 = vmul.f32 -1.442695, %v1577_v32 }
0x11c6   :  { %v1477_v34 = vpop.f32.mrb[12].mxu1 }
0x11c7   :  { %v1478_v49 = vadd.f32 %v5841_v58, %v1477_v34  ;;  %v4403_v35 = vpop.f32.mrb[13].mxu1  ;;  %v1915_v34 = vld [vmem:[%s6595_s8 + $0x20] sm:$0xff] }
0x11c9   :  { %5230 = vtanh.f32 %v1478_v49  ;;  %v3880_v39 = vmul.f32 -1.442695, %v1478_v49  ;;  %v1916_v49 = vld [vmem:[%s6595_s8 + $0x28] sm:$0xff] }
0x11ca   :  { %5232 = vpow2.f32 %v3882_v38  ;;  %v6078_v35 = vpack.c.bf16 %v1916_v49, %v1915_v34  ;;  %v6177_v49 = vld [vmem:[%s6598_s11] ss:$0 sm:$0xff] }
0x11cb   :  { %5234 = vpow2.f32 %v3880_v39 }
0x11cd   :  { %v5229_v37 = vpop.eup %5228 }
0x11ce   :  { %1587 = vrot.lane.b32.xlu1 %v5229_v37, %s5548_s22  ;;  %v1917_v37 = vld [vmem:[%s6595_s8 + $0x30] sm:$0xff] }
0x11d3   :  { %v5231_v10 = vpop.eup %5230 }
0x11d4   :  { %1490 = vrot.lane.b32.xlu0 %v5231_v10, %s5548_s22  ;;  %v5233_v54 = vpop.eup %5232  ;;  %v1918_v10 = vld [vmem:[%s6595_s8 + $0x38] sm:$0xff] }
0x11d5   :  { %v1581_v40 = vadd.f32 1.0, %v5233_v54  ;;  %v5235_v43 = vpop.eup %5234  ;;  %v6091_v39 = vpack.c.bf16 %v1918_v10, %v1917_v37 }
0x11d6   :  { %v1484_v44 = vadd.f32 1.0, %v5235_v43 }
0x11d7   :  { %5236 = vrcp.f32 %v1581_v40 }
0x11d8   :  { %5238 = vrcp.f32 %v1484_v44 }
0x11e1   :  { %v5237_v45 = vpop.eup %5236 }
0x11e2   :  { %v5239_v55 = vpop.eup %5238  ;;  %v1585_v57 = vmul.f32 %v5237_v45, %v6000_v18 }
0x11e3   :  { %v1488_v61 = vmul.f32 %v5239_v55, %v6004_v52 }
0x1240   :  { %v1588_v47 = vpop.permute.xlu1 %1587 }
0x1241   :  { %v1590_v48 = vmul.f32 %v5237_v45, %v1588_v47 }
0x1243   :  { %1592 = vrot.lane.b32.xlu1 %v1590_v48, %s5548_s22 }
0x1246   :  { %v1491_v56 = vpop.permute.xlu0 %1490 }
0x1247   :  { %v1493_v50 = vmul.f32 %v5239_v55, %v1491_v56 }
0x1249   :  { %1495 = vrot.lane.b32.xlu0 %v1493_v50, %s5548_s22 }
0x12b5   :  { %v1593_v59 = vpop.permute.xlu1 %1592 }
0x12b6   :  { %v1595_v60 = vadd.f32 %v1593_v59, %v1585_v57 }
0x12b8   :  { %5240 = vtanh.f32 %v1595_v60 }
0x12bb   :  { %v1496_v62 = vpop.permute.xlu0 %1495 }
0x12bc   :  { %v1498_v63 = vadd.f32 %v1496_v62, %v1488_v61 }
0x12be   :  { %5242 = vtanh.f32 %v1498_v63 }
0x12c2   :  { %v5241_v2 = vpop.eup %5240 }
0x12c3   :  { %1598 = vrot.lane.b32.xlu1 %v5241_v2, %s5548_s22 }
0x12c8   :  { %v5243_v3 = vpop.eup %5242 }
0x12c9   :  { %1501 = vrot.lane.b32.xlu0 %v5243_v3, %s5548_s22 }
0x1335   :  { %v1599_v51 = vpop.permute.xlu1 %1598 }
0x1336   :  { %v1601_v4 = vmul.f32 %v5237_v45, %v1599_v51 }
0x1338   :  { %1603 = vrot.lane.b32.xlu0 %v1601_v4, %s5549_s0 }
0x133b   :  { %v1502_v6 = vpop.permute.xlu0 %1501 }
0x133c   :  { %v1504_v7 = vmul.f32 %v5239_v55, %v1502_v6  ;;  %v3891_v55 = vld [vmem:[#allocation10] ss:$0 sm:$0xff] }
0x133e   :  { %1607 = vrot.lane.b32.xlu1 %v1504_v7, %s5550_s4 }
0x13aa   :  { %v1604_v8 = vpop.permute.xlu0 %1603 }
0x13ab   :  { %4443 = vmatmul.mubr.msk.f32.vlgmr.msra.gmra.mrb[14].mxu1 %vm288_vm3, %v1604_v8 }
0x13ac   :  { %4919 = vmatpush3.bf16.msra.mxu1 %v5746_v31  ;;  %4461 = vmatprep.mubr.msk.f32.mxu1 %vm5546_vm0, %v5547_v1  ;;  %v266_v31 = vadd.f32 %v5816_v53, %v5729_v12 }
0x13ad   :  { %4920 = vmatprep.subr.bf16.mxu1 %v5545_v0 }
0x13b0   :  { %4922 = vmatpush3.bf16.msra.mxu1 %v5763_v36  ;;  %v1608_v9 = vpop.permute.xlu1 %1607 }
0x13b1   :  { %4923 = vmatprep.subr.bf16.mxu1 %v5545_v0  ;;  %v1610_v11 = vsel %vm288_vm3, %v1604_v8, %v1608_v9 }
0x13b2   :  { %4432 = vmatmul.mubr.msk.f32.vlgmr.msra.gmra.mrb[20].mxu0 %vm392_vm4, %v1610_v11 }
0x13b3   :  { %4466 = vmatprep.mubr.msk.f32.mxu0 %vm5546_vm0, %v5547_v1  ;;  %4465 = vmatpush3.msk.msra.mxu0 %vm160_vm1, %v1941_v33 }
0x13b4   :  { %4925 = vmatpush3.bf16.msra.mxu1 %v5781_v41  ;;  %4929 = vmatprep.subr.bf16.mxu0 %v5545_v0 }
0x13b5   :  { %4926 = vmatprep.subr.bf16.mxu1 %v5545_v0 }
0x13b6   :  { %4467 = vmatmul.mubr.msk.f32.vlgmr.msra.gmra.mrb[22].mxu0 %vm135_vm2, %v5787_v42 }
0x13b7   :  { %4931 = vmatpush3.bf16.msra.mxu0 %v6078_v35  ;;  %4477 = vmatprep.mubr.msk.f32.mxu0 %vm5546_vm0, %v5547_v1 }
0x13b8   :  { %4928 = vmatpush3.bf16.msra.mxu1 %v5800_v46  ;;  %4932 = vmatprep.subr.bf16.mxu0 %v5545_v0 }
0x13b9   :  { %4947 = vmatprep.subr.bf16.mxu1 %v5545_v0 }
0x13bb   :  { %4934 = vmatpush3.bf16.msra.mxu0 %v6091_v39 }
0x13bc   :  { %4935 = vmatprep.subr.bf16.mxu0 %v5545_v0 }
0x147e   :  { %v1776_v36 = vpop.f32.mrb[14].mxu1 }
0x147f   :  { %v1780_v13 = vadd.f32 %v1776_v36, %v266_v31  ;;  %v4444_v14 = vpop.f32.mrb[15].mxu1 }
0x1481   :  { %5244 = vtanh.f32 %v1780_v13  ;;  %v3886_v46 = vmul.f32 -1.442695, %v1780_v13 }
0x1485   :  { %v1680_v15 = vpop.f32.mrb[20].mxu0 }
0x1486   :  { %v1681_v16 = vadd.f32 %v5841_v58, %v1680_v15  ;;  %v4433_v17 = vpop.f32.mrb[21].mxu0 }
0x1488   :  { %5246 = vtanh.f32 %v1681_v16  ;;  %v3884_v19 = vmul.f32 -1.442695, %v1681_v16 }
0x1489   :  { %5248 = vpow2.f32 %v3886_v46  ;;  %v1927_v46 = vld [vmem:[%s6597_s10 + $0x8] sm:$0xff] }
0x148a   :  { %5250 = vpow2.f32 %v3884_v19  ;;  %v1928_v19 = vld [vmem:[%s6597_s10 + $0x10] sm:$0xff] }
0x148b   :  { %v5245_v18 = vpop.eup %5244 }
0x148c   :  { %1790 = vrot.lane.b32.xlu1 %v5245_v18, %s5548_s22 }
0x1492   :  { %v5247_v41 = vpop.eup %5246 }
0x1493   :  { %1693 = vrot.lane.b32.xlu0 %v5247_v41, %s5548_s22  ;;  %v5249_v12 = vpop.eup %5248  ;;  %v1926_v41 = vld [vmem:[%s6597_s10] sm:$0xff] }
0x1494   :  { %v1784_v53 = vadd.f32 1.0, %v5249_v12  ;;  %v5251_v20 = vpop.eup %5250 }
0x1495   :  { %v1687_v52 = vadd.f32 1.0, %v5251_v20  ;;  %v1929_v20 = vld [vmem:[%s6597_s10 + $0x18] sm:$0xff] }
0x1496   :  { %5252 = vrcp.f32 %v1784_v53  ;;  %v6127_v53 = vpack.c.bf16 %v1927_v46, %v1926_v41 }
0x1497   :  { %5254 = vrcp.f32 %v1687_v52  ;;  %v6134_v52 = vpack.c.bf16 %v1929_v20, %v1928_v19 }
0x14a0   :  { %v5253_v21 = vpop.eup %5252 }
0x14a1   :  { %v5255_v24 = vpop.eup %5254  ;;  %v1788_v28 = vmul.f32 %v5253_v21, %v1595_v60 }
0x14a2   :  { %v1691_v5 = vmul.f32 %v5255_v24, %v1498_v63 }
0x14fe   :  { %v1791_v22 = vpop.permute.xlu1 %1790 }
0x14ff   :  { %v1793_v23 = vmul.f32 %v5253_v21, %v1791_v22  ;;  %v1930_v22 = vld [vmem:[%s6597_s10 + $0x20] sm:$0xff] }
0x1501   :  { %1795 = vrot.lane.b32.xlu1 %v1793_v23, %s5548_s22  ;;  %v1931_v23 = vld [vmem:[%s6597_s10 + $0x28] sm:$0xff] }
0x1505   :  { %v1694_v25 = vpop.permute.xlu0 %1693 }
0x1506   :  { %v1696_v26 = vmul.f32 %v5255_v24, %v1694_v25  ;;  %v6149_v25 = vpack.c.bf16 %v1931_v23, %v1930_v22 }
0x1508   :  { %1698 = vrot.lane.b32.xlu0 %v1696_v26, %s5548_s22  ;;  %v1933_v26 = vld [vmem:[%s6597_s10 + $0x38] sm:$0xff] }
0x1573   :  { %v1796_v29 = vpop.permute.xlu1 %1795 }
0x1574   :  { %v6065_v30 = vadd.f32 %v1796_v29, %v1788_v28 }
0x1576   :  { %5256 = vtanh.f32 %v6065_v30 }
0x157a   :  { %v1699_v27 = vpop.permute.xlu0 %1698 }
0x157b   :  { %v6068_v32 = vadd.f32 %v1699_v27, %v1691_v5 }
0x157d   :  { %5258 = vtanh.f32 %v6068_v32 }
0x1580   :  { %v5257_v38 = vpop.eup %5256 }
0x1581   :  { %1801 = vrot.lane.b32.xlu1 %v5257_v38, %s5548_s22 }
0x1587   :  { %v5259_v54 = vpop.eup %5258 }
0x1588   :  { %1704 = vrot.lane.b32.xlu0 %v5259_v54, %s5548_s22 }
0x15f3   :  { %v1802_v42 = vpop.permute.xlu1 %1801 }
0x15f4   :  { %v1804_v40 = vmul.f32 %v5253_v21, %v1802_v42 }
0x15f6   :  { %1806 = vrot.lane.b32.xlu0 %v1804_v40, %s5549_s0 }
0x15fa   :  { %v1705_v43 = vpop.permute.xlu0 %1704 }
0x15fb   :  { %v1707_v44 = vmul.f32 %v5255_v24, %v1705_v43  ;;  %v1932_v24 = vld [vmem:[%s6597_s10 + $0x30] sm:$0xff] }
0x15fc   :  { %v6155_v28 = vpack.c.bf16 %v1933_v26, %v1932_v24 }
0x15fd   :  { %1810 = vrot.lane.b32.xlu1 %v1707_v44, %s5550_s4 }
0x1668   :  { %v1807_v45 = vpop.permute.xlu0 %1806 }
0x1669   :  { %4478 = vmatmul.mubr.msk.f32.vlgmr.msra.gmra.mrb[22].mxu0 %vm288_vm3, %v1807_v45 }
0x166a   :  { %4496 = vmatprep.mubr.msk.f32.mxu0 %vm5546_vm0, %v5547_v1  ;;  %4937 = vmatpush3.bf16.msra.mxu0 %v6127_v53 }
0x166b   :  { %4938 = vmatprep.subr.bf16.mxu0 %v5545_v0 }
0x166e   :  { %4940 = vmatpush3.bf16.msra.mxu0 %v6134_v52 }
0x166f   :  { %v1811_v47 = vpop.permute.xlu1 %1810  ;;  %4941 = vmatprep.subr.bf16.mxu0 %v5545_v0 }
0x1670   :  { %v1813_v48 = vsel %vm288_vm3, %v1807_v45, %v1811_v47 }
0x1671   :  { %4462 = vmatmul.mubr.msk.f32.vlgmr.msra.gmra.mrb[16].mxu1 %vm392_vm4, %v1813_v48 }
0x1672   :  { %4515 = vmatprep.mubr.msk.f32.mxu1 %vm5546_vm0, %v5547_v1  ;;  %4943 = vmatpush3.bf16.msra.mxu0 %v6149_v25 }
0x1673   :  { %4944 = vmatprep.subr.bf16.mxu0 %v5545_v0 }
0x1676   :  { %4946 = vmatpush3.bf16.msra.mxu0 %v6155_v28 }
0x1677   :  { %4959 = vmatprep.subr.bf16.mxu0 %v5545_v0 }
0x173c   :  { %v2090_v56 = vpop.f32.mrb[22].mxu0 }
0x173d   :  { %v5123_v50 = vadd.f32 %v3891_v55, %v2090_v56  ;;  %v4479_v57 = vpop.f32.mrb[23].mxu0 }
0x173e   :  { %v1912_v57 = vld [vmem:[%s6595_s8 + $0x8] sm:$0xff] }
0x173f   :  { %5260 = vtanh.f32 %v5123_v50  ;;  %v3895_v2 = vmul.f32 -1.442695, %v5123_v50  ;;  %v1911_v50 = vld [vmem:[%s6595_s8] sm:$0xff] }
0x1744   :  { %v1883_v59 = vpop.f32.mrb[16].mxu1 }
0x1745   :  { %v1884_v60 = vadd.f32 %v5841_v58, %v1883_v59  ;;  %v4463_v61 = vpop.f32.mrb[17].mxu1  ;;  %v1913_v59 = vld [vmem:[%s6595_s8 + $0x10] sm:$0xff] }
0x1746   :  { %v1914_v61 = vld [vmem:[%s6595_s8 + $0x18] sm:$0xff] }
0x1747   :  { %5262 = vtanh.f32 %v1884_v60  ;;  %v3888_v3 = vmul.f32 -1.442695, %v1884_v60  ;;  %v6194_v60 = vpack.c.bf16 %v1912_v57, %v1911_v50 }
0x1748   :  { %5264 = vpow2.f32 %v3895_v2 }
0x1749   :  { %v5261_v62 = vpop.eup %5260  ;;  %5266 = vpow2.f32 %v3888_v3  ;;  %4949 = vmatpush3.bf16.msra.mxu1 %v6194_v60 }
0x174a   :  { %2104 = vrot.lane.b32.xlu1 %v5261_v62, %s5548_s22  ;;  %v6200_v62 = vpack.c.bf16 %v1914_v61, %v1913_v59  ;;  %4950 = vmatprep.subr.bf16.mxu1 %v5545_v0 }
0x174d   :  { %4952 = vmatpush3.bf16.msra.mxu1 %v6200_v62 }
0x174e   :  { %4953 = vmatprep.subr.bf16.mxu1 %v5545_v0 }
0x1751   :  { %v5263_v63 = vpop.eup %5262  ;;  %4955 = vmatpush3.bf16.msra.mxu1 %v6078_v35 }
0x1752   :  { %1896 = vrot.lane.b32.xlu0 %v5263_v63, %s5548_s22  ;;  %v5265_v51 = vpop.eup %5264  ;;  %4956 = vmatprep.subr.bf16.mxu1 %v5545_v0 }
0x1753   :  { %v2098_v4 = vadd.f32 1.0, %v5265_v51  ;;  %v5267_v6 = vpop.eup %5266 }
0x1754   :  { %v1890_v7 = vadd.f32 1.0, %v5267_v6 }
0x1755   :  { %5268 = vrcp.f32 %v2098_v4  ;;  %4958 = vmatpush3.bf16.msra.mxu1 %v6091_v39 }
0x1756   :  { %5270 = vrcp.f32 %v1890_v7  ;;  %4971 = vmatprep.subr.bf16.mxu1 %v5545_v0  ;;  %v6230_v7 = vld [vmem:[%s6596_s9] ss:$0 sm:$0xff] }
0x175f   :  { %v5269_v8 = vpop.eup %5268 }
0x1760   :  { %v5271_v11 = vpop.eup %5270  ;;  %v2102_v13 = vmul.f32 %v5269_v8, %v6065_v30 }
0x1761   :  { %v1894_v16 = vmul.f32 %v5271_v11, %v6068_v32 }
0x17bc   :  { %v2105_v58 = vpop.permute.xlu1 %2104 }
0x17bd   :  { %v2107_v9 = vmul.f32 %v5269_v8, %v2105_v58 }
0x17bf   :  { %2109 = vrot.lane.b32.xlu1 %v2107_v9, %s5548_s22 }
0x17c4   :  { %v1897_v31 = vpop.permute.xlu0 %1896 }
0x17c5   :  { %v1899_v36 = vmul.f32 %v5271_v11, %v1897_v31 }
0x17c7   :  { %1901 = vrot.lane.b32.xlu0 %v1899_v36, %s5548_s22 }
0x1831   :  { %v2110_v14 = vpop.permute.xlu1 %2109 }
0x1832   :  { %v6114_v15 = vadd.f32 %v2110_v14, %v2102_v13 }
0x1834   :  { %5272 = vtanh.f32 %v6114_v15 }
0x1839   :  { %v1902_v17 = vpop.permute.xlu0 %1901 }
0x183a   :  { %v1904_v18 = vadd.f32 %v1902_v17, %v1894_v16 }
0x183c   :  { %5274 = vtanh.f32 %v1904_v18 }
0x183e   :  { %v5273_v12 = vpop.eup %5272 }
0x183f   :  { %2115 = vrot.lane.b32.xlu1 %v5273_v12, %s5548_s22 }
0x1846   :  { %v5275_v21 = vpop.eup %5274 }
0x1847   :  { %1907 = vrot.lane.b32.xlu0 %v5275_v21, %s5548_s22 }
0x18b1   :  { %v2116_v29 = vpop.permute.xlu1 %2115 }
0x18b2   :  { %v2118_v30 = vmul.f32 %v5269_v8, %v2116_v29 }
0x18b4   :  { %2120 = vrot.lane.b32.xlu0 %v2118_v30, %s5549_s0 }
0x18b9   :  { %v1908_v5 = vpop.permute.xlu0 %1907 }
0x18ba   :  { %v1910_v27 = vmul.f32 %v5271_v11, %v1908_v5 }
0x18bc   :  { %2124 = vrot.lane.b32.xlu1 %v1910_v27, %s5550_s4 }
0x1926   :  { %v2121_v32 = vpop.permute.xlu0 %2120 }
0x192e   :  { %v2125_v33 = vpop.permute.xlu1 %2124 }
0x192f   :  { %v2127_v34 = vsel %vm288_vm3, %v2121_v32, %v2125_v33 }
0x1930   :  { %4497 = vmatmul.mubr.msk.f32.vlgmr.msra.gmra.mrb[24].mxu0 %vm392_vm4, %v2127_v34 }
0x1931   :  { %4961 = vmatpush3.bf16.msra.mxu0 %v6127_v53  ;;  %4534 = vmatprep.mubr.msk.f32.mxu0 %vm5546_vm0, %v5547_v1 }
0x1932   :  { %4962 = vmatprep.subr.bf16.mxu0 %v5545_v0 }
0x1935   :  { %4964 = vmatpush3.bf16.msra.mxu0 %v6134_v52 }
0x1936   :  { %4965 = vmatprep.subr.bf16.mxu0 %v5545_v0 }
0x1939   :  { %4967 = vmatpush3.bf16.msra.mxu0 %v6149_v25 }
0x193a   :  { %4968 = vmatprep.subr.bf16.mxu0 %v5545_v0 }
0x193d   :  { %4970 = vmatpush3.bf16.msra.mxu0 %v6155_v28 }
0x193e   :  { %4983 = vmatprep.subr.bf16.mxu0 %v5545_v0 }
0x1a03   :  { %v2197_v37 = vpop.f32.mrb[24].mxu0 }
0x1a04   :  { %v2198_v10 = vadd.f32 %v6177_v49, %v2197_v37  ;;  %v4498_v38 = vpop.f32.mrb[25].mxu0 }
0x1a06   :  { %5276 = vtanh.f32 %v2198_v10  ;;  %v3897_v42 = vmul.f32 -1.442695, %v2198_v10 }
0x1a08   :  { %5278 = vpow2.f32 %v3897_v42 }
0x1a10   :  { %v5277_v54 = vpop.eup %5276 }
0x1a11   :  { %2210 = vrot.lane.b32.xlu0 %v5277_v54, %s5548_s22 }
0x1a12   :  { %v5279_v40 = vpop.eup %5278 }
0x1a13   :  { %v2204_v43 = vadd.f32 1.0, %v5279_v40 }
0x1a15   :  { %5280 = vrcp.f32 %v2204_v43 }
0x1a1f   :  { %v5281_v44 = vpop.eup %5280 }
0x1a20   :  { %v2208_v48 = vmul.f32 %v5281_v44, %v1904_v18 }
0x1a83   :  { %v2211_v45 = vpop.permute.xlu0 %2210 }
0x1a84   :  { %v2213_v47 = vmul.f32 %v5281_v44, %v2211_v45 }
0x1a86   :  { %2215 = vrot.lane.b32.xlu1 %v2213_v47, %s5548_s22 }
0x1af8   :  { %v2216_v55 = vpop.permute.xlu1 %2215 }
0x1af9   :  { %v6182_v56 = vadd.f32 %v2216_v55, %v2208_v48 }
0x1afb   :  { %5282 = vtanh.f32 %v6182_v56 }
0x1b05   :  { %v5283_v63 = vpop.eup %5282 }
0x1b06   :  { %2221 = vrot.lane.b32.xlu0 %v5283_v63, %s5548_s22 }
0x1b0a   :  { %2229 = vrot.lane.b32.xlu0 %v2118_v30, %s5550_s4 }
0x1b78   :  { %v2222_v2 = vpop.permute.xlu0 %2221 }
0x1b79   :  { %v2224_v3 = vmul.f32 %v5281_v44, %v2222_v2 }
0x1b7b   :  { %2226 = vrot.lane.b32.xlu1 %v2224_v3, %s5549_s0 }
0x1b7c   :  { %v2230_v51 = vpop.permute.xlu0 %2229 }
0x1bed   :  { %v6212_v4 = vpop.permute.xlu1 %2226 }
0x1bee   :  { %v2232_v6 = vsel %vm288_vm3, %v6212_v4, %v2230_v51 }
0x1bef   :  { %4516 = vmatmul.mubr.msk.f32.vlgmr.msra.gmra.mrb[18].mxu1 %vm392_vm4, %v2232_v6 }
0x1bf0   :  { %4973 = vmatpush3.bf16.msra.mxu1 %v6194_v60  ;;  %4553 = vmatprep.mubr.msk.f32.mxu1 %vm5546_vm0, %v5547_v1 }
0x1bf1   :  { %4974 = vmatprep.subr.bf16.mxu1 %v5545_v0 }
0x1bf4   :  { %4976 = vmatpush3.bf16.msra.mxu1 %v6200_v62 }
0x1bf5   :  { %4977 = vmatprep.subr.bf16.mxu1 %v5545_v0 }
0x1bf8   :  { %4979 = vmatpush3.bf16.msra.mxu1 %v6078_v35 }
0x1bf9   :  { %4980 = vmatprep.subr.bf16.mxu1 %v5545_v0 }
0x1bfc   :  { %4982 = vmatpush3.bf16.msra.mxu1 %v6091_v39 }
0x1bfd   :  { %4995 = vmatprep.subr.bf16.mxu1 %v5545_v0 }
0x1cc2   :  { %v2302_v8 = vpop.f32.mrb[18].mxu1 }
0x1cc3   :  { %v2303_v58 = vadd.f32 %v6230_v7, %v2302_v8  ;;  %v4517_v9 = vpop.f32.mrb[19].mxu1 }
0x1cc5   :  { %5284 = vtanh.f32 %v2303_v58  ;;  %v3899_v31 = vmul.f32 -1.442695, %v2303_v58 }
0x1cc7   :  { %5286 = vpow2.f32 %v3899_v31 }
0x1ccf   :  { %v5285_v11 = vpop.eup %5284 }
0x1cd0   :  { %2315 = vrot.lane.b32.xlu1 %v5285_v11, %s5548_s22 }
0x1cd1   :  { %v5287_v36 = vpop.eup %5286 }
0x1cd2   :  { %v2309_v13 = vadd.f32 1.0, %v5287_v36 }
0x1cd4   :  { %5288 = vrcp.f32 %v2309_v13 }
0x1cde   :  { %v5289_v14 = vpop.eup %5288 }
0x1cdf   :  { %v2313_v18 = vmul.f32 %v5289_v14, %v6114_v15 }
0x1d42   :  { %v2316_v16 = vpop.permute.xlu1 %2315 }
0x1d43   :  { %v2318_v17 = vmul.f32 %v5289_v14, %v2316_v16 }
0x1d45   :  { %2320 = vrot.lane.b32.xlu0 %v2318_v17, %s5548_s22 }
0x1db7   :  { %v2321_v41 = vpop.permute.xlu0 %2320 }
0x1db8   :  { %v6236_v46 = vadd.f32 %v2321_v41, %v2313_v18 }
0x1dba   :  { %5290 = vtanh.f32 %v6236_v46 }
0x1dc4   :  { %v5291_v19 = vpop.eup %5290 }
0x1dc5   :  { %2326 = vrot.lane.b32.xlu1 %v5291_v19, %s5548_s22 }
0x1dc9   :  { %2334 = vrot.lane.b32.xlu1 %v2224_v3, %s5550_s4 }
0x1e37   :  { %v2327_v12 = vpop.permute.xlu1 %2326 }
0x1e38   :  { %v2329_v20 = vmul.f32 %v5289_v14, %v2327_v12 }
0x1e3a   :  { %2331 = vrot.lane.b32.xlu0 %v2329_v20, %s5549_s0 }
0x1e3b   :  { %v2335_v21 = vpop.permute.xlu1 %2334 }
0x1eac   :  { %v2332_v22 = vpop.permute.xlu0 %2331 }
0x1ead   :  { %v2337_v23 = vsel %vm288_vm3, %v2332_v22, %v2335_v21 }
0x1eae   :  { %4535 = vmatmul.mubr.msk.f32.vlgmr.msra.gmra.mrb[26].mxu0 %vm392_vm4, %v2337_v23 }
0x1eaf   :  { %4985 = vmatpush3.bf16.msra.mxu0 %v6127_v53  ;;  %4572 = vmatprep.mubr.msk.f32.mxu0 %vm5546_vm0, %v5547_v1 }
0x1eb0   :  { %4986 = vmatprep.subr.bf16.mxu0 %v5545_v0 }
0x1eb3   :  { %4988 = vmatpush3.bf16.msra.mxu0 %v6134_v52 }
0x1eb4   :  { %4989 = vmatprep.subr.bf16.mxu0 %v5545_v0 }
0x1eb7   :  { %4991 = vmatpush3.bf16.msra.mxu0 %v6149_v25 }
0x1eb8   :  { %4992 = vmatprep.subr.bf16.mxu0 %v5545_v0 }
0x1ebb   :  { %4994 = vmatpush3.bf16.msra.mxu0 %v6155_v28 }
0x1ebc   :  { %5007 = vmatprep.subr.bf16.mxu0 %v5545_v0 }
0x1f81   :  { %v2407_v15 = vpop.f32.mrb[26].mxu0 }
0x1f82   :  { %v2408_v24 = vadd.f32 %v6177_v49, %v2407_v15  ;;  %v4536_v26 = vpop.f32.mrb[27].mxu0 }
0x1f84   :  { %5292 = vtanh.f32 %v2408_v24  ;;  %v3901_v30 = vmul.f32 -1.442695, %v2408_v24 }
0x1f86   :  { %5294 = vpow2.f32 %v3901_v30 }
0x1f8e   :  { %v5293_v29 = vpop.eup %5292 }
0x1f8f   :  { %2420 = vrot.lane.b32.xlu0 %v5293_v29, %s5548_s22 }
0x1f90   :  { %v5295_v5 = vpop.eup %5294 }
0x1f91   :  { %v2414_v27 = vadd.f32 1.0, %v5295_v5 }
0x1f93   :  { %5296 = vrcp.f32 %v2414_v27 }
0x1f9d   :  { %v5297_v32 = vpop.eup %5296 }
0x1f9e   :  { %v2418_v37 = vmul.f32 %v5297_v32, %v6182_v56 }
0x2001   :  { %v2421_v33 = vpop.permute.xlu0 %2420 }
0x2002   :  { %v2423_v34 = vmul.f32 %v5297_v32, %v2421_v33 }
0x2004   :  { %2425 = vrot.lane.b32.xlu1 %v2423_v34, %s5548_s22 }
0x2076   :  { %v2426_v10 = vpop.permute.xlu1 %2425 }
0x2077   :  { %v6258_v38 = vadd.f32 %v2426_v10, %v2418_v37 }
0x2079   :  { %5298 = vtanh.f32 %v6258_v38 }
0x2083   :  { %v5299_v54 = vpop.eup %5298 }
0x2084   :  { %2431 = vrot.lane.b32.xlu0 %v5299_v54, %s5548_s22 }
0x2088   :  { %2439 = vrot.lane.b32.xlu0 %v2329_v20, %s5550_s4 }
0x20f6   :  { %v2432_v42 = vpop.permute.xlu0 %2431 }
0x20f7   :  { %v2434_v40 = vmul.f32 %v5297_v32, %v2432_v42 }
0x20f9   :  { %2436 = vrot.lane.b32.xlu1 %v2434_v40, %s5549_s0 }
0x20fa   :  { %v2440_v43 = vpop.permute.xlu0 %2439 }
0x216b   :  { %v6264_v44 = vpop.permute.xlu1 %2436 }
0x216c   :  { %v2442_v45 = vsel %vm288_vm3, %v6264_v44, %v2440_v43 }
0x216d   :  { %4554 = vmatmul.mubr.msk.f32.vlgmr.msra.gmra.mrb[20].mxu1 %vm392_vm4, %v2442_v45 }
0x216e   :  { %4997 = vmatpush3.bf16.msra.mxu1 %v6194_v60  ;;  %4591 = vmatprep.mubr.msk.f32.mxu1 %vm5546_vm0, %v5547_v1 }
0x216f   :  { %4998 = vmatprep.subr.bf16.mxu1 %v5545_v0 }
0x2172   :  { %5000 = vmatpush3.bf16.msra.mxu1 %v6200_v62 }
0x2173   :  { %5001 = vmatprep.subr.bf16.mxu1 %v5545_v0 }
0x2176   :  { %5003 = vmatpush3.bf16.msra.mxu1 %v6078_v35 }
0x2177   :  { %5004 = vmatprep.subr.bf16.mxu1 %v5545_v0 }
0x217a   :  { %5006 = vmatpush3.bf16.msra.mxu1 %v6091_v39 }
0x217b   :  { %5019 = vmatprep.subr.bf16.mxu1 %v5545_v0 }
0x2240   :  { %v2512_v47 = vpop.f32.mrb[20].mxu1 }
0x2241   :  { %v2513_v48 = vadd.f32 %v6230_v7, %v2512_v47  ;;  %v4555_v55 = vpop.f32.mrb[21].mxu1 }
0x2243   :  { %5300 = vtanh.f32 %v2513_v48  ;;  %v3903_v50 = vmul.f32 -1.442695, %v2513_v48 }
0x2245   :  { %5302 = vpow2.f32 %v3903_v50 }
0x224d   :  { %v5301_v56 = vpop.eup %5300 }
0x224e   :  { %2525 = vrot.lane.b32.xlu1 %v5301_v56, %s5548_s22 }
0x224f   :  { %v5303_v57 = vpop.eup %5302 }
0x2250   :  { %v2519_v59 = vadd.f32 1.0, %v5303_v57 }
0x2252   :  { %5304 = vrcp.f32 %v2519_v59 }
0x225c   :  { %v5305_v61 = vpop.eup %5304 }
0x225d   :  { %v2523_v3 = vmul.f32 %v5305_v61, %v6236_v46 }
0x22c0   :  { %v2526_v63 = vpop.permute.xlu1 %2525 }
0x22c1   :  { %v2528_v2 = vmul.f32 %v5305_v61, %v2526_v63 }
0x22c3   :  { %2530 = vrot.lane.b32.xlu0 %v2528_v2, %s5548_s22 }
0x2335   :  { %v2531_v51 = vpop.permute.xlu0 %2530 }
0x2336   :  { %v6283_v6 = vadd.f32 %v2531_v51, %v2523_v3 }
0x2338   :  { %5306 = vtanh.f32 %v6283_v6 }
0x2342   :  { %v5307_v8 = vpop.eup %5306 }
0x2343   :  { %2536 = vrot.lane.b32.xlu1 %v5307_v8, %s5548_s22 }
0x2347   :  { %2544 = vrot.lane.b32.xlu1 %v2434_v40, %s5550_s4 }
0x23b5   :  { %v2537_v58 = vpop.permute.xlu1 %2536 }
0x23b6   :  { %v2539_v9 = vmul.f32 %v5305_v61, %v2537_v58 }
0x23b8   :  { %2541 = vrot.lane.b32.xlu0 %v2539_v9, %s5549_s0 }
0x23b9   :  { %v2545_v11 = vpop.permute.xlu1 %2544 }
0x242a   :  { %v2542_v31 = vpop.permute.xlu0 %2541 }
0x242b   :  { %v2547_v36 = vsel %vm288_vm3, %v2542_v31, %v2545_v11 }
0x242c   :  { %4573 = vmatmul.mubr.msk.f32.vlgmr.msra.gmra.mrb[28].mxu0 %vm392_vm4, %v2547_v36 }
0x242d   :  { %5009 = vmatpush3.bf16.msra.mxu0 %v6127_v53  ;;  %4610 = vmatprep.mubr.msk.f32.mxu0 %vm5546_vm0, %v5547_v1 }
0x242e   :  { %5010 = vmatprep.subr.bf16.mxu0 %v5545_v0 }
0x2431   :  { %5012 = vmatpush3.bf16.msra.mxu0 %v6134_v52 }
0x2432   :  { %5013 = vmatprep.subr.bf16.mxu0 %v5545_v0 }
0x2435   :  { %5015 = vmatpush3.bf16.msra.mxu0 %v6149_v25 }
0x2436   :  { %5016 = vmatprep.subr.bf16.mxu0 %v5545_v0 }
0x2439   :  { %5018 = vmatpush3.bf16.msra.mxu0 %v6155_v28 }
0x243a   :  { %5031 = vmatprep.subr.bf16.mxu0 %v5545_v0 }
0x24ff   :  { %v2617_v13 = vpop.f32.mrb[28].mxu0 }
0x2500   :  { %v2618_v14 = vadd.f32 %v6177_v49, %v2617_v13  ;;  %v4574_v16 = vpop.f32.mrb[29].mxu0 }
0x2502   :  { %5308 = vtanh.f32 %v2618_v14  ;;  %v3905_v18 = vmul.f32 -1.442695, %v2618_v14 }
0x2504   :  { %5310 = vpow2.f32 %v3905_v18 }
0x250c   :  { %v5309_v17 = vpop.eup %5308 }
0x250d   :  { %2630 = vrot.lane.b32.xlu0 %v5309_v17, %s5548_s22 }
0x250e   :  { %v5311_v41 = vpop.eup %5310 }
0x250f   :  { %v2624_v46 = vadd.f32 1.0, %v5311_v41 }
0x2511   :  { %5312 = vrcp.f32 %v2624_v46 }
0x251b   :  { %v5313_v19 = vpop.eup %5312 }
0x251c   :  { %v2628_v21 = vmul.f32 %v5313_v19, %v6258_v38 }
0x257f   :  { %v2631_v12 = vpop.permute.xlu0 %2630 }
0x2580   :  { %v2633_v20 = vmul.f32 %v5313_v19, %v2631_v12 }
0x2582   :  { %2635 = vrot.lane.b32.xlu1 %v2633_v20, %s5548_s22 }
0x25f4   :  { %v2636_v22 = vpop.permute.xlu1 %2635 }
0x25f5   :  { %v6305_v23 = vadd.f32 %v2636_v22, %v2628_v21 }
0x25f7   :  { %5314 = vtanh.f32 %v6305_v23 }
0x2601   :  { %v5315_v15 = vpop.eup %5314 }
0x2602   :  { %2641 = vrot.lane.b32.xlu0 %v5315_v15, %s5548_s22 }
0x2606   :  { %2649 = vrot.lane.b32.xlu0 %v2539_v9, %s5550_s4 }
0x2674   :  { %v2642_v24 = vpop.permute.xlu0 %2641 }
0x2675   :  { %v2644_v26 = vmul.f32 %v5313_v19, %v2642_v24 }
0x2677   :  { %2646 = vrot.lane.b32.xlu1 %v2644_v26, %s5549_s0 }
0x2678   :  { %v2650_v29 = vpop.permute.xlu0 %2649 }
0x26e9   :  { %v6311_v30 = vpop.permute.xlu1 %2646 }
0x26ea   :  { %v2652_v5 = vsel %vm288_vm3, %v6311_v30, %v2650_v29 }
0x26eb   :  { %4592 = vmatmul.mubr.msk.f32.vlgmr.msra.gmra.mrb[22].mxu1 %vm392_vm4, %v2652_v5 }
0x26ec   :  { %5021 = vmatpush3.bf16.msra.mxu1 %v6194_v60  ;;  %4629 = vmatprep.mubr.msk.f32.mxu1 %vm5546_vm0, %v5547_v1 }
0x26ed   :  { %5022 = vmatprep.subr.bf16.mxu1 %v5545_v0 }
0x26f0   :  { %5024 = vmatpush3.bf16.msra.mxu1 %v6200_v62 }
0x26f1   :  { %5025 = vmatprep.subr.bf16.mxu1 %v5545_v0 }
0x26f4   :  { %5027 = vmatpush3.bf16.msra.mxu1 %v6078_v35 }
0x26f5   :  { %5028 = vmatprep.subr.bf16.mxu1 %v5545_v0 }
0x26f8   :  { %5030 = vmatpush3.bf16.msra.mxu1 %v6091_v39 }
0x26f9   :  { %5043 = vmatprep.subr.bf16.mxu1 %v5545_v0 }
0x27be   :  { %v2722_v27 = vpop.f32.mrb[22].mxu1 }
0x27bf   :  { %v2723_v32 = vadd.f32 %v6230_v7, %v2722_v27  ;;  %v4593_v33 = vpop.f32.mrb[23].mxu1 }
0x27c1   :  { %5316 = vtanh.f32 %v2723_v32  ;;  %v3907_v37 = vmul.f32 -1.442695, %v2723_v32 }
0x27c3   :  { %5318 = vpow2.f32 %v3907_v37 }
0x27cb   :  { %v5317_v34 = vpop.eup %5316 }
0x27cc   :  { %2735 = vrot.lane.b32.xlu1 %v5317_v34, %s5548_s22 }
0x27cd   :  { %v5319_v10 = vpop.eup %5318 }
0x27ce   :  { %v2729_v38 = vadd.f32 1.0, %v5319_v10 }
0x27d0   :  { %5320 = vrcp.f32 %v2729_v38 }
0x27da   :  { %v5321_v54 = vpop.eup %5320 }
0x27db   :  { %v2733_v43 = vmul.f32 %v5321_v54, %v6283_v6 }
0x283e   :  { %v2736_v42 = vpop.permute.xlu1 %2735 }
0x283f   :  { %v2738_v40 = vmul.f32 %v5321_v54, %v2736_v42 }
0x2841   :  { %2740 = vrot.lane.b32.xlu0 %v2738_v40, %s5548_s22 }
0x28b3   :  { %v2741_v45 = vpop.permute.xlu0 %2740 }
0x28b4   :  { %v6330_v47 = vadd.f32 %v2741_v45, %v2733_v43 }
0x28b6   :  { %5322 = vtanh.f32 %v6330_v47 }
0x28c0   :  { %v5323_v48 = vpop.eup %5322 }
0x28c1   :  { %2746 = vrot.lane.b32.xlu1 %v5323_v48, %s5548_s22 }
0x28c5   :  { %2754 = vrot.lane.b32.xlu1 %v2644_v26, %s5550_s4 }
0x2933   :  { %v2747_v55 = vpop.permute.xlu1 %2746 }
0x2934   :  { %v2749_v56 = vmul.f32 %v5321_v54, %v2747_v55 }
0x2936   :  { %2751 = vrot.lane.b32.xlu0 %v2749_v56, %s5549_s0 }
0x2937   :  { %v2755_v50 = vpop.permute.xlu1 %2754 }
0x29a8   :  { %v2752_v57 = vpop.permute.xlu0 %2751 }
0x29a9   :  { %v2757_v59 = vsel %vm288_vm3, %v2752_v57, %v2755_v50 }
0x29aa   :  { %4611 = vmatmul.mubr.msk.f32.vlgmr.msra.gmra.mrb[30].mxu0 %vm392_vm4, %v2757_v59 }
0x29ab   :  { %5033 = vmatpush3.bf16.msra.mxu0 %v6127_v53  ;;  %4648 = vmatprep.mubr.msk.f32.mxu0 %vm5546_vm0, %v5547_v1 }
0x29ac   :  { %5034 = vmatprep.subr.bf16.mxu0 %v5545_v0 }
0x29af   :  { %5036 = vmatpush3.bf16.msra.mxu0 %v6134_v52 }
0x29b0   :  { %5037 = vmatprep.subr.bf16.mxu0 %v5545_v0 }
0x29b3   :  { %5039 = vmatpush3.bf16.msra.mxu0 %v6149_v25 }
0x29b4   :  { %5040 = vmatprep.subr.bf16.mxu0 %v5545_v0 }
0x29b7   :  { %5042 = vmatpush3.bf16.msra.mxu0 %v6155_v28 }
0x29b8   :  { %5055 = vmatprep.subr.bf16.mxu0 %v5545_v0 }
0x2a7d   :  { %v2827_v61 = vpop.f32.mrb[30].mxu0 }
0x2a7e   :  { %v2828_v63 = vadd.f32 %v6177_v49, %v2827_v61  ;;  %v4612_v2 = vpop.f32.mrb[31].mxu0 }
0x2a80   :  { %5324 = vtanh.f32 %v2828_v63  ;;  %v3909_v51 = vmul.f32 -1.442695, %v2828_v63 }
0x2a82   :  { %5326 = vpow2.f32 %v3909_v51 }
0x2a8a   :  { %v5325_v3 = vpop.eup %5324 }
0x2a8b   :  { %2840 = vrot.lane.b32.xlu0 %v5325_v3, %s5548_s22 }
0x2a8c   :  { %v5327_v6 = vpop.eup %5326 }
0x2a8d   :  { %v2834_v8 = vadd.f32 1.0, %v5327_v6 }
0x2a8f   :  { %5328 = vrcp.f32 %v2834_v8 }
0x2a99   :  { %v5329_v58 = vpop.eup %5328 }
0x2a9a   :  { %v2838_v31 = vmul.f32 %v5329_v58, %v6305_v23 }
0x2afd   :  { %v2841_v9 = vpop.permute.xlu0 %2840 }
0x2afe   :  { %v2843_v11 = vmul.f32 %v5329_v58, %v2841_v9 }
0x2b00   :  { %2845 = vrot.lane.b32.xlu1 %v2843_v11, %s5548_s22 }
0x2b72   :  { %v2846_v36 = vpop.permute.xlu1 %2845 }
0x2b73   :  { %v6352_v13 = vadd.f32 %v2846_v36, %v2838_v31 }
0x2b75   :  { %5330 = vtanh.f32 %v6352_v13 }
0x2b7f   :  { %v5331_v14 = vpop.eup %5330 }
0x2b80   :  { %2851 = vrot.lane.b32.xlu0 %v5331_v14, %s5548_s22 }
0x2b84   :  { %2859 = vrot.lane.b32.xlu0 %v2749_v56, %s5550_s4 }
0x2bf2   :  { %v2852_v16 = vpop.permute.xlu0 %2851 }
0x2bf3   :  { %v2854_v17 = vmul.f32 %v5329_v58, %v2852_v16 }
0x2bf5   :  { %2856 = vrot.lane.b32.xlu1 %v2854_v17, %s5549_s0 }
0x2bf6   :  { %v2860_v18 = vpop.permute.xlu0 %2859 }
0x2c67   :  { %v6358_v41 = vpop.permute.xlu1 %2856 }
0x2c68   :  { %v2862_v46 = vsel %vm288_vm3, %v6358_v41, %v2860_v18 }
0x2c69   :  { %4630 = vmatmul.mubr.msk.f32.vlgmr.msra.gmra.mrb[24].mxu1 %vm392_vm4, %v2862_v46 }
0x2c6a   :  { %5045 = vmatpush3.bf16.msra.mxu1 %v6194_v60  ;;  %4667 = vmatprep.mubr.msk.f32.mxu1 %vm5546_vm0, %v5547_v1 }
0x2c6b   :  { %5046 = vmatprep.subr.bf16.mxu1 %v5545_v0 }
0x2c6e   :  { %5048 = vmatpush3.bf16.msra.mxu1 %v6200_v62 }
0x2c6f   :  { %5049 = vmatprep.subr.bf16.mxu1 %v5545_v0 }
0x2c72   :  { %5051 = vmatpush3.bf16.msra.mxu1 %v6078_v35 }
0x2c73   :  { %5052 = vmatprep.subr.bf16.mxu1 %v5545_v0 }
0x2c76   :  { %5054 = vmatpush3.bf16.msra.mxu1 %v6091_v39 }
0x2c77   :  { %5067 = vmatprep.subr.bf16.mxu1 %v5545_v0 }
0x2d3c   :  { %v2932_v19 = vpop.f32.mrb[24].mxu1 }
0x2d3d   :  { %v2933_v12 = vadd.f32 %v6230_v7, %v2932_v19  ;;  %v4631_v20 = vpop.f32.mrb[25].mxu1 }
0x2d3f   :  { %5332 = vtanh.f32 %v2933_v12  ;;  %v3911_v22 = vmul.f32 -1.442695, %v2933_v12 }
0x2d41   :  { %5334 = vpow2.f32 %v3911_v22 }
0x2d49   :  { %v5333_v21 = vpop.eup %5332 }
0x2d4a   :  { %2945 = vrot.lane.b32.xlu1 %v5333_v21, %s5548_s22 }
0x2d4b   :  { %v5335_v23 = vpop.eup %5334 }
0x2d4c   :  { %v2939_v15 = vadd.f32 1.0, %v5335_v23 }
0x2d4e   :  { %5336 = vrcp.f32 %v2939_v15 }
0x2d58   :  { %v5337_v24 = vpop.eup %5336 }
0x2d59   :  { %v2943_v5 = vmul.f32 %v5337_v24, %v6330_v47 }
0x2dbc   :  { %v2946_v26 = vpop.permute.xlu1 %2945 }
0x2dbd   :  { %v2948_v29 = vmul.f32 %v5337_v24, %v2946_v26 }
0x2dbf   :  { %2950 = vrot.lane.b32.xlu0 %v2948_v29, %s5548_s22 }
0x2e31   :  { %v2951_v27 = vpop.permute.xlu0 %2950 }
0x2e32   :  { %v6377_v32 = vadd.f32 %v2951_v27, %v2943_v5 }
0x2e34   :  { %5338 = vtanh.f32 %v6377_v32 }
0x2e3e   :  { %v5339_v33 = vpop.eup %5338 }
0x2e3f   :  { %2956 = vrot.lane.b32.xlu1 %v5339_v33, %s5548_s22 }
0x2e43   :  { %2964 = vrot.lane.b32.xlu1 %v2854_v17, %s5550_s4 }
0x2eb1   :  { %v2957_v34 = vpop.permute.xlu1 %2956 }
0x2eb2   :  { %v2959_v37 = vmul.f32 %v5337_v24, %v2957_v34 }
0x2eb4   :  { %2961 = vrot.lane.b32.xlu0 %v2959_v37, %s5549_s0 }
0x2eb5   :  { %v2965_v10 = vpop.permute.xlu1 %2964 }
0x2f26   :  { %v2962_v38 = vpop.permute.xlu0 %2961 }
0x2f27   :  { %v2967_v54 = vsel %vm288_vm3, %v2962_v38, %v2965_v10 }
0x2f28   :  { %4649 = vmatmul.mubr.msk.f32.vlgmr.msra.gmra.mrb[32].mxu0 %vm392_vm4, %v2967_v54 }
0x2f29   :  { %5057 = vmatpush3.bf16.msra.mxu0 %v6127_v53  ;;  %4686 = vmatprep.mubr.msk.f32.mxu0 %vm5546_vm0, %v5547_v1 }
0x2f2a   :  { %5058 = vmatprep.subr.bf16.mxu0 %v5545_v0 }
0x2f2d   :  { %5060 = vmatpush3.bf16.msra.mxu0 %v6134_v52 }
0x2f2e   :  { %5061 = vmatprep.subr.bf16.mxu0 %v5545_v0 }
0x2f31   :  { %5063 = vmatpush3.bf16.msra.mxu0 %v6149_v25 }
0x2f32   :  { %5064 = vmatprep.subr.bf16.mxu0 %v5545_v0 }
0x2f35   :  { %5066 = vmatpush3.bf16.msra.mxu0 %v6155_v28 }
0x2f36   :  { %5079 = vmatprep.subr.bf16.mxu0 %v5545_v0 }
0x2ffb   :  { %v3037_v42 = vpop.f32.mrb[32].mxu0 }
0x2ffc   :  { %v3038_v40 = vadd.f32 %v6177_v49, %v3037_v42  ;;  %v4650_v43 = vpop.f32.mrb[33].mxu0 }
0x2ffe   :  { %5340 = vtanh.f32 %v3038_v40  ;;  %v3913_v47 = vmul.f32 -1.442695, %v3038_v40 }
0x3000   :  { %5342 = vpow2.f32 %v3913_v47 }
0x3008   :  { %v5341_v45 = vpop.eup %5340 }
0x3009   :  { %3050 = vrot.lane.b32.xlu0 %v5341_v45, %s5548_s22 }
0x300a   :  { %v5343_v48 = vpop.eup %5342 }
0x300b   :  { %v3044_v55 = vadd.f32 1.0, %v5343_v48 }
0x300d   :  { %5344 = vrcp.f32 %v3044_v55 }
0x3017   :  { %v5345_v56 = vpop.eup %5344 }
0x3018   :  { %v3048_v59 = vmul.f32 %v5345_v56, %v6352_v13 }
0x307b   :  { %v3051_v50 = vpop.permute.xlu0 %3050 }
0x307c   :  { %v3053_v57 = vmul.f32 %v5345_v56, %v3051_v50 }
0x307e   :  { %3055 = vrot.lane.b32.xlu1 %v3053_v57, %s5548_s22 }
0x30f0   :  { %v3056_v61 = vpop.permute.xlu1 %3055 }
0x30f1   :  { %v6399_v63 = vadd.f32 %v3056_v61, %v3048_v59 }
0x30f3   :  { %5346 = vtanh.f32 %v6399_v63 }
0x30fd   :  { %v5347_v2 = vpop.eup %5346 }
0x30fe   :  { %3061 = vrot.lane.b32.xlu0 %v5347_v2, %s5548_s22 }
0x3102   :  { %3069 = vrot.lane.b32.xlu0 %v2959_v37, %s5550_s4 }
0x3170   :  { %v3062_v3 = vpop.permute.xlu0 %3061 }
0x3171   :  { %v3064_v51 = vmul.f32 %v5345_v56, %v3062_v3 }
0x3173   :  { %3066 = vrot.lane.b32.xlu1 %v3064_v51, %s5549_s0 }
0x3174   :  { %v3070_v6 = vpop.permute.xlu0 %3069 }
0x31e5   :  { %v6405_v8 = vpop.permute.xlu1 %3066 }
0x31e6   :  { %v3072_v58 = vsel %vm288_vm3, %v6405_v8, %v3070_v6 }
0x31e7   :  { %4668 = vmatmul.mubr.msk.f32.vlgmr.msra.gmra.mrb[26].mxu1 %vm392_vm4, %v3072_v58 }
0x31e8   :  { %5069 = vmatpush3.bf16.msra.mxu1 %v6194_v60  ;;  %4705 = vmatprep.mubr.msk.f32.mxu1 %vm5546_vm0, %v5547_v1 }
0x31e9   :  { %5070 = vmatprep.subr.bf16.mxu1 %v5545_v0 }
0x31ec   :  { %5072 = vmatpush3.bf16.msra.mxu1 %v6200_v62 }
0x31ed   :  { %5073 = vmatprep.subr.bf16.mxu1 %v5545_v0 }
0x31f0   :  { %5075 = vmatpush3.bf16.msra.mxu1 %v6078_v35 }
0x31f1   :  { %5076 = vmatprep.subr.bf16.mxu1 %v5545_v0 }
0x31f4   :  { %5078 = vmatpush3.bf16.msra.mxu1 %v6091_v39 }
0x31f5   :  { %5091 = vmatprep.subr.bf16.mxu1 %v5545_v0 }
0x32ba   :  { %v3142_v9 = vpop.f32.mrb[26].mxu1 }
0x32bb   :  { %v3143_v11 = vadd.f32 %v6230_v7, %v3142_v9  ;;  %v4669_v31 = vpop.f32.mrb[27].mxu1 }
0x32bd   :  { %5348 = vtanh.f32 %v3143_v11  ;;  %v3915_v13 = vmul.f32 -1.442695, %v3143_v11 }
0x32bf   :  { %5350 = vpow2.f32 %v3915_v13 }
0x32c7   :  { %v5349_v36 = vpop.eup %5348 }
0x32c8   :  { %3155 = vrot.lane.b32.xlu1 %v5349_v36, %s5548_s22 }
0x32c9   :  { %v5351_v14 = vpop.eup %5350 }
0x32ca   :  { %v3149_v16 = vadd.f32 1.0, %v5351_v14 }
0x32cc   :  { %5352 = vrcp.f32 %v3149_v16 }
0x32d6   :  { %v5353_v17 = vpop.eup %5352 }
0x32d7   :  { %v3153_v19 = vmul.f32 %v5353_v17, %v6377_v32 }
0x333a   :  { %v3156_v18 = vpop.permute.xlu1 %3155 }
0x333b   :  { %v3158_v46 = vmul.f32 %v5353_v17, %v3156_v18 }
0x333d   :  { %3160 = vrot.lane.b32.xlu0 %v3158_v46, %s5548_s22 }
0x33af   :  { %v3161_v12 = vpop.permute.xlu0 %3160 }
0x33b0   :  { %v6424_v20 = vadd.f32 %v3161_v12, %v3153_v19 }
0x33b2   :  { %5354 = vtanh.f32 %v6424_v20 }
0x33bc   :  { %v5355_v21 = vpop.eup %5354 }
0x33bd   :  { %3166 = vrot.lane.b32.xlu1 %v5355_v21, %s5548_s22  ;;  %v3695_v21 = vld [vmem:[%s6599_s12] sm:$0xff] }
0x33c1   :  { %3174 = vrot.lane.b32.xlu1 %v3064_v51, %s5550_s4 }
0x342f   :  { %v3167_v22 = vpop.permute.xlu1 %3166 }
0x3430   :  { %v3169_v23 = vmul.f32 %v5353_v17, %v3167_v22  ;;  %v3696_v22 = vld [vmem:[%s6599_s12 + $0x8] sm:$0xff] }
0x3432   :  { %3171 = vrot.lane.b32.xlu0 %v3169_v23, %s5549_s0 }
0x3433   :  { %v3175_v15 = vpop.permute.xlu1 %3174 }
0x34a4   :  { %v3172_v24 = vpop.permute.xlu0 %3171 }
0x34a5   :  { %v3177_v26 = vsel %vm288_vm3, %v3172_v24, %v3175_v15 }
0x34a6   :  { %4687 = vmatmul.mubr.msk.f32.vlgmr.msra.gmra.mrb[34].mxu0 %vm392_vm4, %v3177_v26  ;;  %v3697_v26 = vld [vmem:[%s6599_s12 + $0x10] sm:$0xff] }
0x34a7   :  { %5081 = vmatpush3.bf16.msra.mxu0 %v6127_v53  ;;  %4724 = vmatprep.mubr.msk.f32.mxu0 %vm5546_vm0, %v5547_v1 }
0x34a8   :  { %5082 = vmatprep.subr.bf16.mxu0 %v5545_v0 }
0x34ab   :  { %5084 = vmatpush3.bf16.msra.mxu0 %v6134_v52 }
0x34ac   :  { %5085 = vmatprep.subr.bf16.mxu0 %v5545_v0 }
0x34af   :  { %5087 = vmatpush3.bf16.msra.mxu0 %v6149_v25 }
0x34b0   :  { %5088 = vmatprep.subr.bf16.mxu0 %v5545_v0 }
0x34b3   :  { %5090 = vmatpush3.bf16.msra.mxu0 %v6155_v28 }
0x34b4   :  { %5103 = vmatprep.subr.bf16.mxu0 %v5545_v0 }
0x3579   :  { %v3247_v29 = vpop.f32.mrb[34].mxu0 }
0x357a   :  { %v3248_v5 = vadd.f32 %v6177_v49, %v3247_v29  ;;  %v4688_v27 = vpop.f32.mrb[35].mxu0  ;;  %v3698_v29 = vld [vmem:[%s6599_s12 + $0x18] sm:$0xff] }
0x357c   :  { %5356 = vtanh.f32 %v3248_v5  ;;  %v3917_v33 = vmul.f32 -1.442695, %v3248_v5 }
0x357e   :  { %5358 = vpow2.f32 %v3917_v33 }
0x3586   :  { %v5357_v32 = vpop.eup %5356 }
0x3587   :  { %3260 = vrot.lane.b32.xlu0 %v5357_v32, %s5548_s22  ;;  %v5119_v32 = vpack.c.bf16 %v3698_v29, %v3697_v26 }
0x3588   :  { %v5359_v34 = vpop.eup %5358 }
0x3589   :  { %v3254_v37 = vadd.f32 1.0, %v5359_v34 }
0x358b   :  { %5360 = vrcp.f32 %v3254_v37 }
0x3595   :  { %v5361_v10 = vpop.eup %5360 }
0x3596   :  { %v3258_v42 = vmul.f32 %v5361_v10, %v6399_v63 }
0x35f9   :  { %v3261_v38 = vpop.permute.xlu0 %3260 }
0x35fa   :  { %v3263_v54 = vmul.f32 %v5361_v10, %v3261_v38 }
0x35fc   :  { %3265 = vrot.lane.b32.xlu1 %v3263_v54, %s5548_s22 }
0x366e   :  { %v3266_v40 = vpop.permute.xlu1 %3265 }
0x366f   :  { %v6446_v43 = vadd.f32 %v3266_v40, %v3258_v42 }
0x3671   :  { %5362 = vtanh.f32 %v6446_v43 }
0x367b   :  { %v5363_v45 = vpop.eup %5362 }
0x367c   :  { %3271 = vrot.lane.b32.xlu0 %v5363_v45, %s5548_s22 }
0x3680   :  { %3279 = vrot.lane.b32.xlu0 %v3169_v23, %s5550_s4  ;;  %v5115_v23 = vpack.c.bf16 %v3696_v22, %v3695_v21 }
0x36ee   :  { %v3272_v47 = vpop.permute.xlu0 %3271 }
0x36ef   :  { %v3274_v48 = vmul.f32 %v5361_v10, %v3272_v47 }
0x36f1   :  { %3276 = vrot.lane.b32.xlu1 %v3274_v48, %s5549_s0 }
0x36f2   :  { %v3280_v55 = vpop.permute.xlu0 %3279 }
0x3763   :  { %v6452_v56 = vpop.permute.xlu1 %3276 }
0x3764   :  { %v3282_v50 = vsel %vm288_vm3, %v6452_v56, %v3280_v55 }
0x3765   :  { %4706 = vmatmul.mubr.msk.f32.vlgmr.msra.gmra.mrb[28].mxu1 %vm392_vm4, %v3282_v50 }
0x3766   :  { %5093 = vmatpush3.bf16.msra.mxu1 %v6194_v60  ;;  %4743 = vmatprep.mubr.msk.f32.mxu1 %vm5546_vm0, %v5547_v1 }
0x3767   :  { %5094 = vmatprep.subr.bf16.mxu1 %v5545_v0 }
0x376a   :  { %5096 = vmatpush3.bf16.msra.mxu1 %v6200_v62 }
0x376b   :  { %5097 = vmatprep.subr.bf16.mxu1 %v5545_v0 }
0x376e   :  { %5099 = vmatpush3.bf16.msra.mxu1 %v6078_v35 }
0x376f   :  { %5100 = vmatprep.subr.bf16.mxu1 %v5545_v0 }
0x3772   :  { %5102 = vmatpush3.bf16.msra.mxu1 %v6091_v39 }
0x3773   :  { %5116 = vmatprep.subr.bf16.mxu1 %v5115_v23 }
0x3838   :  { %v3352_v57 = vpop.f32.mrb[28].mxu1 }
0x3839   :  { %v3353_v59 = vadd.f32 %v6230_v7, %v3352_v57  ;;  %v4707_v61 = vpop.f32.mrb[29].mxu1 }
0x383b   :  { %5364 = vtanh.f32 %v3353_v59  ;;  %v3919_v63 = vmul.f32 -1.442695, %v3353_v59 }
0x383d   :  { %5366 = vpow2.f32 %v3919_v63 }
0x3845   :  { %v5365_v60 = vpop.eup %5364 }
0x3846   :  { %3365 = vrot.lane.b32.xlu1 %v5365_v60, %s5548_s22 }
0x3847   :  { %v5367_v2 = vpop.eup %5366 }
0x3848   :  { %v3359_v62 = vadd.f32 1.0, %v5367_v2 }
0x384a   :  { %5368 = vrcp.f32 %v3359_v62 }
0x3854   :  { %v5369_v3 = vpop.eup %5368 }
0x3855   :  { %v3363_v39 = vmul.f32 %v5369_v3, %v6424_v20 }
0x38b8   :  { %v3366_v51 = vpop.permute.xlu1 %3365 }
0x38b9   :  { %v3368_v35 = vmul.f32 %v5369_v3, %v3366_v51 }
0x38bb   :  { %3370 = vrot.lane.b32.xlu0 %v3368_v35, %s5548_s22 }
0x392d   :  { %v3371_v6 = vpop.permute.xlu0 %3370 }
0x392e   :  { %v6470_v58 = vadd.f32 %v3371_v6, %v3363_v39 }
0x3930   :  { %5370 = vtanh.f32 %v6470_v58 }
0x393a   :  { %v5371_v9 = vpop.eup %5370 }
0x393b   :  { %3376 = vrot.lane.b32.xlu1 %v5371_v9, %s5548_s22 }
0x393f   :  { %3384 = vrot.lane.b32.xlu1 %v3274_v48, %s5550_s4 }
0x39ad   :  { %v3377_v11 = vpop.permute.xlu1 %3376 }
0x39ae   :  { %v3379_v31 = vmul.f32 %v5369_v3, %v3377_v11 }
0x39b0   :  { %3381 = vrot.lane.b32.xlu0 %v3379_v31, %s5549_s0 }
0x39b1   :  { %v3385_v36 = vpop.permute.xlu1 %3384 }
0x3a22   :  { %v3382_v13 = vpop.permute.xlu0 %3381 }
0x3a23   :  { %v3387_v14 = vsel %vm288_vm3, %v3382_v13, %v3385_v36 }
0x3a24   :  { %4725 = vmatmul.mubr.msk.f32.vlgmr.msra.gmra.mrb[36].mxu0 %vm392_vm4, %v3387_v14 }
0x3a25   :  { %5105 = vmatpush3.bf16.msra.mxu0 %v6127_v53  ;;  %4762 = vmatprep.mubr.msk.f32.mxu0 %vm5546_vm0, %v5547_v1 }
0x3a26   :  { %5106 = vmatprep.subr.bf16.mxu0 %v5545_v0 }
0x3a29   :  { %5108 = vmatpush3.bf16.msra.mxu0 %v6134_v52 }
0x3a2a   :  { %5109 = vmatprep.subr.bf16.mxu0 %v5545_v0 }
0x3a2d   :  { %5111 = vmatpush3.bf16.msra.mxu0 %v6149_v25 }
0x3a2e   :  { %5112 = vmatprep.subr.bf16.mxu0 %v5545_v0 }
0x3a31   :  { %5114 = vmatpush3.bf16.msra.mxu0 %v6155_v28 }
0x3af7   :  { %v3457_v16 = vpop.f32.mrb[36].mxu0 }
0x3af8   :  { %v3458_v17 = vadd.f32 %v6177_v49, %v3457_v16  ;;  %v4726_v18 = vpop.f32.mrb[37].mxu0 }
0x3afa   :  { %5372 = vtanh.f32 %v3458_v17  ;;  %v3921_v1 = vmul.f32 -1.442695, %v3458_v17 }
0x3afc   :  { %5374 = vpow2.f32 %v3921_v1 }
0x3b04   :  { %v5373_v53 = vpop.eup %5372 }
0x3b05   :  { %3470 = vrot.lane.b32.xlu0 %v5373_v53, %s5548_s22 }
0x3b06   :  { %v5375_v46 = vpop.eup %5374 }
0x3b07   :  { %v3464_v52 = vadd.f32 1.0, %v5375_v46 }
0x3b09   :  { %5376 = vrcp.f32 %v3464_v52 }
0x3b13   :  { %v5377_v19 = vpop.eup %5376 }
0x3b14   :  { %v3468_v0 = vmul.f32 %v5377_v19, %v6446_v43 }
0x3b77   :  { %v3471_v12 = vpop.permute.xlu0 %3470 }
0x3b78   :  { %v3473_v25 = vmul.f32 %v5377_v19, %v3471_v12 }
0x3b7a   :  { %3475 = vrot.lane.b32.xlu1 %v3473_v25, %s5548_s22 }
0x3bec   :  { %v3476_v28 = vpop.permute.xlu1 %3475 }
0x3bed   :  { %v6491_v20 = vadd.f32 %v3476_v28, %v3468_v0 }
0x3bef   :  { %5378 = vtanh.f32 %v6491_v20 }
0x3bf9   :  { %v5379_v49 = vpop.eup %5378 }
0x3bfa   :  { %3481 = vrot.lane.b32.xlu0 %v5379_v49, %s5548_s22 }
0x3bfe   :  { %3489 = vrot.lane.b32.xlu0 %v3379_v31, %s5550_s4 }
0x3c6c   :  { %v3482_v15 = vpop.permute.xlu0 %3481 }
0x3c6d   :  { %v3484_v24 = vmul.f32 %v5377_v19, %v3482_v15 }
0x3c6f   :  { %3486 = vrot.lane.b32.xlu1 %v3484_v24, %s5549_s0 }
0x3c70   :  { %v3490_v5 = vpop.permute.xlu0 %3489 }
0x3ce1   :  { %v3487_v27 = vpop.permute.xlu1 %3486 }
0x3ce2   :  { %v3492_v33 = vsel %vm288_vm3, %v3487_v27, %v3490_v5 }
0x3ce3   :  { %4744 = vmatmul.mubr.msk.f32.vlgmr.msra.gmra.mrb[30].mxu1 %vm392_vm4, %v3492_v33 }
0x3ce4   :  { %5118 = vmatpush3.bf16.msra.mxu1 %v5115_v23  ;;  %4773 = vmatprep.mubr.msk.f32.mxu1 %vm288_vm3, %v6212_v4 }
0x3ce5   :  { %5120 = vmatprep.subr.bf16.mxu1 %v5119_v32 }
0x3ce8   :  { %5122 = vmatpush3.bf16.msra.mxu1 %v5119_v32 }
0x3ceb   :  { %4774 = vmatmul.mubr.msk.f32.vlgmr.msra.gmra.mrb[32].mxu1 %vm288_vm3, %v6264_v44  ;;  %v6528_v44 = vld [vmem:[%s6600_s13] ss:$0 sm:$0xff] }
0x3cec   :  { %4776 = vmatprep.mubr.msk.f32.mxu1 %vm288_vm3, %v6311_v30 }
0x3cef   :  { %4777 = vmatmul.mubr.msk.f32.gmra.mrb[34].mxu1 %vm288_vm3, %v6358_v41 }
0x3cf0   :  { %4779 = vmatprep.mubr.msk.f32.mxu1 %vm288_vm3, %v6405_v8 }
0x3cf3   :  { %4780 = vmatmul.mubr.msk.f32.gmra.mrb[36].mxu1 %vm288_vm3, %v6452_v56 }
0x3cf4   :  { %4782 = vmatprep.mubr.msk.f32.mxu1 %vm288_vm3, %v3487_v27 }
0x3db6   :  { %v3562_v4 = vpop.f32.mrb[30].mxu1 }
0x3db7   :  { %v3563_v34 = vadd.f32 %v6230_v7, %v3562_v4  ;;  %v4745_v37 = vpop.f32.mrb[31].mxu1 }
0x3db9   :  { %5380 = vtanh.f32 %v3563_v34  ;;  %v3923_v55 = vmul.f32 -1.442695, %v3563_v34 }
0x3dbb   :  { %5382 = vpow2.f32 %v3923_v55 }
0x3dbe   :  { %v4775_v30 = vpop.f32.mrb[32].mxu1 }
0x3dbf   :  { %v3797_v41 = vadd.f32 %v4775_v30, %v6528_v44  ;;  %v3791_v8 = vpop.f32.mrb[33].mxu1 }
0x3dc0   :  { %v3792_v10 = vadd.f32 %v6528_v44, %v3791_v8 }
0x3dc1   :  { %3832 = vst.msk [vmem:[%s6601_s14 + $0x8] sm:$0xff] %vm3830_vm5, %v3797_v41 }
0x3dc2   :  { %3831 = vst.msk [vmem:[%s6601_s14] sm:$0xff] %vm3830_vm5, %v3792_v10  ;;  %v4778_v7 = vpop.f32.mrb[34].mxu1 }
0x3dc3   :  { %v5381_v38 = vpop.eup %5380  ;;  %v3807_v54 = vadd.f32 %v4778_v7, %v6528_v44  ;;  %v3801_v42 = vpop.f32.mrb[35].mxu1 }
0x3dc4   :  { %v3802_v40 = vadd.f32 %v6528_v44, %v3801_v42  ;;  %3575 = vrot.lane.b32.xlu1 %v5381_v38, %s5548_s22 }
0x3dc5   :  { %3834 = vst.msk [vmem:[%s6601_s14 + $0x18] sm:$0xff] %vm3830_vm5, %v3807_v54  ;;  %v5383_v56 = vpop.eup %5382 }
0x3dc6   :  { %3833 = vst.msk [vmem:[%s6601_s14 + $0x10] sm:$0xff] %vm3830_vm5, %v3802_v40  ;;  %v4781_v43 = vpop.f32.mrb[36].mxu1  ;;  %v3569_v50 = vadd.f32 1.0, %v5383_v56 }
0x3dc7   :  { %v3817_v45 = vadd.f32 %v4781_v43, %v6528_v44  ;;  %v3811_v47 = vpop.f32.mrb[37].mxu1 }
0x3dc8   :  { %v3812_v48 = vadd.f32 %v6528_v44, %v3811_v47  ;;  %5384 = vrcp.f32 %v3569_v50 }
0x3dc9   :  { %3836 = vst.msk [vmem:[%s6601_s14 + $0x28] sm:$0xff] %vm3830_vm5, %v3817_v45 }
0x3dca   :  { %3835 = vst.msk [vmem:[%s6601_s14 + $0x20] sm:$0xff] %vm3830_vm5, %v3812_v48 }
0x3dd2   :  { %v5385_v57 = vpop.eup %5384 }
0x3dd3   :  { %v3573_v60 = vmul.f32 %v5385_v57, %v6470_v58  ;;  %v5396_v58 = vld [vmem:[%s6598_s11] ss:$0 sm:$0xff] }
0x3e36   :  { %v3576_v59 = vpop.permute.xlu1 %3575 }
0x3e37   :  { %v3578_v61 = vmul.f32 %v5385_v57, %v3576_v59 }
0x3e39   :  { %3580 = vrot.lane.b32.xlu0 %v3578_v61, %s5548_s22 }
0x3eab   :  { %v3581_v63 = vpop.permute.xlu0 %3580 }
0x3eac   :  { %v3583_v2 = vadd.f32 %v3581_v63, %v3573_v60 }
0x3eae   :  { %5386 = vtanh.f32 %v3583_v2 }
0x3eb8   :  { %v5387_v62 = vpop.eup %5386 }
0x3eb9   :  { %3586 = vrot.lane.b32.xlu1 %v5387_v62, %s5548_s22 }
0x3ebd   :  { %3594 = vrot.lane.b32.xlu1 %v3484_v24, %s5550_s4 }
0x3f2b   :  { %v3587_v3 = vpop.permute.xlu1 %3586 }
0x3f2c   :  { %v3589_v51 = vmul.f32 %v5385_v57, %v3587_v3 }
0x3f2e   :  { %3591 = vrot.lane.b32.xlu0 %v3589_v51, %s5549_s0 }
0x3f2f   :  { %v3595_v35 = vpop.permute.xlu1 %3594 }
0x3fa0   :  { %v3592_v39 = vpop.permute.xlu0 %3591 }
0x3fa1   :  { %v3597_v6 = vsel %vm288_vm3, %v3592_v39, %v3595_v35 }
0x3fa2   :  { %4763 = vmatmul.mubr.msk.f32.vlgmr.msra.gmra.mrb[38].mxu0 %vm392_vm4, %v3597_v6 }
0x4075   :  { %v3667_v9 = vpop.f32.mrb[38].mxu0 }
0x4076   :  { %v3668_v11 = vadd.f32 %v5396_v58, %v3667_v9  ;;  %v4764_v31 = vpop.f32.mrb[39].mxu0 }
0x4078   :  { %5388 = vtanh.f32 %v3668_v11  ;;  %v3925_v13 = vmul.f32 -1.442695, %v3668_v11 }
0x407a   :  { %5390 = vpow2.f32 %v3925_v13 }
0x4082   :  { %v5389_v36 = vpop.eup %5388 }
0x4083   :  { %3680 = vrot.lane.b32.xlu0 %v5389_v36, %s5548_s22 }
0x4084   :  { %v5391_v14 = vpop.eup %5390 }
0x4085   :  { %v3674_v16 = vadd.f32 1.0, %v5391_v14 }
0x4087   :  { %5392 = vrcp.f32 %v3674_v16 }
0x4091   :  { %v5393_v17 = vpop.eup %5392 }
0x4092   :  { %v3678_v1 = vmul.f32 %v5393_v17, %v6491_v20 }
0x40f5   :  { %v3681_v18 = vpop.permute.xlu0 %3680 }
0x40f6   :  { %v3683_v53 = vmul.f32 %v5393_v17, %v3681_v18 }
0x40f8   :  { %3685 = vrot.lane.b32.xlu1 %v3683_v53, %s5548_s22 }
0x416a   :  { %v3686_v46 = vpop.permute.xlu1 %3685 }
0x416b   :  { %v3688_v52 = vadd.f32 %v3686_v46, %v3678_v1 }
0x416d   :  { %5394 = vtanh.f32 %v3688_v52 }
0x4177   :  { %v5395_v19 = vpop.eup %5394 }
0x4178   :  { %3691 = vrot.lane.b32.xlu0 %v5395_v19, %s5548_s22 }
0x41ea   :  { %v3692_v12 = vpop.permute.xlu0 %3691 }
0x41eb   :  { %v3694_v25 = vmul.f32 %v5393_v17, %v3692_v12 }
0x41ed   :  { %3707 = vrot.lane.b32.xlu1 %v3694_v25, %s5549_s0 }
0x425f   :  { %v3708_v0 = vpop.permute.xlu1 %3707 }
0x4260   :  { %4783 = vmatmul.mubr.msk.f32.gmra.mrb[38].mxu1 %vm288_vm3, %v3708_v0 }
0x4333   :  { %v4784_v28 = vpop.f32.mrb[38].mxu1 }
0x4334   :  { %v3827_v49 = vadd.f32 %v4784_v28, %v6528_v44  ;;  %v3821_v21 = vpop.f32.mrb[39].mxu1 }
0x4335   :  { %v3822_v22 = vadd.f32 %v6528_v44, %v3821_v21 }
0x4336   :  { %3838 = vst.msk [vmem:[%s6601_s14 + $0x38] sm:$0xff] %vm3830_vm5, %v3827_v49 }
0x4337   :  { %3837 = vst.msk [vmem:[%s6601_s14 + $0x30] sm:$0xff] %vm3830_vm5, %v3822_v22 }
0x4338   :  { %3843 = vsyncpa [#allocation3], 1 }
0x4339   :  { %3844 = vsyncpa [#allocation5], 1 }
0x433a   :  { %3845 = vsyncpa [#allocation8], 1 }
0x433b   :  { %3846 = vsyncpa [#allocation11], 1 }

</bundles_post_ra>
